<compile_context>
chip_gen: v7x
topology: tpu7x:2x2x1
jax: 0.10.0
libtpu: 0.0.40
codegen_flags: <defaults>
</compile_context>

<pallas_src>
import jax
import jax.numpy as jnp
from jax import lax
from jax.experimental import pallas as pl
from jax.experimental.pallas import tpu as pltpu

# ---- model hyperparameters (nn.TransformerEncoderLayer defaults) ----
VOCAB = 256
EMBED = 128                  # d_model
NHEAD = 4
HEAD_DIM = EMBED // NHEAD    # 32
FFN = 2048                   # dim_feedforward default
FFN_CHUNK = FFN // 2         # 1024 (2-chunk FFN to cap live f32 vregs)
NLAYERS = 2
EPS = 1e-5                   # LayerNorm default eps
B = 2
S = 8
BS = B * S                   # 16

# packed big-weight column offsets inside w_in = [wqkv | wo | w1] (all 128-aligned)
OFF_WQKV = 0                        # width 3*EMBED = 384
OFF_WO   = 3 * EMBED                # 384, width EMBED
OFF_W1   = 4 * EMBED                # 512, width FFN
WIN_COLS = 4 * EMBED + FFN          # 2560

# packed per-layer vector offsets (all multiples of 128 -> lane-aligned slices)
OFF_BQKV = 0
OFF_BO   = OFF_BQKV + 3 * EMBED     # 384
OFF_LN1W = OFF_BO + EMBED           # 512
OFF_LN1B = OFF_LN1W + EMBED         # 640
OFF_B1   = OFF_LN1B + EMBED         # 768
OFF_B2   = OFF_B1 + FFN             # 2816
OFF_LN2W = OFF_B2 + EMBED           # 2944
OFF_LN2B = OFF_LN2W + EMBED         # 3072
OFF_FCB  = OFF_LN2B + EMBED         # 3200
VEC_TOTAL = OFF_FCB + VOCAB         # 3456


# ---------------- fused Pallas kernel ----------------

def fused_blt_kernel(tok_ref, emb_ref, win_ref, w2_ref, vec_ref, fcw_ref,
                     o_ref, h_ref):
    """One TransformerEncoderLayer per grid step; embedding gather fused into
    step 0; final vocab projection on the last step.

    h_ref: VMEM scratch carrying the (B*S, E) f32 activation across layer steps.
    """
    layer = pl.program_id(0)

    @pl.when(layer == 0)
    def _():
        # fused embedding lookup: one-hot(tokens) @ table on the MXU
        tok = tok_ref[...]                                        # (BS, 1) int32
        col = lax.broadcasted_iota(jnp.int32, (BS, VOCAB), 1)
        onehot = jnp.where(col == tok, 1.0, 0.0).astype(jnp.bfloat16)
        h_ref[...] = jnp.dot(onehot, emb_ref[...],
                             preferred_element_type=jnp.float32)  # (BS, E) f32

    x = h_ref[...]                                                # (BS, E) f32

    # packed per-layer vectors (f32, lane-aligned static slices)
    bqkv = vec_ref[:, OFF_BQKV:OFF_BQKV + 3 * EMBED]              # (1, 3E)
    bo   = vec_ref[:, OFF_BO:OFF_BO + EMBED]                      # (1, E)
    ln1w = vec_ref[:, OFF_LN1W:OFF_LN1W + EMBED]
    ln1b = vec_ref[:, OFF_LN1B:OFF_LN1B + EMBED]
    b2   = vec_ref[:, OFF_B2:OFF_B2 + EMBED]
    ln2w = vec_ref[:, OFF_LN2W:OFF_LN2W + EMBED]
    ln2b = vec_ref[:, OFF_LN2B:OFF_LN2B + EMBED]

    # ---- multi-head self-attention (scale pre-folded into Q weights/bias) ----
    xb = x.astype(jnp.bfloat16)
    qkv = jnp.dot(xb, win_ref[:, OFF_WQKV:OFF_WQKV + 3 * EMBED],
                  preferred_element_type=jnp.float32) + bqkv      # (BS, 3E) f32
    q = qkv[:, 0 * EMBED:1 * EMBED].reshape(B, S, EMBED)
    k = qkv[:, 1 * EMBED:2 * EMBED].reshape(B, S, EMBED)
    v = qkv[:, 2 * EMBED:3 * EMBED].reshape(B, S, EMBED)

    ctx_heads = []
    for h in range(NHEAD):                                        # static unroll, 4 heads
        lo = h * HEAD_DIM
        qh = q[:, :, lo:lo + HEAD_DIM]                            # (B, S, D)
        kh = k[:, :, lo:lo + HEAD_DIM]
        vh = v[:, :, lo:lo + HEAD_DIM]
        s = jnp.einsum('bqd,bkd->bqk', qh, kh,
                       preferred_element_type=jnp.float32)        # (B, S, S)
        s = s - jnp.max(s, axis=-1, keepdims=True)
        p = jnp.exp(s)
        p = p * pl.reciprocal(jnp.sum(p, axis=-1, keepdims=True), approx=True)
        ctx = jnp.einsum('bqk,bkd->bqd', p, vh,
                         preferred_element_type=jnp.float32)      # (B, S, D)
        ctx_heads.append(ctx.reshape(BS, HEAD_DIM))
    ctx_full = jnp.concatenate(ctx_heads, axis=-1)                # (BS, E) f32
    attn = jnp.dot(ctx_full.astype(jnp.bfloat16),
                   win_ref[:, OFF_WO:OFF_WO + EMBED],
                   preferred_element_type=jnp.float32) + bo       # (BS, E)

    # ---- residual + LayerNorm 1 (post-norm) ----------------------------
    x1 = x + attn
    m1 = jnp.mean(x1, axis=-1, keepdims=True)
    v1 = jnp.mean((x1 - m1) ** 2, axis=-1, keepdims=True)
    y = (x1 - m1) * lax.rsqrt(v1 + EPS) * ln1w + ln1b

    # ---- feed-forward: linear1 -> relu -> linear2, in 2 chunks -----------
    yb = y.astype(jnp.bfloat16)
    ff = jnp.zeros((BS, EMBED), jnp.float32)
    for c in range(FFN // FFN_CHUNK):                             # static unroll, 2 chunks
        co = c * FFN_CHUNK
        h1 = jnp.dot(yb, win_ref[:, OFF_W1 + co:OFF_W1 + co + FFN_CHUNK],
                     preferred_element_type=jnp.float32)          # (BS, 1024)
        h1 = h1 + vec_ref[:, OFF_B1 + co:OFF_B1 + co + FFN_CHUNK]
        h1 = jnp.maximum(h1, 0.0).astype(jnp.bfloat16)
        ff = ff + jnp.dot(h1, w2_ref[co:co + FFN_CHUNK, :],
                          preferred_element_type=jnp.float32)     # (BS, E)
    ff = ff + b2

    # ---- residual + LayerNorm 2 ----------------------------------------
    x2 = y + ff
    m2 = jnp.mean(x2, axis=-1, keepdims=True)
    v2 = jnp.mean((x2 - m2) ** 2, axis=-1, keepdims=True)
    out = (x2 - m2) * lax.rsqrt(v2 + EPS) * ln2w + ln2b           # (BS, E) f32

    h_ref[...] = out                                              # carry to next layer

    # ---- final vocab projection on the last layer step ------------------
    @pl.when(layer == pl.num_programs(0) - 1)
    def _():
        fcb = vec_ref[:, OFF_FCB:OFF_FCB + VOCAB]                 # (1, VOCAB)
        o_ref[...] = jnp.dot(out.astype(jnp.bfloat16), fcw_ref[...],
                             preferred_element_type=jnp.float32) + fcb


# ---------------- wrapper ----------------

def run_blt_stack(tokens, params):
    """tokens: (B, S) int32 -> (B*S, VOCAB) f32 logits."""
    tok = tokens.reshape(BS, 1).astype(jnp.int32)
    return pl.pallas_call(
        fused_blt_kernel,
        out_shape=jax.ShapeDtypeStruct((BS, VOCAB), jnp.float32),
        grid=(NLAYERS,),
        in_specs=[
            pl.BlockSpec((BS, 1), lambda l: (0, 0)),                      # tokens i32
            pl.BlockSpec((VOCAB, EMBED), lambda l: (0, 0)),               # emb table bf16
            pl.BlockSpec((None, EMBED, WIN_COLS), lambda l: (l, 0, 0)),   # wqkv|wo|w1 bf16
            pl.BlockSpec((None, FFN, EMBED), lambda l: (l, 0, 0)),        # w2 bf16
            pl.BlockSpec((None, 1, VEC_TOTAL), lambda l: (l, 0, 0)),      # packed vecs f32
            pl.BlockSpec((EMBED, VOCAB), lambda l: (0, 0)),               # fc_w bf16
        ],
        out_specs=pl.BlockSpec((BS, VOCAB), lambda l: (0, 0)),
        scratch_shapes=[pltpu.VMEM((BS, EMBED), jnp.float32)],
        compiler_params=pltpu.CompilerParams(dimension_semantics=("arbitrary",)),
    )(tok, params["embedding"], params["w_in"], params["w2"],
      params["vec"], params["fc_w"])


def init_params(key):
    """Deterministic synthetic parameters with the same shapes as the PyTorch
    module.  Matmul weights pre-transposed to (in, out), attention scale folded
    into the Q columns/bias (in f32, before the bf16 cast), big weights packed
    as [wqkv|wo|w1], small vectors (biases + LN affine + fc bias) packed per
    layer into one f32 array."""
    keys = iter(jax.random.split(key, 16))
    nrm = lambda shape, s=0.02: s * jax.random.normal(next(keys), shape, jnp.float32)

    emb = nrm((VOCAB, EMBED), 1.0).at[0].set(0.0)             # padding_idx=0 row zero
    emb = emb.astype(jnp.bfloat16)

    scale = 1.0 / (HEAD_DIM ** 0.5)
    wqkv = nrm((NLAYERS, EMBED, 3 * EMBED))                   # in_proj_weight.T
    wqkv = wqkv.at[:, :, :EMBED].multiply(scale)              # fold attn scale (f32, pre-cast)
    wo   = nrm((NLAYERS, EMBED, EMBED))                       # out_proj.weight.T
    w1   = nrm((NLAYERS, EMBED, FFN))                         # linear1.weight.T
    w_in = jnp.concatenate([wqkv, wo, w1], axis=-1).astype(jnp.bfloat16)

    w2   = nrm((NLAYERS, FFN, EMBED)).astype(jnp.bfloat16)    # linear2.weight.T

    bqkv = nrm((NLAYERS, 3 * EMBED))
    bqkv = bqkv.at[:, :EMBED].multiply(scale)                 # fold attn scale into q bias
    bo   = nrm((NLAYERS, EMBED))
    ln1w = jnp.ones((NLAYERS, EMBED), jnp.float32)
    ln1b = jnp.zeros((NLAYERS, EMBED), jnp.float32)
    b1   = nrm((NLAYERS, FFN))
    b2   = nrm((NLAYERS, EMBED))
    ln2w = jnp.ones((NLAYERS, EMBED), jnp.float32)
    ln2b = jnp.zeros((NLAYERS, EMBED), jnp.float32)
    fc_b = nrm((VOCAB,))
    fcb_rep = jnp.tile(fc_b[None, :], (NLAYERS, 1))           # replicate fc bias per layer
    vec = jnp.concatenate([bqkv, bo, ln1w, ln1b, b1, b2, ln2w, ln2b, fcb_rep],
                          axis=-1)[:, None, :]                # (NLAYERS, 1, VEC_TOTAL)

    fc_w = nrm((EMBED, VOCAB)).astype(jnp.bfloat16)           # fc.weight.T
    return {"embedding": emb, "w_in": w_in, "w2": w2, "vec": vec, "fc_w": fc_w}


@jax.jit
def blt_forward(tokens, params):
    logits = run_blt_stack(tokens, params)                    # (B*S, VOCAB)
    return logits.reshape(B, S, VOCAB)


if __name__ == "__main__":
    key = jax.random.PRNGKey(0)
    pkey, tkey = jax.random.split(key)
    params = init_params(pkey)
    tokens = jax.random.randint(tkey, (B, S), 0, VOCAB, dtype=jnp.int32)

    logits = blt_forward(tokens, params)
    jax.block_until_ready(logits)

    assert logits.shape == (B, S, VOCAB)
    assert bool(jnp.all(jnp.isfinite(logits)))
    print("KERNEL_OK")
</pallas_src>

<mosaic_0001>
module attributes {stable_mosaic.version = 11 : i64} {
  func.func @fused_blt_kernel(%arg0: i32, %arg1: memref<16x1xi32, #tpu.memory_space<vmem>>, %arg2: memref<256x128xbf16, #tpu.memory_space<vmem>>, %arg3: memref<1x128x2560xbf16, #tpu.memory_space<vmem>>, %arg4: memref<1x2048x128xbf16, #tpu.memory_space<vmem>>, %arg5: memref<1x1x3456xf32, #tpu.memory_space<vmem>>, %arg6: memref<128x256xbf16, #tpu.memory_space<vmem>>, %arg7: memref<16x256xf32, #tpu.memory_space<vmem>>, %arg8: memref<16x128xf32, #tpu.memory_space<vmem>>) attributes {dimension_semantics = [#tpu.dimension_semantics<arbitrary>], iteration_bounds = array<i64: 2>, scalar_prefetch = 0 : i64, scratch_operands = 1 : i64, tpu.core_type = #tpu.core_type<tc>, window_params = [{pipeline_mode = #tpu.pipeline_mode<synchronous>, transform_indices = @transform_0, window_bounds = array<i64: 16, 1>}, {pipeline_mode = #tpu.pipeline_mode<synchronous>, transform_indices = @transform_1, window_bounds = array<i64: 256, 128>}, {transform_indices = @transform_2, window_bounds = array<i64: 1, 128, 2560>}, {transform_indices = @transform_3, window_bounds = array<i64: 1, 2048, 128>}, {transform_indices = @transform_4, window_bounds = array<i64: 1, 1, 3456>}, {pipeline_mode = #tpu.pipeline_mode<synchronous>, transform_indices = @transform_5, window_bounds = array<i64: 128, 256>}, {pipeline_mode = #tpu.pipeline_mode<synchronous>, transform_indices = @transform_6, window_bounds = array<i64: 16, 256>}]} {
    %c0_i32 = arith.constant 0 : i32
    %0 = arith.cmpi eq, %arg0, %c0_i32 : i32
    %1 = arith.extui %0 : i1 to i32
    %c0_i32_0 = arith.constant 0 : i32
    %2 = arith.cmpi ne, %1, %c0_i32_0 : i32
    scf.if %2 {
      %c0_74 = arith.constant 0 : index
      %c0_75 = arith.constant 0 : index
      %183 = vector.load %arg1[%c0_74, %c0_75] : memref<16x1xi32, #tpu.memory_space<vmem>>, vector<16x1xi32>
      %184 = tpu.iota {dimensions = array<i32: 1>} : vector<16x256xi32>
      %185 = vector.broadcast %183 : vector<16x1xi32> to vector<16x256xi32>
      %186 = arith.cmpi eq, %184, %185 : vector<16x256xi32>
      %cst_76 = arith.constant 1.000000e+00 : f32
      %cst_77 = arith.constant 0.000000e+00 : f32
      %187 = vector.broadcast %cst_76 : f32 to vector<16x256xf32>
      %188 = vector.broadcast %cst_77 : f32 to vector<16x256xf32>
      %189 = arith.select %186, %187, %188 : vector<16x256xi1>, vector<16x256xf32>
      %190 = arith.truncf %189 : vector<16x256xf32> to vector<16x256xbf16>
      %c0_78 = arith.constant 0 : index
      %c0_79 = arith.constant 0 : index
      %191 = vector.load %arg2[%c0_78, %c0_79] : memref<256x128xbf16, #tpu.memory_space<vmem>>, vector<256x128xbf16>
      %cst_80 = arith.constant dense<0.000000e+00> : vector<16x128xf32>
      %192 = tpu.matmul %190, %191, %cst_80 {dimension_numbers = #tpu.dot_dimension_numbers<[1], [0], [0], [1], [0, 0, 1, 1], [], []>} : vector<16x256xbf16>, vector<256x128xbf16>, vector<16x128xf32> -> vector<16x128xf32>
      %c0_81 = arith.constant 0 : index
      %c0_82 = arith.constant 0 : index
      %193 = vector.load %arg8[%c0_81, %c0_82] : memref<16x128xf32, #tpu.memory_space<vmem>>, vector<16x128xf32>
      tpu.vector_store %arg8[%c0_81, %c0_82], %192 {strides = array<i32>} : memref<16x128xf32, #tpu.memory_space<vmem>>, vector<16x128xf32>,
    } else {
    }
    %c0 = arith.constant 0 : index
    %c0_1 = arith.constant 0 : index
    %3 = vector.load %arg8[%c0, %c0_1] : memref<16x128xf32, #tpu.memory_space<vmem>>, vector<16x128xf32>
    %c0_2 = arith.constant 0 : index
    %c0_3 = arith.constant 0 : index
    %c0_4 = arith.constant 0 : index
    %4 = vector.load %arg5[%c0_2, %c0_3, %c0_4] : memref<1x1x3456xf32, #tpu.memory_space<vmem>>, vector<1x1x384xf32>
    %5 = vector.shape_cast %4 : vector<1x1x384xf32> to vector<1x384xf32>
    %c0_5 = arith.constant 0 : index
    %c0_6 = arith.constant 0 : index
    %c384 = arith.constant 384 : index
    %6 = vector.load %arg5[%c0_5, %c0_6, %c384] : memref<1x1x3456xf32, #tpu.memory_space<vmem>>, vector<1x1x128xf32>
    %7 = vector.shape_cast %6 : vector<1x1x128xf32> to vector<1x128xf32>
    %c0_7 = arith.constant 0 : index
    %c0_8 = arith.constant 0 : index
    %c512 = arith.constant 512 : index
    %8 = vector.load %arg5[%c0_7, %c0_8, %c512] : memref<1x1x3456xf32, #tpu.memory_space<vmem>>, vector<1x1x128xf32>
    %9 = vector.shape_cast %8 : vector<1x1x128xf32> to vector<1x128xf32>
    %c0_9 = arith.constant 0 : index
    %c0_10 = arith.constant 0 : index
    %c640 = arith.constant 640 : index
    %10 = vector.load %arg5[%c0_9, %c0_10, %c640] : memref<1x1x3456xf32, #tpu.memory_space<vmem>>, vector<1x1x128xf32>
    %11 = vector.shape_cast %10 : vector<1x1x128xf32> to vector<1x128xf32>
    %c0_11 = arith.constant 0 : index
    %c0_12 = arith.constant 0 : index
    %c2816 = arith.constant 2816 : index
    %12 = vector.load %arg5[%c0_11, %c0_12, %c2816] : memref<1x1x3456xf32, #tpu.memory_space<vmem>>, vector<1x1x128xf32>
    %13 = vector.shape_cast %12 : vector<1x1x128xf32> to vector<1x128xf32>
    %c0_13 = arith.constant 0 : index
    %c0_14 = arith.constant 0 : index
    %c2944 = arith.constant 2944 : index
    %14 = vector.load %arg5[%c0_13, %c0_14, %c2944] : memref<1x1x3456xf32, #tpu.memory_space<vmem>>, vector<1x1x128xf32>
    %15 = vector.shape_cast %14 : vector<1x1x128xf32> to vector<1x128xf32>
    %c0_15 = arith.constant 0 : index
    %c0_16 = arith.constant 0 : index
    %c3072 = arith.constant 3072 : index
    %16 = vector.load %arg5[%c0_15, %c0_16, %c3072] : memref<1x1x3456xf32, #tpu.memory_space<vmem>>, vector<1x1x128xf32>
    %17 = vector.shape_cast %16 : vector<1x1x128xf32> to vector<1x128xf32>
    %18 = arith.truncf %3 : vector<16x128xf32> to vector<16x128xbf16>
    %c0_17 = arith.constant 0 : index
    %c0_18 = arith.constant 0 : index
    %c0_19 = arith.constant 0 : index
    %19 = vector.load %arg3[%c0_17, %c0_18, %c0_19] : memref<1x128x2560xbf16, #tpu.memory_space<vmem>>, vector<1x128x384xbf16>
    %20 = vector.shape_cast %19 : vector<1x128x384xbf16> to vector<128x384xbf16>
    %cst = arith.constant dense<0.000000e+00> : vector<16x384xf32>
    %21 = tpu.matmul %18, %20, %cst {dimension_numbers = #tpu.dot_dimension_numbers<[1], [0], [0], [1], [0, 0, 1, 1], [], []>} : vector<16x128xbf16>, vector<128x384xbf16>, vector<16x384xf32> -> vector<16x384xf32>
    %22 = vector.broadcast %5 : vector<1x384xf32> to vector<16x384xf32>
    %23 = arith.addf %21, %22 : vector<16x384xf32>
    %24 = vector.extract_strided_slice %23 {offsets = [0, 0], sizes = [16, 128], strides = [1, 1]} : vector<16x384xf32> to vector<16x128xf32>
    %25 = vector.shape_cast %24 : vector<16x128xf32> to vector<2x8x128xf32>
    %26 = vector.extract_strided_slice %23 {offsets = [0, 128], sizes = [16, 128], strides = [1, 1]} : vector<16x384xf32> to vector<16x128xf32>
    %27 = vector.shape_cast %26 : vector<16x128xf32> to vector<2x8x128xf32>
    %28 = vector.extract_strided_slice %23 {offsets = [0, 256], sizes = [16, 128], strides = [1, 1]} : vector<16x384xf32> to vector<16x128xf32>
    %29 = vector.shape_cast %28 : vector<16x128xf32> to vector<2x8x128xf32>
    %30 = vector.extract_strided_slice %25 {offsets = [0, 0, 0], sizes = [2, 8, 32], strides = [1, 1, 1]} : vector<2x8x128xf32> to vector<2x8x32xf32>
    %31 = vector.extract_strided_slice %27 {offsets = [0, 0, 0], sizes = [2, 8, 32], strides = [1, 1, 1]} : vector<2x8x128xf32> to vector<2x8x32xf32>
    %32 = vector.extract_strided_slice %29 {offsets = [0, 0, 0], sizes = [2, 8, 32], strides = [1, 1, 1]} : vector<2x8x128xf32> to vector<2x8x32xf32>
    "tpu.trace_start"() <{level = 10 : i32, message = "bqd,bkd->bqk"}> : () -> ()
    %cst_20 = arith.constant dense<0.000000e+00> : vector<2x8x8xf32>
    %33 = tpu.matmul %30, %31, %cst_20 {dimension_numbers = #tpu.dot_dimension_numbers<[2], [2], [1], [1], [0, 0, 0, 1, 1, 1], [0], [0]>} : vector<2x8x32xf32>, vector<2x8x32xf32>, vector<2x8x8xf32> -> vector<2x8x8xf32>
    "tpu.trace_stop"() : () -> ()
    %cst_21 = arith.constant dense<0xFF800000> : vector<2x8xf32>
    %34 = vector.multi_reduction <maximumf>, %33, %cst_21 [2] : vector<2x8x8xf32> to vector<2x8xf32>
    %35 = vector.shape_cast %34 : vector<2x8xf32> to vector<2x8x1xf32>
    %36 = vector.broadcast %35 : vector<2x8x1xf32> to vector<2x8x8xf32>
    %37 = arith.subf %33, %36 : vector<2x8x8xf32>
    %38 = math.exp %37 : vector<2x8x8xf32>
    %cst_22 = arith.constant dense<0.000000e+00> : vector<2x8xf32>
    %39 = vector.multi_reduction <add>, %38, %cst_22 [2] : vector<2x8x8xf32> to vector<2x8xf32>
    %40 = vector.shape_cast %39 : vector<2x8xf32> to vector<2x8x1xf32>
    %41 = tpu.reciprocal %40 {approx = true} : vector<2x8x1xf32> -> vector<2x8x1xf32>
    %42 = vector.broadcast %41 : vector<2x8x1xf32> to vector<2x8x8xf32>
    %43 = arith.mulf %38, %42 : vector<2x8x8xf32>
    "tpu.trace_start"() <{level = 10 : i32, message = "bqk,bkd->bqd"}> : () -> ()
    %cst_23 = arith.constant dense<0.000000e+00> : vector<2x8x32xf32>
    %44 = tpu.matmul %43, %32, %cst_23 {dimension_numbers = #tpu.dot_dimension_numbers<[2], [1], [1], [2], [0, 0, 0, 1, 1, 2], [0], [0]>} : vector<2x8x8xf32>, vector<2x8x32xf32>, vector<2x8x32xf32> -> vector<2x8x32xf32>
    "tpu.trace_stop"() : () -> ()
    %45 = vector.shape_cast %44 : vector<2x8x32xf32> to vector<16x32xf32>
    %46 = vector.extract_strided_slice %25 {offsets = [0, 0, 32], sizes = [2, 8, 32], strides = [1, 1, 1]} : vector<2x8x128xf32> to vector<2x8x32xf32>
    %47 = vector.extract_strided_slice %27 {offsets = [0, 0, 32], sizes = [2, 8, 32], strides = [1, 1, 1]} : vector<2x8x128xf32> to vector<2x8x32xf32>
    %48 = vector.extract_strided_slice %29 {offsets = [0, 0, 32], sizes = [2, 8, 32], strides = [1, 1, 1]} : vector<2x8x128xf32> to vector<2x8x32xf32>
    "tpu.trace_start"() <{level = 10 : i32, message = "bqd,bkd->bqk"}> : () -> ()
    %cst_24 = arith.constant dense<0.000000e+00> : vector<2x8x8xf32>
    %49 = tpu.matmul %46, %47, %cst_24 {dimension_numbers = #tpu.dot_dimension_numbers<[2], [2], [1], [1], [0, 0, 0, 1, 1, 1], [0], [0]>} : vector<2x8x32xf32>, vector<2x8x32xf32>, vector<2x8x8xf32> -> vector<2x8x8xf32>
    "tpu.trace_stop"() : () -> ()
    %cst_25 = arith.constant dense<0xFF800000> : vector<2x8xf32>
    %50 = vector.multi_reduction <maximumf>, %49, %cst_25 [2] : vector<2x8x8xf32> to vector<2x8xf32>
    %51 = vector.shape_cast %50 : vector<2x8xf32> to vector<2x8x1xf32>
    %52 = vector.broadcast %51 : vector<2x8x1xf32> to vector<2x8x8xf32>
    %53 = arith.subf %49, %52 : vector<2x8x8xf32>
    %54 = math.exp %53 : vector<2x8x8xf32>
    %cst_26 = arith.constant dense<0.000000e+00> : vector<2x8xf32>
    %55 = vector.multi_reduction <add>, %54, %cst_26 [2] : vector<2x8x8xf32> to vector<2x8xf32>
    %56 = vector.shape_cast %55 : vector<2x8xf32> to vector<2x8x1xf32>
    %57 = tpu.reciprocal %56 {approx = true} : vector<2x8x1xf32> -> vector<2x8x1xf32>
    %58 = vector.broadcast %57 : vector<2x8x1xf32> to vector<2x8x8xf32>
    %59 = arith.mulf %54, %58 : vector<2x8x8xf32>
    "tpu.trace_start"() <{level = 10 : i32, message = "bqk,bkd->bqd"}> : () -> ()
    %cst_27 = arith.constant dense<0.000000e+00> : vector<2x8x32xf32>
    %60 = tpu.matmul %59, %48, %cst_27 {dimension_numbers = #tpu.dot_dimension_numbers<[2], [1], [1], [2], [0, 0, 0, 1, 1, 2], [0], [0]>} : vector<2x8x8xf32>, vector<2x8x32xf32>, vector<2x8x32xf32> -> vector<2x8x32xf32>
    "tpu.trace_stop"() : () -> ()
    %61 = vector.shape_cast %60 : vector<2x8x32xf32> to vector<16x32xf32>
    %62 = vector.extract_strided_slice %25 {offsets = [0, 0, 64], sizes = [2, 8, 32], strides = [1, 1, 1]} : vector<2x8x128xf32> to vector<2x8x32xf32>
    %63 = vector.extract_strided_slice %27 {offsets = [0, 0, 64], sizes = [2, 8, 32], strides = [1, 1, 1]} : vector<2x8x128xf32> to vector<2x8x32xf32>
    %64 = vector.extract_strided_slice %29 {offsets = [0, 0, 64], sizes = [2, 8, 32], strides = [1, 1, 1]} : vector<2x8x128xf32> to vector<2x8x32xf32>
    "tpu.trace_start"() <{level = 10 : i32, message = "bqd,bkd->bqk"}> : () -> ()
    %cst_28 = arith.constant dense<0.000000e+00> : vector<2x8x8xf32>
    %65 = tpu.matmul %62, %63, %cst_28 {dimension_numbers = #tpu.dot_dimension_numbers<[2], [2], [1], [1], [0, 0, 0, 1, 1, 1], [0], [0]>} : vector<2x8x32xf32>, vector<2x8x32xf32>, vector<2x8x8xf32> -> vector<2x8x8xf32>
    "tpu.trace_stop"() : () -> ()
    %cst_29 = arith.constant dense<0xFF800000> : vector<2x8xf32>
    %66 = vector.multi_reduction <maximumf>, %65, %cst_29 [2] : vector<2x8x8xf32> to vector<2x8xf32>
    %67 = vector.shape_cast %66 : vector<2x8xf32> to vector<2x8x1xf32>
    %68 = vector.broadcast %67 : vector<2x8x1xf32> to vector<2x8x8xf32>
    %69 = arith.subf %65, %68 : vector<2x8x8xf32>
    %70 = math.exp %69 : vector<2x8x8xf32>
    %cst_30 = arith.constant dense<0.000000e+00> : vector<2x8xf32>
    %71 = vector.multi_reduction <add>, %70, %cst_30 [2] : vector<2x8x8xf32> to vector<2x8xf32>
    %72 = vector.shape_cast %71 : vector<2x8xf32> to vector<2x8x1xf32>
    %73 = tpu.reciprocal %72 {approx = true} : vector<2x8x1xf32> -> vector<2x8x1xf32>
    %74 = vector.broadcast %73 : vector<2x8x1xf32> to vector<2x8x8xf32>
    %75 = arith.mulf %70, %74 : vector<2x8x8xf32>
    "tpu.trace_start"() <{level = 10 : i32, message = "bqk,bkd->bqd"}> : () -> ()
    %cst_31 = arith.constant dense<0.000000e+00> : vector<2x8x32xf32>
    %76 = tpu.matmul %75, %64, %cst_31 {dimension_numbers = #tpu.dot_dimension_numbers<[2], [1], [1], [2], [0, 0, 0, 1, 1, 2], [0], [0]>} : vector<2x8x8xf32>, vector<2x8x32xf32>, vector<2x8x32xf32> -> vector<2x8x32xf32>
    "tpu.trace_stop"() : () -> ()
    %77 = vector.shape_cast %76 : vector<2x8x32xf32> to vector<16x32xf32>
    %78 = vector.extract_strided_slice %25 {offsets = [0, 0, 96], sizes = [2, 8, 32], strides = [1, 1, 1]} : vector<2x8x128xf32> to vector<2x8x32xf32>
    %79 = vector.extract_strided_slice %27 {offsets = [0, 0, 96], sizes = [2, 8, 32], strides = [1, 1, 1]} : vector<2x8x128xf32> to vector<2x8x32xf32>
    %80 = vector.extract_strided_slice %29 {offsets = [0, 0, 96], sizes = [2, 8, 32], strides = [1, 1, 1]} : vector<2x8x128xf32> to vector<2x8x32xf32>
    "tpu.trace_start"() <{level = 10 : i32, message = "bqd,bkd->bqk"}> : () -> ()
    %cst_32 = arith.constant dense<0.000000e+00> : vector<2x8x8xf32>
    %81 = tpu.matmul %78, %79, %cst_32 {dimension_numbers = #tpu.dot_dimension_numbers<[2], [2], [1], [1], [0, 0, 0, 1, 1, 1], [0], [0]>} : vector<2x8x32xf32>, vector<2x8x32xf32>, vector<2x8x8xf32> -> vector<2x8x8xf32>
    "tpu.trace_stop"() : () -> ()
    %cst_33 = arith.constant dense<0xFF800000> : vector<2x8xf32>
    %82 = vector.multi_reduction <maximumf>, %81, %cst_33 [2] : vector<2x8x8xf32> to vector<2x8xf32>
    %83 = vector.shape_cast %82 : vector<2x8xf32> to vector<2x8x1xf32>
    %84 = vector.broadcast %83 : vector<2x8x1xf32> to vector<2x8x8xf32>
    %85 = arith.subf %81, %84 : vector<2x8x8xf32>
    %86 = math.exp %85 : vector<2x8x8xf32>
    %cst_34 = arith.constant dense<0.000000e+00> : vector<2x8xf32>
    %87 = vector.multi_reduction <add>, %86, %cst_34 [2] : vector<2x8x8xf32> to vector<2x8xf32>
    %88 = vector.shape_cast %87 : vector<2x8xf32> to vector<2x8x1xf32>
    %89 = tpu.reciprocal %88 {approx = true} : vector<2x8x1xf32> -> vector<2x8x1xf32>
    %90 = vector.broadcast %89 : vector<2x8x1xf32> to vector<2x8x8xf32>
    %91 = arith.mulf %86, %90 : vector<2x8x8xf32>
    "tpu.trace_start"() <{level = 10 : i32, message = "bqk,bkd->bqd"}> : () -> ()
    %cst_35 = arith.constant dense<0.000000e+00> : vector<2x8x32xf32>
    %92 = tpu.matmul %91, %80, %cst_35 {dimension_numbers = #tpu.dot_dimension_numbers<[2], [1], [1], [2], [0, 0, 0, 1, 1, 2], [0], [0]>} : vector<2x8x8xf32>, vector<2x8x32xf32>, vector<2x8x32xf32> -> vector<2x8x32xf32>
    "tpu.trace_stop"() : () -> ()
    %93 = vector.shape_cast %92 : vector<2x8x32xf32> to vector<16x32xf32>
    %94 = tpu.concatenate %45, %61, %77, %93 in 1 : vector<16x32xf32>, vector<16x32xf32>, vector<16x32xf32>, vector<16x32xf32> -> vector<16x128xf32>
    %95 = arith.truncf %94 : vector<16x128xf32> to vector<16x128xbf16>
    %c0_36 = arith.constant 0 : index
    %c0_37 = arith.constant 0 : index
    %c384_38 = arith.constant 384 : index
    %96 = vector.load %arg3[%c0_36, %c0_37, %c384_38] : memref<1x128x2560xbf16, #tpu.memory_space<vmem>>, vector<1x128x128xbf16>
    %97 = vector.shape_cast %96 : vector<1x128x128xbf16> to vector<128x128xbf16>
    %cst_39 = arith.constant dense<0.000000e+00> : vector<16x128xf32>
    %98 = tpu.matmul %95, %97, %cst_39 {dimension_numbers = #tpu.dot_dimension_numbers<[1], [0], [0], [1], [0, 0, 1, 1], [], []>} : vector<16x128xbf16>, vector<128x128xbf16>, vector<16x128xf32> -> vector<16x128xf32>
    %99 = vector.broadcast %7 : vector<1x128xf32> to vector<16x128xf32>
    %100 = arith.addf %98, %99 : vector<16x128xf32>
    %101 = arith.addf %3, %100 : vector<16x128xf32>
    %cst_40 = arith.constant dense<0.000000e+00> : vector<16xf32>
    %102 = vector.multi_reduction <add>, %101, %cst_40 [1] : vector<16x128xf32> to vector<16xf32>
    %103 = vector.shape_cast %102 : vector<16xf32> to vector<16x1xf32>
    %cst_41 = arith.constant 1.280000e+02 : f32
    %104 = vector.broadcast %cst_41 : f32 to vector<16x1xf32>
    %105 = arith.divf %103, %104 : vector<16x1xf32>
    %106 = vector.broadcast %105 : vector<16x1xf32> to vector<16x128xf32>
    %107 = arith.subf %101, %106 : vector<16x128xf32>
    %108 = arith.mulf %107, %107 : vector<16x128xf32>
    %cst_42 = arith.constant dense<0.000000e+00> : vector<16xf32>
    %109 = vector.multi_reduction <add>, %108, %cst_42 [1] : vector<16x128xf32> to vector<16xf32>
    %110 = vector.shape_cast %109 : vector<16xf32> to vector<16x1xf32>
    %cst_43 = arith.constant 1.280000e+02 : f32
    %111 = vector.broadcast %cst_43 : f32 to vector<16x1xf32>
    %112 = arith.divf %110, %111 : vector<16x1xf32>
    %113 = vector.broadcast %105 : vector<16x1xf32> to vector<16x128xf32>
    %114 = arith.subf %101, %113 : vector<16x128xf32>
    %cst_44 = arith.constant 9.99999974E-6 : f32
    %115 = vector.broadcast %cst_44 : f32 to vector<16x1xf32>
    %116 = arith.addf %112, %115 : vector<16x1xf32>
    %117 = math.rsqrt %116 : vector<16x1xf32>
    %118 = vector.broadcast %117 : vector<16x1xf32> to vector<16x128xf32>
    %119 = arith.mulf %114, %118 : vector<16x128xf32>
    %120 = vector.broadcast %9 : vector<1x128xf32> to vector<16x128xf32>
    %121 = arith.mulf %119, %120 : vector<16x128xf32>
    %122 = vector.broadcast %11 : vector<1x128xf32> to vector<16x128xf32>
    %123 = arith.addf %121, %122 : vector<16x128xf32>
    %124 = arith.truncf %123 : vector<16x128xf32> to vector<16x128xbf16>
    %cst_45 = arith.constant 0.000000e+00 : f32
    %125 = vector.broadcast %cst_45 : f32 to vector<16x128xf32>
    %c0_46 = arith.constant 0 : index
    %c0_47 = arith.constant 0 : index
    %c512_48 = arith.constant 512 : index
    %126 = vector.load %arg3[%c0_46, %c0_47, %c512_48] : memref<1x128x2560xbf16, #tpu.memory_space<vmem>>, vector<1x128x1024xbf16>
    %127 = vector.shape_cast %126 : vector<1x128x1024xbf16> to vector<128x1024xbf16>
    %cst_49 = arith.constant dense<0.000000e+00> : vector<16x1024xf32>
    %128 = tpu.matmul %124, %127, %cst_49 {dimension_numbers = #tpu.dot_dimension_numbers<[1], [0], [0], [1], [0, 0, 1, 1], [], []>} : vector<16x128xbf16>, vector<128x1024xbf16>, vector<16x1024xf32> -> vector<16x1024xf32>
    %c0_50 = arith.constant 0 : index
    %c0_51 = arith.constant 0 : index
    %c768 = arith.constant 768 : index
    %129 = vector.load %arg5[%c0_50, %c0_51, %c768] : memref<1x1x3456xf32, #tpu.memory_space<vmem>>, vector<1x1x1024xf32>
    %130 = vector.shape_cast %129 : vector<1x1x1024xf32> to vector<1x1024xf32>
    %131 = vector.broadcast %130 : vector<1x1024xf32> to vector<16x1024xf32>
    %132 = arith.addf %128, %131 : vector<16x1024xf32>
    %cst_52 = arith.constant 0.000000e+00 : f32
    %133 = vector.broadcast %cst_52 : f32 to vector<16x1024xf32>
    %134 = arith.maximumf %132, %133 : vector<16x1024xf32>
    %135 = arith.truncf %134 : vector<16x1024xf32> to vector<16x1024xbf16>
    %c0_53 = arith.constant 0 : index
    %c0_54 = arith.constant 0 : index
    %c0_55 = arith.constant 0 : index
    %136 = vector.load %arg4[%c0_53, %c0_54, %c0_55] : memref<1x2048x128xbf16, #tpu.memory_space<vmem>>, vector<1x1024x128xbf16>
    %137 = vector.shape_cast %136 : vector<1x1024x128xbf16> to vector<1024x128xbf16>
    %cst_56 = arith.constant dense<0.000000e+00> : vector<16x128xf32>
    %138 = tpu.matmul %135, %137, %cst_56 {dimension_numbers = #tpu.dot_dimension_numbers<[1], [0], [0], [1], [0, 0, 1, 1], [], []>} : vector<16x1024xbf16>, vector<1024x128xbf16>, vector<16x128xf32> -> vector<16x128xf32>
    %139 = arith.addf %125, %138 : vector<16x128xf32>
    %c0_57 = arith.constant 0 : index
    %c0_58 = arith.constant 0 : index
    %c1536 = arith.constant 1536 : index
    %140 = vector.load %arg3[%c0_57, %c0_58, %c1536] : memref<1x128x2560xbf16, #tpu.memory_space<vmem>>, vector<1x128x1024xbf16>
    %141 = vector.shape_cast %140 : vector<1x128x1024xbf16> to vector<128x1024xbf16>
    %cst_59 = arith.constant dense<0.000000e+00> : vector<16x1024xf32>
    %142 = tpu.matmul %124, %141, %cst_59 {dimension_numbers = #tpu.dot_dimension_numbers<[1], [0], [0], [1], [0, 0, 1, 1], [], []>} : vector<16x128xbf16>, vector<128x1024xbf16>, vector<16x1024xf32> -> vector<16x1024xf32>
    %c0_60 = arith.constant 0 : index
    %c0_61 = arith.constant 0 : index
    %c1792 = arith.constant 1792 : index
    %143 = vector.load %arg5[%c0_60, %c0_61, %c1792] : memref<1x1x3456xf32, #tpu.memory_space<vmem>>, vector<1x1x1024xf32>
    %144 = vector.shape_cast %143 : vector<1x1x1024xf32> to vector<1x1024xf32>
    %145 = vector.broadcast %144 : vector<1x1024xf32> to vector<16x1024xf32>
    %146 = arith.addf %142, %145 : vector<16x1024xf32>
    %cst_62 = arith.constant 0.000000e+00 : f32
    %147 = vector.broadcast %cst_62 : f32 to vector<16x1024xf32>
    %148 = arith.maximumf %146, %147 : vector<16x1024xf32>
    %149 = arith.truncf %148 : vector<16x1024xf32> to vector<16x1024xbf16>
    %c0_63 = arith.constant 0 : index
    %c1024 = arith.constant 1024 : index
    %c0_64 = arith.constant 0 : index
    %150 = vector.load %arg4[%c0_63, %c1024, %c0_64] : memref<1x2048x128xbf16, #tpu.memory_space<vmem>>, vector<1x1024x128xbf16>
    %151 = vector.shape_cast %150 : vector<1x1024x128xbf16> to vector<1024x128xbf16>
    %cst_65 = arith.constant dense<0.000000e+00> : vector<16x128xf32>
    %152 = tpu.matmul %149, %151, %cst_65 {dimension_numbers = #tpu.dot_dimension_numbers<[1], [0], [0], [1], [0, 0, 1, 1], [], []>} : vector<16x1024xbf16>, vector<1024x128xbf16>, vector<16x128xf32> -> vector<16x128xf32>
    %153 = arith.addf %139, %152 : vector<16x128xf32>
    %154 = vector.broadcast %13 : vector<1x128xf32> to vector<16x128xf32>
    %155 = arith.addf %153, %154 : vector<16x128xf32>
    %156 = arith.addf %123, %155 : vector<16x128xf32>
    %cst_66 = arith.constant dense<0.000000e+00> : vector<16xf32>
    %157 = vector.multi_reduction <add>, %156, %cst_66 [1] : vector<16x128xf32> to vector<16xf32>
    %158 = vector.shape_cast %157 : vector<16xf32> to vector<16x1xf32>
    %cst_67 = arith.constant 1.280000e+02 : f32
    %159 = vector.broadcast %cst_67 : f32 to vector<16x1xf32>
    %160 = arith.divf %158, %159 : vector<16x1xf32>
    %161 = vector.broadcast %160 : vector<16x1xf32> to vector<16x128xf32>
    %162 = arith.subf %156, %161 : vector<16x128xf32>
    %163 = arith.mulf %162, %162 : vector<16x128xf32>
    %cst_68 = arith.constant dense<0.000000e+00> : vector<16xf32>
    %164 = vector.multi_reduction <add>, %163, %cst_68 [1] : vector<16x128xf32> to vector<16xf32>
    %165 = vector.shape_cast %164 : vector<16xf32> to vector<16x1xf32>
    %cst_69 = arith.constant 1.280000e+02 : f32
    %166 = vector.broadcast %cst_69 : f32 to vector<16x1xf32>
    %167 = arith.divf %165, %166 : vector<16x1xf32>
    %168 = vector.broadcast %160 : vector<16x1xf32> to vector<16x128xf32>
    %169 = arith.subf %156, %168 : vector<16x128xf32>
    %cst_70 = arith.constant 9.99999974E-6 : f32
    %170 = vector.broadcast %cst_70 : f32 to vector<16x1xf32>
    %171 = arith.addf %167, %170 : vector<16x1xf32>
    %172 = math.rsqrt %171 : vector<16x1xf32>
    %173 = vector.broadcast %172 : vector<16x1xf32> to vector<16x128xf32>
    %174 = arith.mulf %169, %173 : vector<16x128xf32>
    %175 = vector.broadcast %15 : vector<1x128xf32> to vector<16x128xf32>
    %176 = arith.mulf %174, %175 : vector<16x128xf32>
    %177 = vector.broadcast %17 : vector<1x128xf32> to vector<16x128xf32>
    %178 = arith.addf %176, %177 : vector<16x128xf32>
    %c0_71 = arith.constant 0 : index
    %c0_72 = arith.constant 0 : index
    %179 = vector.load %arg8[%c0_71, %c0_72] : memref<16x128xf32, #tpu.memory_space<vmem>>, vector<16x128xf32>
    tpu.vector_store %arg8[%c0_71, %c0_72], %178 {strides = array<i32>} : memref<16x128xf32, #tpu.memory_space<vmem>>, vector<16x128xf32>,
    %c1_i32 = arith.constant 1 : i32
    %180 = arith.cmpi eq, %arg0, %c1_i32 : i32
    %181 = arith.extui %180 : i1 to i32
    %c0_i32_73 = arith.constant 0 : i32
    %182 = arith.cmpi ne, %181, %c0_i32_73 : i32
    scf.if %182 {
      %c0_74 = arith.constant 0 : index
      %c0_75 = arith.constant 0 : index
      %c3200 = arith.constant 3200 : index
      %183 = vector.load %arg5[%c0_74, %c0_75, %c3200] : memref<1x1x3456xf32, #tpu.memory_space<vmem>>, vector<1x1x256xf32>
      %184 = vector.shape_cast %183 : vector<1x1x256xf32> to vector<1x256xf32>
      %185 = arith.truncf %178 : vector<16x128xf32> to vector<16x128xbf16>
      %c0_76 = arith.constant 0 : index
      %c0_77 = arith.constant 0 : index
      %186 = vector.load %arg6[%c0_76, %c0_77] : memref<128x256xbf16, #tpu.memory_space<vmem>>, vector<128x256xbf16>
      %cst_78 = arith.constant dense<0.000000e+00> : vector<16x256xf32>
      %187 = tpu.matmul %185, %186, %cst_78 {dimension_numbers = #tpu.dot_dimension_numbers<[1], [0], [0], [1], [0, 0, 1, 1], [], []>} : vector<16x128xbf16>, vector<128x256xbf16>, vector<16x256xf32> -> vector<16x256xf32>
      %188 = vector.broadcast %184 : vector<1x256xf32> to vector<16x256xf32>
      %189 = arith.addf %187, %188 : vector<16x256xf32>
      %c0_79 = arith.constant 0 : index
      %c0_80 = arith.constant 0 : index
      %190 = vector.load %arg7[%c0_79, %c0_80] : memref<16x256xf32, #tpu.memory_space<vmem>>, vector<16x256xf32>
      tpu.vector_store %arg7[%c0_79, %c0_80], %189 {strides = array<i32>} : memref<16x256xf32, #tpu.memory_space<vmem>>, vector<16x256xf32>,
    } else {
    }
    return
  }
  func.func @transform_0(%arg0: i32) -> (i32, i32) {
    %c0_i32 = arith.constant 0 : i32
    %c0_i32_0 = arith.constant 0 : i32
    %c0_i32_1 = arith.constant 0 : i32
    return %c0_i32, %c0_i32_0 : i32, i32
  }
  func.func @transform_1(%arg0: i32) -> (i32, i32) {
    %c0_i32 = arith.constant 0 : i32
    %c0_i32_0 = arith.constant 0 : i32
    %c0_i32_1 = arith.constant 0 : i32
    return %c0_i32, %c0_i32_0 : i32, i32
  }
  func.func @transform_2(%arg0: i32) -> (i32, i32, i32) {
    %c0_i32 = arith.constant 0 : i32
    %c0_i32_0 = arith.constant 0 : i32
    %c0_i32_1 = arith.constant 0 : i32
    return %arg0, %c0_i32, %c0_i32_0 : i32, i32, i32
  }
  func.func @transform_3(%arg0: i32) -> (i32, i32, i32) {
    %c0_i32 = arith.constant 0 : i32
    %c0_i32_0 = arith.constant 0 : i32
    %c0_i32_1 = arith.constant 0 : i32
    return %arg0, %c0_i32, %c0_i32_0 : i32, i32, i32
  }
  func.func @transform_4(%arg0: i32) -> (i32, i32, i32) {
    %c0_i32 = arith.constant 0 : i32
    %c0_i32_0 = arith.constant 0 : i32
    %c0_i32_1 = arith.constant 0 : i32
    return %arg0, %c0_i32, %c0_i32_0 : i32, i32, i32
  }
  func.func @transform_5(%arg0: i32) -> (i32, i32) {
    %c0_i32 = arith.constant 0 : i32
    %c0_i32_0 = arith.constant 0 : i32
    %c0_i32_1 = arith.constant 0 : i32
    return %c0_i32, %c0_i32_0 : i32, i32
  }
  func.func @transform_6(%arg0: i32) -> (i32, i32) {
    %c0_i32 = arith.constant 0 : i32
    %c0_i32_0 = arith.constant 0 : i32
    %c0_i32_1 = arith.constant 0 : i32
    return %c0_i32, %c0_i32_0 : i32, i32
  }
}

</mosaic_0001>

<bundles_post_ra>
// kernel: blt_forward.1
= control target key start
LH: loop header
LB: loop body
LE: loop exit
PB: predicated region body
PF: predicated region fallthrough
CT: control target
= control target key end

     0   :  { %s7729_s0 = inlined_call_operand.vmem [shape: s32[16,1], index: 0, kind: input, shape index: {}]   ;;  %s7730_s1 = inlined_call_operand.hbm [shape: bf16[256,128], index: 1, kind: input, shape index: {}]   ;;  %s7731_s2 = inlined_call_operand.hbm [shape: bf16[2,128,2560], index: 2, kind: input, shape index: {}]   ;;  %s7732_s3 = inlined_call_operand.hbm [shape: bf16[2,2048,128], index: 3, kind: input, shape index: {}]   ;;  %s7733_s4 = inlined_call_operand.hbm [shape: f32[2,1,3456], index: 4, kind: input, shape index: {}]   ;;  %s7734_s5 = inlined_call_operand.hbm [shape: bf16[128,256], index: 5, kind: input, shape index: {}]   ;;  %s7735_s6 = inlined_call_operand.hbm [shape: f32[16,256], index: 6, kind: output, shape index: {}]  }
   0x1   :  { %7747 = sst [smem:[#allocation19_spill]] %s7731_s2 }
   0x2   :  { %7748 = sst [smem:[#allocation20_spill]] %s7734_s5 }
   0x3   :  { %11 = vsyncpa [#allocation4], 0 }
   0x4   :  { %12 = vsyncpa [#allocation7], 0 }
   0x5   :  { %14 = vsyncpa [#allocation7 + $0x1], 0 }
   0x6   :  { %15 = vsyncpa [#allocation10], 0 }
   0x7   :  { %17 = vsyncpa [#allocation10 + $0x1], 0 }
   0x8   :  { %18 = vsyncpa [#allocation5], 0  ;;  %s6841_s21 = smov 0   ;;  %s6843_s22 = smov 0  }
   0x9   :  { %s6845_s23 = smov 0   ;;  %s6847_s24 = smov 0  }
   0xa LB: > { %s6860_s25 = sadd.s32 4294967295, %s6781_s24   ;;  %s6863_s26 = sadd.s32 1, %s6781_s24   ;;  %s6781_s24 = sphi %s6847_s24, %s7778_s24   ;;  %s6777_s23 = sphi %s6845_s23, %s7777_s23   ;;  %s6773_s22 = sphi %s6843_s22, %s7776_s22   ;;  %s6769_s21 = sphi %s6841_s21, %s7775_s21  }
   0xb   : > { %s70_s27 = ssub.s32 %s6781_s24, %s6863_s26  ;;  %s73_s28 = sadd.s32 1, %s6777_s23 }
   0xc   : > { %p71_p0 = scmp.eq.s32.totalorder %s70_s27, 0  ;;  %p80_p1 = scmp.ne.s32.totalorder %s6777_s23, %s6773_s22 }
   0xd   : > { %p81_p2 = scmp.eq.s32.totalorder %s6781_s24, 0  ;;  %p86_p3 = scmp.ne.s32.totalorder %s6773_s22, %s6769_s21 }
   0xe   : > { %s6873_s29 = scalar_select %p71_p0, %s6777_s23, %s73_s28  }
   0xf   : > { %p6875_p4 = por %p81_p2, %p80_p1  ;;  %p7736_p5 = scmp.eq.s32.totalorder %s6860_s25, 0 }
  0x10   : > { %7749 = sst [smem:[#allocation18_spill]] %s6873_s29  ;;  %p5259_p6 = scmp.ge.s32.totalorder %s6781_s24, 1 }
  0x11   : > { %s7750_s30 = scalar_select %p6875_p4, 1, 0 }
  0x12   : > { %p191_p7 = scmp.lt.s32.totalorder %s6781_s24, 3  ;;  %p6884_p8 = por %p7736_p5, %p86_p3 }
  0x13   : > { %s6783_s9 = smov [#allocation11]   ;;  %s7742_s12 = sand.u32 1, %s6781_s24  }
  0x14   : > { %s7751_s7 = scalar_select %p6884_p8, 1, 0 }
  0x15   : > { %p6889_p10 = pnand %p5259_p6, %p191_p7  ;;  %s219_s10 = sshll.u32 %s6783_s9, 4  ;;  %s220_s10 = int_to_ptr.vmem [resolvable:$true] %s219_s10 }
  0x16   : > { %s6904_s13 = sand.u32 1, %s6777_s23   ;;  %s7754_s5 = sld [smem:[#allocation20_spill]] }
  0x17   : > { %s7752_s8 = scalar_select %p6889_p10, 1, 0 }
  0x18   : > { %p6025_p11 = pneg %p6889_p10 }
  0x1a   : > { %p6897_p12 = pnand %p6025_p11, %p7736_p5 }
  0x1c   : > { %s7753_s11 = scalar_select %p6897_p12, 1, 0 }
  0x1d   : > { %s6559_s16 = scalar_lea.hbm %s7754_s5, 2048  ;;  %p7739_p1 = pneg %p6897_p12 }
  0x1e   : > { %p6560_p0 = scmp.ne.s32.totalorder %s7754_s5, %s6559_s16  ;;  %p6566_p6 = scmp.lt.u32.totalorder %s6559_s16, %s7754_s5 }
  0x20   : > { %p6562_p2 = pnand %p7739_p1, %p6560_p0 }
  0x22   : > { %p6563_p3 = pneg %p6562_p2 }
  0x24   : > { %p6568_p7 = pnand %p6566_p6, %p6563_p3 }
  0x26   : > { %6571 = shalt.err (!%p6568_p7)
}
  0x27   : > { %s6572_s21 = scalar_lea.vmem %s220_s10, 2048  ;;  %p6580_p13 = scmp.lt.s32.totalorder %s220_s10, %s220_s10 }
  0x28   : > { %p6573_p11 = scmp.ne.s32.totalorder %s220_s10, %s6572_s21  ;;  %p6581_p8 = scmp.lt.s32.totalorder %s6572_s21, %s6572_s21 }
  0x2a   : > { %p6575_p9 = pnand %p6573_p11, %p7739_p1  ;;  %p6582_p10 = por %p6581_p8, %p6580_p13 }
  0x2c   : > { %p6576_p5 = pneg %p6575_p9 }
  0x2e   : > { %p6583_p4 = pnand %p6582_p10, %p6576_p5 }
  0x30   : > { %6586 = shalt.err (!%p6583_p4)
}
  0x31   : > { %s6784_s27 = smov 128   ;;  %s6785_s28 = smov 8  }
  0x32   : > { %6031 = dma.hbm_to_vmem [thread:$0]  (!%p6897_p12), %s7754_s5, 2048, %s220_s10, [#allocation10], %s6784_s27, %s6784_s27, %s6785_s28  }
  0x33   : > { %s6001_s15 = smul.u32 1280, %s6904_s13  ;;  %p7755_p9 = scmp.ne.s32.totalorder %s7750_s30, 0 }
  0x34   : > { %p7756_p0 = scmp.lt.s32.totalorder %s6781_s24, 2  ;;  %s6002_s17 = smul.u32 20480, %s6781_s24 }
  0x35   : > { %s7758_s2 = sld [smem:[#allocation19_spill]]  ;;  %s237_s21 = scalar_lea.vmem [#allocation6], %s6001_s15 }
  0x36   : > { %p6933_p2 = pnand %p7756_p0, %p7755_p9  ;;  %s244_s10 = sshll.u32 %s237_s21, 4  ;;  %s6943_s10 = int_to_ptr.vmem [resolvable:$true] %s244_s10 }
  0x37   : > { %s6947_s30 = scalar_lea.sflag [#allocation7], %s7742_s12 }
  0x38   : > { %s7757_s16 = scalar_select %p6933_p2, 1, 0 }
  0x39   : > { %p6953_p5 = pneg %p6933_p2 }
  0x3b   : > { %s6941_s20 = scalar_lea.hbm %s7758_s2, %s6002_s17  ;;  %s6592_s15 = scalar_lea.hbm %s7758_s2, 40960 }
  0x3c   : > { %s6587_s27 = scalar_lea.hbm %s6941_s20, 20480  ;;  %p6593_p13 = scmp.lt.u32.totalorder %s6941_s20, %s7758_s2 }
  0x3d   : > { %p6588_p4 = scmp.ne.s32.totalorder %s6941_s20, %s6587_s27  ;;  %p6594_p3 = scmp.lt.u32.totalorder %s6592_s15, %s6587_s27 }
  0x3e   : > { %s7759_s28 = scalar_select %p6953_p5, 1, 0 }
  0x3f   : > { %p6590_p8 = pnand %p6953_p5, %p6588_p4  ;;  %p6595_p6 = por %p6594_p3, %p6593_p13 }
  0x40   : > { %p6596_p7 = scmp.lt.u32.totalorder %s6587_s27, %s6941_s20 }
  0x41   : > { %p6591_p10 = pneg %p6590_p8 }
  0x42   : > { %p6597_p11 = por %p6596_p7, %p6595_p6 }
  0x44   : > { %p6598_p9 = pnand %p6597_p11, %p6591_p10 }
  0x46   : > { %6601 = shalt.err (!%p6598_p9)
}
  0x47   : > { %s6602_s19 = scalar_lea.vmem %s6943_s10, 20480  ;;  %s6786_s21 = smov [#allocation6]  }
  0x48   : > { %p6603_p0 = scmp.ne.s32.totalorder %s6943_s10, %s6602_s19  ;;  %s6607_s9 = sshll.u32 %s6786_s21, 4  ;;  %s6608_s9 = int_to_ptr.vmem [resolvable:$false] %s6607_s9 }
  0x49   : > { %s6609_s14 = scalar_lea.vmem %s6608_s9, 40960  ;;  %p6610_p1 = scmp.lt.s32.totalorder %s6943_s10, %s6608_s9 }
  0x4a   : > { %p6605_p4 = pnand %p6603_p0, %p6953_p5  ;;  %p6611_p12 = scmp.lt.s32.totalorder %s6609_s14, %s6602_s19 }
  0x4c   : > { %p6606_p8 = pneg %p6605_p4  ;;  %p6612_p13 = por %p6611_p12, %p6610_p1 }
  0x4e   : > { %p6613_p3 = pnand %p6612_p13, %p6606_p8 }
  0x50   : > { %6616 = shalt.err (!%p6613_p3)
}
  0x51   : > { %s6787_s27 = smov 1280   ;;  %s6788_s15 = smov 80  }
  0x52   : > { %6035 = dma.hbm_to_vmem [thread:$0]  (!%p6933_p2), %s6941_s20, 20480, %s6943_s10, %s6947_s30, %s6787_s27, %s6787_s27, %s6788_s15  }
  0x53   : > { %s6789_s17 = smov [#allocation3]   ;;  %s5264_s21 = sshll.u32 %s6904_s13, 10 }
  0x54   : > { %s206_s18 = sshll.u32 %s6789_s17, 4  ;;  %s6617_s19 = scalar_lea.hbm %s7730_s1, 2048  ;;  %s207_s18 = int_to_ptr.vmem [resolvable:$true] %s206_s18 }
  0x55   : > { %p6618_p12 = scmp.ne.s32.totalorder %s7730_s1, %s6617_s19  ;;  %p7760_p1 = scmp.ne.s32.totalorder %s7753_s11, 0 }
  0x56   : > { %p6624_p11 = scmp.lt.u32.totalorder %s6617_s19, %s7730_s1 }
  0x57   : > { %p7761_p10 = pneg %p7760_p1 }
  0x59   : > { %p6620_p6 = pnand %p6618_p12, %p7761_p10 }
  0x5b   : > { %p6621_p7 = pneg %p6620_p6 }
  0x5d   : > { %p6626_p9 = pnand %p6624_p11, %p6621_p7 }
  0x5f   : > { %6629 = shalt.err (!%p6626_p9)
}
  0x60   : > { %s6630_s20 = scalar_lea.vmem %s207_s18, 2048  ;;  %p7762_p4 = pmov %p7761_p10 }
  0x61   : > { %p6631_p0 = scmp.ne.s32.totalorder %s207_s18, %s6630_s20  ;;  %p6638_p3 = scmp.lt.s32.totalorder %s207_s18, %s207_s18 }
  0x62   : > { %p6639_p2 = scmp.lt.s32.totalorder %s6630_s20, %s6630_s20 }
  0x63   : > { %p6633_p8 = pnand %p6631_p0, %p7762_p4 }
  0x64   : > { %p6640_p5 = por %p6639_p2, %p6638_p3 }
  0x65   : > { %p6634_p13 = pneg %p6633_p8 }
  0x67   : > { %p6641_p10 = pnand %p6640_p5, %p6634_p13 }
  0x69   : > { %6644 = shalt.err (!%p6641_p10)
}
  0x6a   : > { %s6790_s2 = smov 64   ;;  %s6791_s5 = smov 4  }
  0x6b   : > { %6028 = dma.hbm_to_vmem [thread:$0]  (!%p7760_p1), %s7730_s1, 2048, %s207_s18, [#allocation4], %s6790_s2, %s6790_s2, %s6791_s5  }
  0x6c   : > { %s5632_s10 = sshll.u32 %s6781_s24, 14  ;;  %s258_s9 = scalar_lea.vmem [#allocation8], %s5264_s21 }
  0x6d   : > { %s7005_s17 = scalar_lea.hbm %s7732_s3, %s5632_s10  ;;  %s265_s19 = sshll.u32 %s258_s9, 4  ;;  %s7007_s19 = int_to_ptr.vmem [resolvable:$true] %s265_s19 }
  0x6e   : > { %s6645_s11 = scalar_lea.hbm %s7005_s17, 16384  ;;  %p7763_p5 = scmp.ne.s32.totalorder %s7759_s28, 0 }
  0x6f   : > { %p6646_p2 = scmp.ne.s32.totalorder %s7005_s17, %s6645_s11  ;;  %s6650_s20 = scalar_lea.hbm %s7732_s3, 32768 }
  0x70   : > { %p6651_p1 = scmp.lt.u32.totalorder %s7005_s17, %s7732_s3  ;;  %p6652_p7 = scmp.lt.u32.totalorder %s6650_s20, %s6645_s11 }
  0x71   : > { %p6648_p12 = pnand %p6646_p2, %p7763_p5  ;;  %p6654_p9 = scmp.lt.u32.totalorder %s6645_s11, %s7005_s17 }
  0x72   : > { %p6653_p11 = por %p6652_p7, %p6651_p1 }
  0x73   : > { %p6649_p6 = pneg %p6648_p12 }
  0x74   : > { %p6655_p0 = por %p6654_p9, %p6653_p11 }
  0x76   : > { %p6656_p4 = pnand %p6655_p0, %p6649_p6 }
  0x78   : > { %6659 = shalt.err (!%p6656_p4)
}
  0x79   : > { %s6660_s21 = scalar_lea.vmem %s7007_s19, 16384  ;;  %s6792_s10 = smov [#allocation8]  }
  0x7a   : > { %p6661_p8 = scmp.ne.s32.totalorder %s7007_s19, %s6660_s21  ;;  %s6665_s27 = sshll.u32 %s6792_s10, 4  ;;  %s6666_s27 = int_to_ptr.vmem [resolvable:$false] %s6665_s27 }
  0x7b   : > { %s6667_s15 = scalar_lea.vmem %s6666_s27, 32768  ;;  %p6668_p10 = scmp.lt.s32.totalorder %s7007_s19, %s6666_s27 }
  0x7c   : > { %p6663_p13 = pnand %p6661_p8, %p7763_p5  ;;  %p6669_p2 = scmp.lt.s32.totalorder %s6667_s15, %s6660_s21 }
  0x7e   : > { %p6664_p3 = pneg %p6663_p13  ;;  %p6670_p12 = por %p6669_p2, %p6668_p10 }
  0x80   : > { %p6671_p1 = pnand %p6670_p12, %p6664_p3 }
  0x82   : > { %6674 = shalt.err (!%p6671_p1)
}
  0x83   : > { %p7764_p6 = scmp.ne.s32.totalorder %s7757_s16, 0  ;;  %s6003_s9 = smul.u32 27, %s6904_s13 }
  0x84   : > { %s6004_s11 = smul.u32 432, %s6781_s24  ;;  %s7765_s21 = sand.u32 1, %s6781_s24  }
  0x85   : > { %6038 = dma.hbm_to_vmem [thread:$0]  (!%p7764_p6), %s7005_s17, 16384, %s7007_s19, %s6947_s30, %s6790_s2, %s6790_s2, %s6791_s5  }
  0x86   : > { %s7039_s20 = scalar_lea.hbm %s7733_s4, %s6004_s11  ;;  %s279_s29 = scalar_lea.vmem [#allocation9], %s6003_s9 }
  0x87   : > { %s287_s12 = sshll.u32 %s279_s29, 4  ;;  %s276_s10 = scalar_lea.sflag [#allocation10], %s7765_s21  ;;  %s288_s12 = int_to_ptr.vmem [resolvable:$true] %s287_s12 }
  0x88   : > { %s6675_s27 = scalar_lea.hbm %s7039_s20, 432  ;;  %s6680_s2 = scalar_lea.hbm %s7733_s4, 864 }
  0x89   : > { %p6676_p7 = scmp.ne.s32.totalorder %s7039_s20, %s6675_s27  ;;  %p6681_p0 = scmp.lt.u32.totalorder %s7039_s20, %s7733_s4 }
  0x8a   : > { %p6682_p4 = scmp.lt.u32.totalorder %s6680_s2, %s6675_s27  ;;  %p6684_p13 = scmp.lt.u32.totalorder %s6675_s27, %s7039_s20 }
  0x8b   : > { %p6678_p11 = pnand %p6676_p7, %p7763_p5 }
  0x8c   : > { %p6683_p8 = por %p6682_p4, %p6681_p0 }
  0x8d   : > { %p6679_p9 = pneg %p6678_p11 }
  0x8e   : > { %p6685_p3 = por %p6684_p13, %p6683_p8 }
  0x90   : > { %p6686_p10 = pnand %p6685_p3, %p6679_p9 }
  0x92   : > { %6689 = shalt.err (!%p6686_p10)
}
  0x93   : > { %s6690_s24 = scalar_lea.vmem %s288_s12, 432  ;;  %s6793_s19 = smov [#allocation9]  }
  0x94   : > { %p6691_p2 = scmp.ne.s32.totalorder %s288_s12, %s6690_s24  ;;  %s6695_s15 = sshll.u32 %s6793_s19, 4  ;;  %s6696_s15 = int_to_ptr.vmem [resolvable:$false] %s6695_s15 }
  0x95   : > { %s6697_s9 = scalar_lea.vmem %s6696_s15, 864  ;;  %p6698_p7 = scmp.lt.s32.totalorder %s288_s12, %s6696_s15 }
  0x96   : > { %p6693_p12 = pnand %p6691_p2, %p7763_p5  ;;  %p6699_p11 = scmp.lt.s32.totalorder %s6697_s9, %s6690_s24 }
  0x98   : > { %p6694_p1 = pneg %p6693_p12  ;;  %p6700_p6 = por %p6699_p11, %p6698_p7 }
  0x9a   : > { %p6701_p0 = pnand %p6700_p6, %p6694_p1 }
  0x9c   : > { %6704 = shalt.err (!%p6701_p0)
}
  0x9d   : > { %p7766_p4 = scmp.ne.s32.totalorder %s7757_s16, 0  ;;  %p7767_p9 = scmp.ne.s32.totalorder %s7752_s8, 0 }
  0x9e   : > { %p7768_p8 = scmp.eq.s32.totalorder (!%p7767_p9), %s6860_s25, 0 }
  0x9f   : > { %6041 = dma.hbm_to_vmem [thread:$0]  (!%p7766_p4), %s7039_s20, 432, %s288_s12, %s276_s10  }
  0xa0   : > { %296 = sbr.rel (%p7767_p9) target bundleno = 5036 (0x13ac), region = 44 }
  0xa7   : > { %6748 = dma.done.wait (%p7768_p8), [#allocation4], 2048   ;;  %p7769_p5 = pmov %p7768_p8 }
  0xa8   : > { %s302_s28 = sand.u32 1, %s6860_s25   ;;  %s304_s11 = sand.u32 1, %s6773_s22  }
  0xa9   : > { %6750 = vsyncadd (%p7769_p5), [#allocation4], 4294965248  ;;  %s6005_s18 = smul.u32 1280, %s304_s11  ;;  %s303_s14 = scalar_lea.sflag [#allocation7], %s302_s28 }
  0xaa   : > { %p7770_p6 = scmp.ne.s32.totalorder %s7751_s7, 0 }
  0xab   : > { %s7068_s29 = scalar_lea.vmem [#allocation6], %s6005_s18 }
  0xac   : > { %6752 = dma.done.wait (%p7770_p6), %s303_s14, 36864  }
  0xad   : > { %6754 = vsyncadd (%p7770_p6), %s303_s14, 4294930432  ;;  %s5270_s8 = sshll.u32 %s304_s11, 10  ;;  %s6006_s16 = smul.u32 27, %s304_s11 }
  0xae   : > { %s7074_s20 = scalar_lea.vmem [#allocation8], %s5270_s8  ;;  %s321_s12 = scalar_lea.sflag [#allocation10], %s302_s28 }
  0xaf   : > { %s7076_s21 = scalar_lea.vmem [#allocation9], %s6006_s16 }
  0xb0   : > { %6756 = dma.done.wait (%p7770_p6), %s321_s12, 432  }
  0xb1   : > { %6758 = vsyncadd (%p7770_p6), %s321_s12, 4294966864  ;;  %p7771_p13 = pmov %p7769_p5 }
  0xb2   : > { %p7772_p3 = pmov %p7769_p5 }
  0xb3   : > { %6760 = dma.done.wait (%p7771_p13), [#allocation10], 2048  }
  0xb4   : > { %6762 = vsyncadd (%p7772_p3), [#allocation10], 4294965248  ;;  %p7773_p10 = scmp.ne.s32.totalorder %s6860_s25, 0 }
  0xb5   : > { %v367_v0 = vld [vmem:[%s7729_s0] sm:$0xff] (!%p7773_p10)  ;;  %v6794_v1 = vmov (!%p7773_p10), 0   ;;  %v368_v2 = vld [vmem:[%s7729_s0 + $0x8] sm:$0xff] (!%p7773_p10)  ;;  %v6106_v7 = vld [vmem:[#allocation3 + $0x50] sm:$0xff] (!%p7773_p10)   ;;  %v369_v19 = vlaneseq (!%p7773_p10)  ;;  %v6795_v24 = vmov (!%p7773_p10), 1.0|1.0  }
  0xb6   : > { %366 = sbr.rel (%p7773_p10) target bundleno = 537 (0x219), region = 68  ;;  %6101 = vset.pattern.permute.xlu0 (!%p7773_p10), %v6794_v1  ;;  %v6102_v3 = vld [vmem:[#allocation3 + $0x40] sm:$0xff] (!%p7773_p10)   ;;  %v6104_v5 = vld [vmem:[#allocation3 + $0x48] sm:$0xff] (!%p7773_p10)   ;;  %v6107_v8 = vld [vmem:[#allocation3 + $0x10] sm:$0xff] (!%p7773_p10)  }
  0xb7   : > { %373 = vperm.xlu0 (!%p7773_p10), %6101, %v367_v0   ;;  %v6103_v4 = vld [vmem:[#allocation3] sm:$0xff] (!%p7773_p10)   ;;  %5633 = vmatprep.subr.bf16.mxu0 (!%p7773_p10), %v6102_v3  ;;  %v6105_v6 = vld [vmem:[#allocation3 + $0x8] sm:$0xff] (!%p7773_p10)   ;;  %v6108_v9 = vld [vmem:[#allocation3 + $0x58] sm:$0xff] (!%p7773_p10)   ;;  %v370_v20 = vand.u32 (!%p7773_p10), 127, %v369_v19 }
  0xb8   : > { %5634 = vmatpush3.bf16.msra.mxu0 (!%p7773_p10), %v6103_v4  ;;  %v6109_v10 = vld [vmem:[#allocation3 + $0x18] sm:$0xff] (!%p7773_p10)   ;;  %v6110_v11 = vld [vmem:[#allocation3 + $0x60] sm:$0xff] (!%p7773_p10)   ;;  %v6112_v13 = vld [vmem:[#allocation3 + $0x68] sm:$0xff] (!%p7773_p10)  }
  0xb9   : > { %5635 = vmatprep.subr.bf16.mxu0 (!%p7773_p10), %v6104_v5  ;;  %v6111_v12 = vld [vmem:[#allocation3 + $0x20] sm:$0xff] (!%p7773_p10)   ;;  %v6113_v14 = vld [vmem:[#allocation3 + $0x28] sm:$0xff] (!%p7773_p10)   ;;  %v6114_v15 = vld [vmem:[#allocation3 + $0x70] sm:$0xff] (!%p7773_p10)   ;;  %v371_v22 = vadd.s32 (!%p7773_p10), 128, %v370_v20 }
  0xba   : > { %v6115_v16 = vld [vmem:[#allocation3 + $0x30] sm:$0xff] (!%p7773_p10)   ;;  %v6116_v17 = vld [vmem:[#allocation3 + $0x78] sm:$0xff] (!%p7773_p10)  }
  0xbb   : > { %376 = vperm.xlu0 (!%p7773_p10), %6101, %v368_v2   ;;  %v6117_v18 = vld [vmem:[#allocation3 + $0x38] sm:$0xff] (!%p7773_p10)  }
  0xbc   : > { %5636 = vmatpush3.bf16.msra.mxu0 (!%p7773_p10), %v6105_v6 }
  0xbd   : > { %5637 = vmatprep.subr.bf16.mxu0 %v6106_v7 }
  0xc0   : > { %5638 = vmatpush3.bf16.msra.mxu0 %v6107_v8 }
  0xc1   : > { %5639 = vmatprep.subr.bf16.mxu0 %v6108_v9 }
  0xc4   : > { %5640 = vmatpush3.bf16.msra.mxu0 %v6109_v10 }
  0xc5   : > { %5641 = vmatprep.subr.bf16.mxu0 %v6110_v11 }
  0xc8   : > { %5642 = vmatpush3.bf16.msra.mxu0 %v6111_v12 }
  0xc9   : > { %5643 = vmatprep.subr.bf16.mxu0 %v6112_v13 }
  0xcc   : > { %5644 = vmatpush3.bf16.msra.mxu0 %v6113_v14 }
  0xcd   : > { %5645 = vmatprep.subr.bf16.mxu0 %v6114_v15 }
  0xd0   : > { %5646 = vmatpush3.bf16.msra.mxu0 %v6115_v16 }
  0xd1   : > { %5647 = vmatprep.subr.bf16.mxu0 %v6116_v17 }
  0xd4   : > { %5648 = vmatpush3.bf16.msra.mxu0 %v6117_v18 }
 0x136   : > { %v374_v21 = vpop.permute.xlu0 %373 }
 0x137   : > { %vm378_vm0 = vcmp.eq.s32.totalorder %v370_v20, %v374_v21  ;;  %vm379_vm4 = vcmp.eq.s32.totalorder %v371_v22, %v374_v21 }
 0x13a   : > { %v377_v23 = vpop.permute.xlu0 %376 }
 0x13b   : > { %vm380_vm1 = vcmp.eq.s32.totalorder %v370_v20, %v377_v23  ;;  %vm381_vm2 = vcmp.eq.s32.totalorder %v371_v22, %v377_v23 }
 0x13c   : > { %vm5291_vm3 = vmpackc.low %vm380_vm1, %vm378_vm0 }
 0x13d   : > { %vm5289_vm5 = vmpackc.low %vm381_vm2, %vm379_vm4 }
 0x13e   : > { %5290 = vmatprep.mubr.msk.bf16.mxu0 %vm5289_vm5, %v6795_v24 }
 0x13f   : > { %5292 = vmatmul.mubr.msk.bf16.vlgmr.msra.gmra.mrb[0].mxu0 %vm5291_vm3, %v6795_v24 }
 0x212   : > { %v5649_v25 = vpop.f32.mrb[0].mxu0 }
 0x213   : > { %v5650_v26 = vpop.f32.mrb[1].mxu0 }
 0x214   : > { %v5651_v27 = vadd.f32 %v5650_v26, %v5649_v25  ;;  %v5652_v28 = vpop.f32.mrb[2].mxu0 }
 0x215   : > { %v5653_v29 = vpop.f32.mrb[3].mxu0 }
 0x216   : > { %557 = vst [vmem:[#allocation2] sm:$0xff] %v5651_v27  ;;  %v5654_v30 = vadd.f32 %v5653_v29, %v5652_v28 }
 0x218   : > { %558 = vst [vmem:[#allocation2 + $0x8] sm:$0xff] %v5654_v30 }
 0x219 PF: > { %v6133_v31 = vld [vmem:[%s7068_s29 + $0x4] ss:$80 sps:$4 sm:$0xff]   ;;  %v6135_v32 = vld [vmem:[%s7068_s29] ss:$80 sps:$4 sm:$0xff]   ;;  %v6796_v33 = vmov 0   ;;  %v6797_v34 = vmov 0.0   ;;  %v602_v60 = vlaneseq }
 0x21a   : > { %777 = vmatprep.mubr.bf16.mxu0 %v6796_v33  ;;  %5881 = vmatprep.subr.bf16.mxu1 %v6797_v34  ;;  %v6136_v35 = vld [vmem:[%s7068_s29 + $0xa4] ss:$80 sps:$4 sm:$0xff]   ;;  %vm6798_vm6 = vmmov 0   ;;  %v6138_v36 = vld [vmem:[%s7068_s29 + $0xa0] ss:$80 sps:$4 sm:$0xff]   ;;  %vm829_vm7 = vcmask 261120  }
 0x21b   : > { %745 = vmatprep.subr.bf16.mxu0 %v6133_v31  ;;  %5897 = vmatprep.mubr.msk.bf16.mxu1 %vm6798_vm6, %v6797_v34  ;;  %v6139_v37 = vld [vmem:[%s7068_s29 + $0x144] ss:$80 sps:$4 sm:$0xff]   ;;  %v6141_v38 = vld [vmem:[%s7068_s29 + $0x140] ss:$80 sps:$4 sm:$0xff]   ;;  %v6157_v42 = vld [vmem:[%s7068_s29 + $0x8] ss:$80 sps:$4 sm:$0xff]  }
 0x21c   : > { %746 = vmatpush1.bf16.msra.mxu0 %v6135_v32  ;;  %v6142_v39 = vld [vmem:[%s7068_s29 + $0x1e4] ss:$80 sps:$4 sm:$0xff]   ;;  %v6144_v40 = vld [vmem:[%s7068_s29 + $0x1e0] ss:$80 sps:$4 sm:$0xff]   ;;  %5882 = vmatpush3.bf16.msra.mxu1 %v6157_v42  ;;  %v6158_v43 = vld [vmem:[%s7068_s29 + $0xa8] ss:$80 sps:$4 sm:$0xff]  }
 0x21d   : > { %747 = vmatprep.subr.bf16.mxu0 %v6136_v35  ;;  %v6145_v41 = vld [vmem:[%s7068_s29 + $0x284] ss:$80 sps:$4 sm:$0xff]   ;;  %v6147_v44 = vld [vmem:[%s7068_s29 + $0x280] ss:$80 sps:$4 sm:$0xff]   ;;  %5883 = vmatprep.subr.bf16.mxu1 %v6797_v34  ;;  %v6159_v46 = vld [vmem:[%s7068_s29 + $0x148] ss:$80 sps:$4 sm:$0xff]  }
 0x21e   : > { %v6148_v45 = vld [vmem:[%s7068_s29 + $0x324] ss:$80 sps:$4 sm:$0xff]   ;;  %v6150_v47 = vld [vmem:[%s7068_s29 + $0x320] ss:$80 sps:$4 sm:$0xff]   ;;  %v6160_v49 = vld [vmem:[%s7068_s29 + $0x1e8] ss:$80 sps:$4 sm:$0xff]  }
 0x21f   : > { %v6151_v48 = vld [vmem:[%s7068_s29 + $0x3c4] ss:$80 sps:$4 sm:$0xff]   ;;  %v6153_v50 = vld [vmem:[%s7068_s29 + $0x3c0] ss:$80 sps:$4 sm:$0xff]   ;;  %v6161_v52 = vld [vmem:[%s7068_s29 + $0x288] ss:$80 sps:$4 sm:$0xff]  }
 0x220   : > { %748 = vmatpush1.bf16.msra.mxu0 %v6138_v36  ;;  %5884 = vmatpush3.bf16.msra.mxu1 %v6158_v43  ;;  %v6154_v51 = vld [vmem:[%s7068_s29 + $0x464] ss:$80 sps:$4 sm:$0xff]   ;;  %v6156_v53 = vld [vmem:[%s7068_s29 + $0x460] ss:$80 sps:$4 sm:$0xff]   ;;  %v560_v55 = vld [vmem:[#allocation2 + $0x8] sm:$0xff]  ;;  %v7135_v61 = vshrl.u32 %v602_v60, 7 }
 0x221   : > { %749 = vmatprep.subr.bf16.mxu0 %v6139_v37  ;;  %5885 = vmatprep.subr.bf16.mxu1 %v6797_v34  ;;  %v559_v54 = vld [vmem:[#allocation2] sm:$0xff]  ;;  %v6162_v56 = vld [vmem:[%s7068_s29 + $0x328] ss:$80 sps:$4 sm:$0xff]   ;;  %s6799_s7 = smov 96   ;;  %vm982_vm8 = vcmask 64512   ;;  %s6800_s2 = smov 64  }
 0x222   : > { %v568_v57 = vpack.c.bf16 %v560_v55, %v559_v54  ;;  %v6163_v58 = vld [vmem:[%s7068_s29 + $0x3c8] ss:$80 sps:$4 sm:$0xff]   ;;  %v7138_v62 = vsub.s32 0, %v7135_v61  ;;  %v7142_v0 = vsub.s32 1, %v7135_v61  ;;  %v7155_v9 = vsub.s32 2, %v7135_v61  ;;  %s6801_s5 = smov 32  }
 0x223   : > { %v6164_v59 = vld [vmem:[%s7068_s29 + $0x468] ss:$80 sps:$4 sm:$0xff]   ;;  %vm2169_vm9 = vcmask 523264   ;;  %vm2172_vm10 = vcmask 785408   ;;  %p5611_p2 = scmp.ne.s32.totalorder %s6860_s25, 1 }
 0x224   : > { %750 = vmatpush1.bf16.msra.mxu0 %v6141_v38  ;;  %5886 = vmatpush3.bf16.msra.mxu1 %v6159_v46  ;;  %v561_v63 = vld [vmem:[%s7076_s21] sm:$0x7] }
 0x225   : > { %751 = vmatprep.subr.bf16.mxu0 %v6142_v39  ;;  %5887 = vmatprep.subr.bf16.mxu1 %v6797_v34  ;;  %v605_v1 = vrot.slane %v561_v63, %v7138_v62  ;;  %v609_v2 = vrot.slane %v561_v63, %v7142_v0  ;;  %v613_v11 = vrot.slane %v561_v63, %v7155_v9 }
 0x228   : > { %752 = vmatpush1.bf16.msra.mxu0 %v6144_v40  ;;  %5888 = vmatpush3.bf16.msra.mxu1 %v6160_v49 }
 0x229   : > { %753 = vmatprep.subr.bf16.mxu0 %v6145_v41  ;;  %5889 = vmatprep.subr.bf16.mxu1 %v6797_v34 }
 0x22c   : > { %754 = vmatpush1.bf16.msra.mxu0 %v6147_v44  ;;  %5890 = vmatpush3.bf16.msra.mxu1 %v6161_v52 }
 0x22d   : > { %755 = vmatprep.subr.bf16.mxu0 %v6148_v45  ;;  %5891 = vmatprep.subr.bf16.mxu1 %v6797_v34 }
 0x230   : > { %756 = vmatpush1.bf16.msra.mxu0 %v6150_v47  ;;  %5892 = vmatpush3.bf16.msra.mxu1 %v6162_v56 }
 0x231   : > { %757 = vmatprep.subr.bf16.mxu0 %v6151_v48  ;;  %5893 = vmatprep.subr.bf16.mxu1 %v6797_v34 }
 0x234   : > { %758 = vmatpush1.bf16.msra.mxu0 %v6153_v50  ;;  %5894 = vmatpush3.bf16.msra.mxu1 %v6163_v58 }
 0x235   : > { %759 = vmatprep.subr.bf16.mxu0 %v6154_v51  ;;  %5895 = vmatprep.subr.bf16.mxu1 %v6797_v34 }
 0x238   : > { %760 = vmatpush1.bf16.msra.mxu0 %v6156_v53  ;;  %5896 = vmatpush3.bf16.msra.mxu1 %v6164_v59 }
 0x239   : > { %5941 = vmatprep.subr.mxu0 %v6797_v34  ;;  %5901 = vmatprep.subr.mxu1 %v6797_v34 }
 0x23b   : > { %778 = vmatmul.mubr.bf16.vlgmr.msra.gmra.mrb[0].mxu0 %v568_v57  ;;  %5898 = vmatmul.mubr.bf16.vlgmr.msra.gmra.mrb[0].mxu1 %v568_v57 }
 0x23c   : > { %5943 = vmatprep.mubr.msk.f32.mxu0 %vm6798_vm6, %v6797_v34  ;;  %5903 = vmatprep.mubr.msk.f32.mxu1 %vm6798_vm6, %v6797_v34 }
 0x30e   : > { %v779_v3 = vpop.f32.mrb[0].mxu0  ;;  %v822_v13 = vpop.f32.mrb[0].mxu1 }
 0x30f   : > { %v7146_v4 = vadd.f32 %v779_v3, %v605_v1  ;;  %v781_v5 = vpop.f32.mrb[1].mxu0  ;;  %v7172_v14 = vadd.f32 %v822_v13, %v613_v11  ;;  %v5899_v15 = vpop.f32.mrb[1].mxu1 }
 0x310   : > { %v7148_v6 = vadd.f32 %v781_v5, %v609_v2  ;;  %v783_v7 = vpop.f32.mrb[2].mxu0  ;;  %v825_v16 = vpop.f32.mrb[2].mxu1 }
 0x311   : > { %v785_v8 = vpop.f32.mrb[3].mxu0  ;;  %1151 = vrot.lane.b32.xlu1 %v7146_v4, %s6799_s7  ;;  %v7167_v12 = vadd.f32 %v783_v7, %v605_v1  ;;  %v7176_v17 = vadd.f32 %v825_v16, %v613_v11  ;;  %v5900_v18 = vpop.f32.mrb[3].mxu1 }
 0x312   : > { %5902 = vmatpush3.xpose.msk.msra.mxu1 %vm829_vm7, %v7148_v6  ;;  %v7158_v10 = vadd.f32 %v785_v8, %v609_v2 }
 0x313   : > { %5906 = vmatprep.subr.mxu1 %v6797_v34 }
 0x315   : > { %5904 = vmatmul.mubr.msk.f32.vlgmr.msra.gmra.mrb[4].mxu1 %vm829_vm7, %v7146_v4 }
 0x316   : > { %5907 = vmatpush3.xpose.msk.msra.mxu1 %vm829_vm7, %v7158_v10  ;;  %5908 = vmatprep.mubr.msk.f32.mxu1 %vm6798_vm6, %v6797_v34 }
 0x317   : > { %5911 = vmatprep.subr.mxu1 %v6797_v34 }
 0x319   : > { %5909 = vmatmul.mubr.msk.f32.vlgmr.msra.gmra.mrb[6].mxu1 %vm829_vm7, %v7167_v12 }
 0x31a   : > { %5913 = vmatprep.mubr.msk.f32.mxu1 %vm6798_vm6, %v6797_v34  ;;  %5912 = vmatpush3.msra.mxu1 %v7172_v14 }
 0x31b   : > { %5916 = vmatprep.subr.mxu1 %v6797_v34 }
 0x383   : > { %v1152_v37 = vpop.permute.xlu1 %1151 }
 0x3e8   : > { %v902_v19 = vpop.f32.mrb[4].mxu1 }
 0x3e9   : > { %v5905_v20 = vpop.f32.mrb[5].mxu1  ;;  %v983_v21 = vsel %vm982_vm8, %v902_v19, -inf }
 0x3ea   : > { %984 = vmax.xlane.f32.xlu0 %v983_v21 }
 0x3ec   : > { %v978_v22 = vpop.f32.mrb[6].mxu1 }
 0x3ed   : > { %v5910_v23 = vpop.f32.mrb[7].mxu1  ;;  %v986_v24 = vsel %vm982_vm8, %v978_v22, -inf }
 0x3ee   : > { %987 = vmax.xlane.f32.xlu0 %v986_v24 }
 0x404   : > { %1153 = vrot.lane.b32.xlu0 %v7148_v6, %s6799_s7 }
 0x477   : > { %v985_v25 = vpop.xlane.xlu0 %984 }
 0x478   : > { %v989_v26 = vsub.f32 %v902_v19, %v985_v25 }
 0x47a   : > { %v991_v27 = vmul.f32 1.442695, %v989_v26 }
 0x47b   : > { %v988_v28 = vpop.xlane.xlu0 %987 }
 0x47c   : > { %6493 = vpow2.f32 %v991_v27  ;;  %v990_v29 = vsub.f32 %v978_v22, %v988_v28 }
 0x47e   : > { %v993_v30 = vmul.f32 1.442695, %v990_v29 }
 0x47f   : > { %v1154_v44 = vpop.permute.xlu0 %1153 }
 0x480   : > { %6495 = vpow2.f32 %v993_v30 }
 0x486   : > { %v6494_v31 = vpop.eup %6493 }
 0x487   : > { %v995_v32 = vsel %vm982_vm8, %v6494_v31, 0.0 }
 0x488   : > { %996 = vadd.xlane.f32.xlu1 %v995_v32 }
 0x48a   : > { %v6496_v35 = vpop.eup %6495 }
 0x48b   : > { %v998_v36 = vsel %vm982_vm8, %v6496_v35, 0.0 }
 0x48c   : > { %999 = vadd.xlane.f32.xlu1 %v998_v36 }
 0x49d   : > { %1231 = vrot.lane.b32.xlu1 %v7158_v10, %s6799_s7 }
 0x4a1   : > { %1229 = vrot.lane.b32.xlu1 %v7167_v12, %s6799_s7 }
 0x515   : > { %v997_v38 = vpop.xlane.xlu1 %996 }
 0x516   : > { %6497 = vrcp.f32 %v997_v38 }
 0x519   : > { %v1000_v39 = vpop.xlane.xlu1 %999 }
 0x51a   : > { %6499 = vrcp.f32 %v1000_v39 }
 0x51d   : > { %v1232_v45 = vpop.permute.xlu1 %1231 }
 0x520   : > { %v6498_v40 = vpop.eup %6497 }
 0x521   : > { %v1003_v41 = vmul.f32 %v6498_v40, %v6494_v31  ;;  %v1230_v46 = vpop.permute.xlu1 %1229 }
 0x523   : > { %5914 = vmatmul.mubr.msk.f32.vlgmr.msra.gmra.mrb[8].mxu1 %vm982_vm8, %v1003_v41 }
 0x524   : > { %v6500_v42 = vpop.eup %6499  ;;  %5917 = vmatpush3.msra.mxu1 %v7176_v17  ;;  %5918 = vmatprep.mubr.msk.f32.mxu1 %vm6798_vm6, %v6797_v34 }
 0x525   : > { %v1004_v43 = vmul.f32 %v6500_v42, %v6496_v35  ;;  %5921 = vmatprep.subr.mxu1 %v6797_v34 }
 0x527   : > { %5919 = vmatmul.mubr.msk.f32.vlgmr.msra.gmra.mrb[10].mxu1 %vm982_vm8, %v1004_v43 }
 0x528   : > { %5923 = vmatprep.mubr.msk.f32.mxu1 %vm6798_vm6, %v6797_v34 }
 0x52b   : > { %5922 = vmatpush3.xpose.msk.msra.mxu1 %vm829_vm7, %v1154_v44 }
 0x52c   : > { %5926 = vmatprep.subr.mxu1 %v6797_v34 }
 0x52e   : > { %5924 = vmatmul.mubr.msk.f32.vlgmr.msra.gmra.mrb[12].mxu1 %vm829_vm7, %v1152_v37 }
 0x52f   : > { %5927 = vmatpush3.xpose.msk.msra.mxu1 %vm829_vm7, %v1232_v45  ;;  %5928 = vmatprep.mubr.msk.f32.mxu1 %vm6798_vm6, %v6797_v34 }
 0x530   : > { %5931 = vmatprep.subr.mxu1 %v6797_v34 }
 0x532   : > { %5929 = vmatmul.mubr.msk.f32.vlgmr.msra.gmra.mrb[14].mxu1 %vm829_vm7, %v1230_v46 }
 0x533   : > { %5933 = vmatprep.mubr.msk.f32.mxu1 %vm6798_vm6, %v6797_v34 }
 0x5f6   : > { %v7208_v47 = vpop.f32.mrb[8].mxu1 }
 0x5f7   : > { %v5915_v48 = vpop.f32.mrb[9].mxu1 }
 0x5fa   : > { %v7210_v49 = vpop.f32.mrb[10].mxu1 }
 0x5fb   : > { %v5920_v50 = vpop.f32.mrb[11].mxu1 }
 0x601   : > { %v1225_v51 = vpop.f32.mrb[12].mxu1 }
 0x602   : > { %v5925_v52 = vpop.f32.mrb[13].mxu1  ;;  %v1307_v53 = vsel %vm982_vm8, %v1225_v51, -inf }
 0x603   : > { %1308 = vmax.xlane.f32.xlu0 %v1307_v53 }
 0x605   : > { %v1303_v54 = vpop.f32.mrb[14].mxu1 }
 0x606   : > { %v5930_v55 = vpop.f32.mrb[15].mxu1  ;;  %v1310_v56 = vsel %vm982_vm8, %v1303_v54, -inf }
 0x607   : > { %1311 = vmax.xlane.f32.xlu1 %v1310_v56 }
 0x618   : > { %1407 = vrot.lane.b32.xlu1 %v7176_v17, %s6799_s7 }
 0x61c   : > { %1485 = vrot.lane.b32.xlu1 %v7148_v6, %s6800_s2 }
 0x620   : > { %1563 = vrot.lane.b32.xlu1 %v7158_v10, %s6800_s2 }
 0x624   : > { %1561 = vrot.lane.b32.xlu1 %v7167_v12, %s6800_s2 }
 0x690   : > { %v1309_v57 = vpop.xlane.xlu0 %1308 }
 0x691   : > { %v1313_v58 = vsub.f32 %v1225_v51, %v1309_v57 }
 0x693   : > { %v1315_v59 = vmul.f32 1.442695, %v1313_v58 }
 0x694   : > { %v1312_v60 = vpop.xlane.xlu1 %1311 }
 0x695   : > { %6501 = vpow2.f32 %v1315_v59  ;;  %v1314_v5 = vsub.f32 %v1303_v54, %v1312_v60 }
 0x697   : > { %v1317_v7 = vmul.f32 1.442695, %v1314_v5 }
 0x698   : > { %v1408_v63 = vpop.permute.xlu1 %1407 }
 0x699   : > { %6503 = vpow2.f32 %v1317_v7 }
 0x69c   : > { %v1486_v1 = vpop.permute.xlu1 %1485 }
 0x69d   : > { %5942 = vmatpush3.xpose.msk.msra.mxu0 %vm829_vm7, %v1486_v1 }
 0x69e   : > { %5951 = vmatprep.subr.mxu0 %v6797_v34 }
 0x69f   : > { %v6502_v2 = vpop.eup %6501 }
 0x6a0   : > { %v1319_v3 = vsel %vm982_vm8, %v6502_v2, 0.0  ;;  %v1564_v22 = vpop.permute.xlu1 %1563 }
 0x6a1   : > { %1320 = vadd.xlane.f32.xlu0 %v1319_v3 }
 0x6a3   : > { %v6504_v8 = vpop.eup %6503 }
 0x6a4   : > { %v1322_v11 = vsel %vm982_vm8, %v6504_v8, 0.0  ;;  %v1562_v24 = vpop.permute.xlu1 %1561 }
 0x6b7   : > { %1330 = vrot.lane.b32.xlu0 %v7172_v14, %s6799_s7 }
 0x6d6   : > { %1323 = vadd.xlane.f32.xlu0 %v1322_v11 }
 0x6ec   : > { %1483 = vrot.lane.b32.xlu0 %v7146_v4, %s6800_s2 }
 0x72e   : > { %v1321_v13 = vpop.xlane.xlu0 %1320 }
 0x72f   : > { %6505 = vrcp.f32 %v1321_v13 }
 0x732   : > { %v1331_v15 = vpop.permute.xlu0 %1330 }
 0x733   : > { %5932 = vmatpush3.msra.mxu1 %v1331_v15 }
 0x734   : > { %5936 = vmatprep.subr.mxu1 %v6797_v34 }
 0x739   : > { %v6506_v16 = vpop.eup %6505 }
 0x73a   : > { %v1327_v18 = vmul.f32 %v6506_v16, %v6502_v2 }
 0x73c   : > { %5934 = vmatmul.mubr.msk.f32.vlgmr.msra.gmra.mrb[16].mxu1 %vm982_vm8, %v1327_v18 }
 0x73d   : > { %5937 = vmatpush3.msra.mxu1 %v1408_v63  ;;  %5938 = vmatprep.mubr.msk.f32.mxu1 %vm6798_vm6, %v6797_v34 }
 0x73e   : > { %5946 = vmatprep.subr.mxu1 %v6797_v34 }
 0x763   : > { %v1324_v19 = vpop.xlane.xlu0 %1323 }
 0x764   : > { %6507 = vrcp.f32 %v1324_v19 }
 0x767   : > { %v1484_v20 = vpop.permute.xlu0 %1483 }
 0x768   : > { %5944 = vmatmul.mubr.msk.f32.vlgmr.msra.gmra.mrb[4].mxu0 %vm829_vm7, %v1484_v20 }
 0x769   : > { %5953 = vmatprep.mubr.msk.f32.mxu0 %vm6798_vm6, %v6797_v34 }
 0x76e   : > { %v6508_v21 = vpop.eup %6507 }
 0x76f   : > { %v1328_v23 = vmul.f32 %v6508_v21, %v6504_v8 }
 0x771   : > { %5939 = vmatmul.mubr.msk.f32.vlgmr.msra.gmra.mrb[18].mxu1 %vm982_vm8, %v1328_v23 }
 0x772   : > { %5947 = vmatpush3.xpose.msk.msra.mxu1 %vm829_vm7, %v1564_v22  ;;  %5948 = vmatprep.mubr.msk.f32.mxu1 %vm6798_vm6, %v6797_v34 }
 0x773   : > { %5956 = vmatprep.subr.mxu1 %v6797_v34 }
 0x775   : > { %5949 = vmatmul.mubr.msk.f32.vlgmr.msra.gmra.mrb[20].mxu1 %vm829_vm7, %v1562_v24 }
 0x776   : > { %5958 = vmatprep.mubr.msk.f32.mxu1 %vm6798_vm6, %v6797_v34 }
 0x80f   : > { %v7246_v25 = vpop.f32.mrb[16].mxu1 }
 0x810   : > { %v5935_v26 = vpop.f32.mrb[17].mxu1 }
 0x83b   : > { %v1557_v27 = vpop.f32.mrb[4].mxu0 }
 0x83c   : > { %v5945_v28 = vpop.f32.mrb[5].mxu0  ;;  %v1639_v29 = vsel %vm982_vm8, %v1557_v27, -inf }
 0x83d   : > { %1640 = vmax.xlane.f32.xlu0 %v1639_v29 }
 0x844   : > { %v7249_v30 = vpop.f32.mrb[18].mxu1 }
 0x845   : > { %v6118_v31 = vpack.i.bf16 %v7249_v30, %v7246_v25  ;;  %v5940_v32 = vpop.f32.mrb[19].mxu1 }
 0x846   : > { %v6166_v32 = vld [vmem:[%s7068_s29 + $0xac] ss:$80 sps:$4 sm:$0xff]  }
 0x848   : > { %v1635_v35 = vpop.f32.mrb[20].mxu1 }
 0x849   : > { %v5950_v36 = vpop.f32.mrb[21].mxu1  ;;  %v1642_v37 = vsel %vm982_vm8, %v1635_v35, -inf }
 0x84a   : > { %1643 = vmax.xlane.f32.xlu1 %v1642_v37  ;;  %v6168_v36 = vld [vmem:[%s7068_s29 + $0x1ec] ss:$80 sps:$4 sm:$0xff]  }
 0x84b   : > { %v6169_v37 = vld [vmem:[%s7068_s29 + $0x28c] ss:$80 sps:$4 sm:$0xff]  }
 0x85b   : > { %1737 = vrot.lane.b32.xlu1 %v7176_v17, %s6800_s2 }
 0x85f   : > { %1815 = vrot.lane.b32.xlu1 %v7148_v6, %s6801_s5 }
 0x863   : > { %1893 = vrot.lane.b32.xlu1 %v7158_v10, %s6801_s5 }
 0x867   : > { %1891 = vrot.lane.b32.xlu1 %v7167_v12, %s6801_s5 }
 0x8ca   : > { %v1641_v38 = vpop.xlane.xlu0 %1640 }
 0x8cb   : > { %v1645_v39 = vsub.f32 %v1557_v27, %v1641_v38  ;;  %v6170_v38 = vld [vmem:[%s7068_s29 + $0x32c] ss:$80 sps:$4 sm:$0xff]  }
 0x8cd   : > { %v1647_v40 = vmul.f32 1.442695, %v1645_v39  ;;  %v6171_v39 = vld [vmem:[%s7068_s29 + $0x3cc] ss:$80 sps:$4 sm:$0xff]  }
 0x8cf   : > { %6509 = vpow2.f32 %v1647_v40  ;;  %v6172_v40 = vld [vmem:[%s7068_s29 + $0x46c] ss:$80 sps:$4 sm:$0xff]  }
 0x8d7   : > { %v1644_v41 = vpop.xlane.xlu1 %1643 }
 0x8d8   : > { %v1646_v6 = vsub.f32 %v1635_v35, %v1644_v41  ;;  %v6167_v35 = vld [vmem:[%s7068_s29 + $0x14c] ss:$80 sps:$4 sm:$0xff]  }
 0x8d9   : > { %v6510_v42 = vpop.eup %6509 }
 0x8da   : > { %v1651_v43 = vsel %vm982_vm8, %v6510_v42, 0.0  ;;  %v1649_v10 = vmul.f32 1.442695, %v1646_v6 }
 0x8db   : > { %1652 = vadd.xlane.f32.xlu0 %v1651_v43  ;;  %v1738_v44 = vpop.permute.xlu1 %1737 }
 0x8dc   : > { %5957 = vmatpush3.msra.mxu1 %v1738_v44  ;;  %6511 = vpow2.f32 %v1649_v10 }
 0x8dd   : > { %5966 = vmatprep.subr.mxu1 %v6797_v34 }
 0x8df   : > { %v1816_v52 = vpop.permute.xlu1 %1815 }
 0x8e3   : > { %v1894_v55 = vpop.permute.xlu1 %1893 }
 0x8e6   : > { %v6512_v12 = vpop.eup %6511 }
 0x8e7   : > { %v1654_v45 = vsel %vm982_vm8, %v6512_v12, 0.0  ;;  %v1892_v57 = vpop.permute.xlu1 %1891 }
 0x8f1   : > { %1661 = vrot.lane.b32.xlu0 %v7172_v14, %s6800_s2 }
 0x910   : > { %1655 = vadd.xlane.f32.xlu0 %v1654_v45 }
 0x926   : > { %1813 = vrot.lane.b32.xlu0 %v7146_v4, %s6801_s5 }
 0x968   : > { %v1653_v46 = vpop.xlane.xlu0 %1652 }
 0x969   : > { %6513 = vrcp.f32 %v1653_v46 }
 0x96c   : > { %v1662_v48 = vpop.permute.xlu0 %1661 }
 0x96d   : > { %5952 = vmatpush3.msra.mxu0 %v1662_v48 }
 0x96e   : > { %5961 = vmatprep.subr.mxu0 %v6797_v34 }
 0x973   : > { %v6514_v50 = vpop.eup %6513 }
 0x974   : > { %v1659_v51 = vmul.f32 %v6514_v50, %v6510_v42 }
 0x976   : > { %5954 = vmatmul.mubr.msk.f32.vlgmr.msra.gmra.mrb[6].mxu0 %vm982_vm8, %v1659_v51 }
 0x977   : > { %5962 = vmatpush3.xpose.msk.msra.mxu0 %vm829_vm7, %v1816_v52  ;;  %5963 = vmatprep.mubr.msk.f32.mxu0 %vm6798_vm6, %v6797_v34 }
 0x978   : > { %5971 = vmatprep.subr.mxu0 %v6797_v34 }
 0x99d   : > { %v1656_v53 = vpop.xlane.xlu0 %1655 }
 0x99e   : > { %6515 = vrcp.f32 %v1656_v53 }
 0x9a1   : > { %v1814_v4 = vpop.permute.xlu0 %1813 }
 0x9a2   : > { %5964 = vmatmul.mubr.msk.f32.vlgmr.msra.gmra.mrb[8].mxu0 %vm829_vm7, %v1814_v4 }
 0x9a3   : > { %5973 = vmatprep.mubr.msk.f32.mxu0 %vm6798_vm6, %v6797_v34 }
 0x9a8   : > { %v6516_v54 = vpop.eup %6515 }
 0x9a9   : > { %v1660_v56 = vmul.f32 %v6516_v54, %v6512_v12 }
 0x9ab   : > { %5959 = vmatmul.mubr.msk.f32.vlgmr.msra.gmra.mrb[22].mxu1 %vm982_vm8, %v1660_v56 }
 0x9ac   : > { %5967 = vmatpush3.xpose.msk.msra.mxu1 %vm829_vm7, %v1894_v55  ;;  %5968 = vmatprep.mubr.msk.f32.mxu1 %vm6798_vm6, %v6797_v34 }
 0x9ad   : > { %5976 = vmatprep.subr.mxu1 %v6797_v34 }
 0x9af   : > { %5969 = vmatmul.mubr.msk.f32.vlgmr.msra.gmra.mrb[24].mxu1 %vm829_vm7, %v1892_v57 }
 0x9b0   : > { %5978 = vmatprep.mubr.msk.f32.mxu1 %vm6798_vm6, %v6797_v34 }
 0xa49   : > { %v1733_v58 = vpop.f32.mrb[6].mxu0 }
 0xa4a   : > { %v5955_v59 = vpop.f32.mrb[7].mxu0 }
 0xa4b   : > { %v5341_v59 = vld [vmem:[%s7076_s21 + $0x3] ss:$0 sm:$0xff] }
 0xa75   : > { %v1887_v60 = vpop.f32.mrb[8].mxu0 }
 0xa76   : > { %v5965_v63 = vpop.f32.mrb[9].mxu0  ;;  %v1969_v1 = vsel %vm982_vm8, %v1887_v60, -inf }
 0xa77   : > { %1970 = vmax.xlane.f32.xlu0 %v1969_v1 }
 0xa7e   : > { %v1809_v2 = vpop.f32.mrb[22].mxu1 }
 0xa7f   : > { %v6123_v3 = vpack.i.bf16 %v1809_v2, %v1733_v58  ;;  %v5960_v5 = vpop.f32.mrb[23].mxu1 }
 0xa82   : > { %v1965_v7 = vpop.f32.mrb[24].mxu1 }
 0xa83   : > { %v5970_v8 = vpop.f32.mrb[25].mxu1  ;;  %v1972_v11 = vsel %vm982_vm8, %v1965_v7, -inf }
 0xa84   : > { %1973 = vmax.xlane.f32.xlu1 %v1972_v11  ;;  %v6173_v11 = vld [vmem:[%s7068_s29 + $0x10] ss:$80 sps:$4 sm:$0xff]  }
 0xa95   : > { %2067 = vrot.lane.b32.xlu1 %v7176_v17, %s6801_s5 }
 0xa99   : > { %6119 = vrot.lane.b32.xlu1 %v6118_v31, %s6801_s5  ;;  %v6165_v31 = vld [vmem:[%s7068_s29 + $0xc] ss:$80 sps:$4 sm:$0xff]  }
 0xa9d   : > { %6124 = vrot.lane.b32.xlu1 %v6123_v3, %s6800_s2  ;;  %v6533_v3 = vld [vmem:[#allocation2] sm:$0xff] }
 0xb04   : > { %v1971_v13 = vpop.xlane.xlu0 %1970 }
 0xb05   : > { %v1975_v15 = vsub.f32 %v1887_v60, %v1971_v13  ;;  %v6175_v13 = vld [vmem:[%s7068_s29 + $0x14] ss:$80 sps:$4 sm:$0xff]  }
 0xb07   : > { %v1977_v16 = vmul.f32 1.442695, %v1975_v15  ;;  %v6176_v15 = vld [vmem:[%s7068_s29 + $0x18] ss:$80 sps:$4 sm:$0xff]  }
 0xb09   : > { %6517 = vpow2.f32 %v1977_v16  ;;  %v6178_v16 = vld [vmem:[%s7068_s29 + $0x1c] ss:$80 sps:$4 sm:$0xff]  }
 0xb11   : > { %v1974_v18 = vpop.xlane.xlu1 %1973 }
 0xb12   : > { %v1976_v19 = vsub.f32 %v1965_v7, %v1974_v18  ;;  %v6534_v7 = vld [vmem:[#allocation2 + $0x8] sm:$0xff]  ;;  %v6181_v18 = vld [vmem:[%s7068_s29 + $0xb4] ss:$80 sps:$4 sm:$0xff]  }
 0xb13   : > { %v6518_v20 = vpop.eup %6517 }
 0xb14   : > { %v1979_v21 = vmul.f32 1.442695, %v1976_v19  ;;  %v1981_v22 = vsel %vm982_vm8, %v6518_v20, 0.0  ;;  %v6184_v19 = vld [vmem:[%s7068_s29 + $0xbc] ss:$80 sps:$4 sm:$0xff]  }
 0xb15   : > { %1982 = vadd.xlane.f32.xlu0 %v1981_v22  ;;  %v2068_v23 = vpop.permute.xlu1 %2067 }
 0xb16   : > { %6519 = vpow2.f32 %v1979_v21  ;;  %5977 = vmatpush3.msra.mxu1 %v2068_v23  ;;  %v6182_v21 = vld [vmem:[%s7068_s29 + $0xb8] ss:$80 sps:$4 sm:$0xff]  }
 0xb17   : > { %2755 = vmatprep.subr.bf16.mxu1 %v6175_v13 }
 0xb19   : > { %v6120_v10 = vpop.permute.xlu1 %6119 }
 0xb1a   : > { %v6122_v45 = vunpack.i.h.bf16 %v6120_v10  ;;  %v6121_v46 = vunpack.i.l.bf16 %v6120_v10  ;;  %v6211_v10 = vld [vmem:[%s7068_s29 + $0x3d4] ss:$80 sps:$4 sm:$0xff]  }
 0xb1c   : > { %v2167_v52 = vsel %vm829_vm7, %v7208_v47, %v6121_v46  ;;  %v6212_v46 = vld [vmem:[%s7068_s29 + $0x3d8] ss:$80 sps:$4 sm:$0xff]  }
 0xb1d   : > { %v6125_v12 = vpop.permute.xlu1 %6124 }
 0xb1e   : > { %v6127_v48 = vunpack.i.h.bf16 %v6125_v12  ;;  %v6126_v50 = vunpack.i.l.bf16 %v6125_v12  ;;  %v6214_v12 = vld [vmem:[%s7068_s29 + $0x3dc] ss:$80 sps:$4 sm:$0xff]  }
 0xb20   : > { %v6520_v17 = vpop.eup %6519  ;;  %v2170_v54 = vsel %vm2169_vm9, %v2167_v52, %v6126_v50  ;;  %v6220_v50 = vld [vmem:[%s7068_s29 + $0x47c] ss:$80 sps:$4 sm:$0xff]   ;;  %v6223_v52 = vld [vmem:[%s7068_s29 + $0x24] ss:$80 sps:$4 sm:$0xff]  }
 0xb21   : > { %v1984_v24 = vsel %vm982_vm8, %v6520_v17, 0.0 }
 0xb22   : > { %1985 = vadd.xlane.f32.xlu0 %v1984_v24 }
 0xb38   : > { %1991 = vrot.lane.b32.xlu0 %v7172_v14, %s6801_s5 }
 0xba2   : > { %v1983_v25 = vpop.xlane.xlu0 %1982 }
 0xba3   : > { %6521 = vrcp.f32 %v1983_v25 }
 0xbad   : > { %v6522_v27 = vpop.eup %6521 }
 0xbae   : > { %v1989_v28 = vmul.f32 %v6522_v27, %v6518_v20  ;;  %v6179_v20 = vld [vmem:[%s7068_s29 + $0xb0] ss:$80 sps:$4 sm:$0xff]  }
 0xbaf   : > { %v1986_v26 = vpop.xlane.xlu0 %1985 }
 0xbb0   : > { %6523 = vrcp.f32 %v1986_v26 }
 0xbb3   : > { %v1992_v29 = vpop.permute.xlu0 %1991 }
 0xbb4   : > { %5972 = vmatpush3.msra.mxu0 %v1992_v29  ;;  %v6187_v29 = vld [vmem:[%s7068_s29 + $0x154] ss:$80 sps:$4 sm:$0xff]  }
 0xbb5   : > { %5974 = vmatmul.mubr.msk.f32.vlgmr.msra.gmra.mrb[10].mxu0 %vm982_vm8, %v1989_v28  ;;  %5981 = vmatprep.subr.bf16.mxu0 %v6797_v34 }
 0xbb6   : > { %5997 = vmatprep.mubr.msk.bf16.mxu0 %vm6798_vm6, %v6797_v34  ;;  %5982 = vmatpush3.bf16.msra.mxu0 %v6165_v31  ;;  %v6188_v31 = vld [vmem:[%s7068_s29 + $0x158] ss:$80 sps:$4 sm:$0xff]  }
 0xbb7   : > { %5983 = vmatprep.subr.bf16.mxu0 %v6797_v34 }
 0xbba   : > { %v6524_v14 = vpop.eup %6523  ;;  %5984 = vmatpush3.bf16.msra.mxu0 %v6166_v32  ;;  %v6193_v32 = vld [vmem:[%s7068_s29 + $0x1f4] ss:$80 sps:$4 sm:$0xff]  }
 0xbbb   : > { %v1990_v30 = vmul.f32 %v6524_v14, %v6520_v17  ;;  %5985 = vmatprep.subr.bf16.mxu0 %v6797_v34  ;;  %v6190_v14 = vld [vmem:[%s7068_s29 + $0x15c] ss:$80 sps:$4 sm:$0xff]  }
 0xbbd   : > { %5979 = vmatmul.mubr.msk.f32.vlgmr.msra.gmra.mrb[26].mxu1 %vm982_vm8, %v1990_v30  ;;  %v6185_v30 = vld [vmem:[%s7068_s29 + $0x150] ss:$80 sps:$4 sm:$0xff]  }
 0xbbe   : > { %2787 = vmatprep.mubr.bf16.mxu1 %v6796_v33  ;;  %5986 = vmatpush3.bf16.msra.mxu0 %v6167_v35  ;;  %v6196_v35 = vld [vmem:[%s7068_s29 + $0x1fc] ss:$80 sps:$4 sm:$0xff]  }
 0xbbf   : > { %5987 = vmatprep.subr.bf16.mxu0 %v6797_v34  ;;  %2756 = vmatpush1.bf16.msra.mxu1 %v6173_v11  ;;  %v6224_v11 = vld [vmem:[%s7068_s29 + $0x28] ss:$80 sps:$4 sm:$0xff]  }
 0xbc0   : > { %2757 = vmatprep.subr.bf16.mxu1 %v6181_v18  ;;  %v6227_v18 = vld [vmem:[%s7068_s29 + $0xc0] ss:$80 sps:$4 sm:$0xff]  }
 0xbc2   : > { %5988 = vmatpush3.bf16.msra.mxu0 %v6168_v36  ;;  %v6191_v36 = vld [vmem:[%s7068_s29 + $0x1f0] ss:$80 sps:$4 sm:$0xff]  }
 0xbc3   : > { %5989 = vmatprep.subr.bf16.mxu0 %v6797_v34  ;;  %2758 = vmatpush1.bf16.msra.mxu1 %v6179_v20  ;;  %v6235_v20 = vld [vmem:[%s7068_s29 + $0x164] ss:$80 sps:$4 sm:$0xff]  }
 0xbc4   : > { %2759 = vmatprep.subr.bf16.mxu1 %v6187_v29  ;;  %v6245_v29 = vld [vmem:[%s7068_s29 + $0x2a0] ss:$80 sps:$4 sm:$0xff]  }
 0xbc6   : > { %5990 = vmatpush3.bf16.msra.mxu0 %v6169_v37  ;;  %v6194_v37 = vld [vmem:[%s7068_s29 + $0x1f8] ss:$80 sps:$4 sm:$0xff]  }
 0xbc7   : > { %5991 = vmatprep.subr.bf16.mxu0 %v6797_v34  ;;  %2760 = vmatpush1.bf16.msra.mxu1 %v6185_v30  ;;  %v6253_v30 = vld [vmem:[%s7068_s29 + $0x344] ss:$80 sps:$4 sm:$0xff]  }
 0xbc8   : > { %2761 = vmatprep.subr.bf16.mxu1 %v6193_v32  ;;  %v6251_v32 = vld [vmem:[%s7068_s29 + $0x340] ss:$80 sps:$4 sm:$0xff]  }
 0xbca   : > { %5992 = vmatpush3.bf16.msra.mxu0 %v6170_v38  ;;  %v6199_v38 = vld [vmem:[%s7068_s29 + $0x294] ss:$80 sps:$4 sm:$0xff]  }
 0xbcb   : > { %5993 = vmatprep.subr.bf16.mxu0 %v6797_v34  ;;  %2762 = vmatpush1.bf16.msra.mxu1 %v6191_v36  ;;  %v6259_v36 = vld [vmem:[%s7068_s29 + $0x3e4] ss:$80 sps:$4 sm:$0xff]  }
 0xbcc   : > { %2763 = vmatprep.subr.bf16.mxu1 %v6199_v38  ;;  %v6257_v38 = vld [vmem:[%s7068_s29 + $0x3e0] ss:$80 sps:$4 sm:$0xff]  }
 0xbce   : > { %5994 = vmatpush3.bf16.msra.mxu0 %v6171_v39  ;;  %v6202_v39 = vld [vmem:[%s7068_s29 + $0x29c] ss:$80 sps:$4 sm:$0xff]  }
 0xbcf   : > { %5995 = vmatprep.subr.bf16.mxu0 %v6797_v34  ;;  %v2168_v34 = vsel %vm829_vm7, %v7210_v49, %v6122_v45  ;;  %v6209_v45 = vld [vmem:[%s7068_s29 + $0x3d0] ss:$80 sps:$4 sm:$0xff]  }
 0xbd0   : > { %v2171_v55 = vsel %vm2169_vm9, %v2168_v34, %v6127_v48  ;;  %v6217_v48 = vld [vmem:[%s7068_s29 + $0x474] ss:$80 sps:$4 sm:$0xff]   ;;  %v6218_v34 = vld [vmem:[%s7068_s29 + $0x478] ss:$80 sps:$4 sm:$0xff]  }
 0xbd2   : > { %5996 = vmatpush3.bf16.msra.mxu0 %v6172_v40  ;;  %v6197_v40 = vld [vmem:[%s7068_s29 + $0x290] ss:$80 sps:$4 sm:$0xff]  }
 0xbd3   : > { %2798 = vmatprep.subr.bf16.mxu0 %v6178_v16  ;;  %2764 = vmatpush1.bf16.msra.mxu1 %v6197_v40  ;;  %v6232_v16 = vld [vmem:[%s7068_s29 + $0xcc] ss:$80 sps:$4 sm:$0xff]   ;;  %v6265_v40 = vld [vmem:[%s7068_s29 + $0x484] ss:$80 sps:$4 sm:$0xff]  }
 0xc88   : > { %v2063_v41 = vpop.f32.mrb[10].mxu0 }
 0xc89   : > { %v5975_v42 = vpop.f32.mrb[11].mxu0 }
 0xc8a   : > { %v6205_v42 = vld [vmem:[%s7068_s29 + $0x334] ss:$80 sps:$4 sm:$0xff]  }
 0xc8b   : > { %2765 = vmatprep.subr.bf16.mxu1 %v6205_v42  ;;  %v6263_v42 = vld [vmem:[%s7068_s29 + $0x480] ss:$80 sps:$4 sm:$0xff]  }
 0xc90   : > { %v2139_v43 = vpop.f32.mrb[26].mxu1 }
 0xc91   : > { %v6128_v44 = vpack.i.bf16 %v2139_v43, %v2063_v41  ;;  %v5980_v6 = vpop.f32.mrb[27].mxu1  ;;  %v6200_v41 = vld [vmem:[%s7068_s29 + $0x298] ss:$80 sps:$4 sm:$0xff]   ;;  %v6208_v43 = vld [vmem:[%s7068_s29 + $0x33c] ss:$80 sps:$4 sm:$0xff]  }
 0xc92   : > { %v6206_v6 = vld [vmem:[%s7068_s29 + $0x338] ss:$80 sps:$4 sm:$0xff]  }
 0xc93   : > { %6129 = vrot.lane.b32.xlu0 %v6128_v44, %s6799_s7  ;;  %v6203_v44 = vld [vmem:[%s7068_s29 + $0x330] ss:$80 sps:$4 sm:$0xff]  }
 0xc94   : > { %2766 = vmatpush1.bf16.msra.mxu1 %v6203_v44  ;;  %v6271_v44 = vld [vmem:[%s7068_s29 + $0x34] ss:$80 sps:$4 sm:$0xff]  }
 0xc95   : > { %2767 = vmatprep.subr.bf16.mxu1 %v6211_v10  ;;  %v6269_v10 = vld [vmem:[%s7068_s29 + $0x30] ss:$80 sps:$4 sm:$0xff]  }
 0xc98   : > { %2768 = vmatpush1.bf16.msra.mxu1 %v6209_v45  ;;  %v6277_v45 = vld [vmem:[%s7068_s29 + $0xd4] ss:$80 sps:$4 sm:$0xff]  }
 0xc99   : > { %2769 = vmatprep.subr.bf16.mxu1 %v6217_v48  ;;  %v6275_v48 = vld [vmem:[%s7068_s29 + $0xd0] ss:$80 sps:$4 sm:$0xff]  }
 0xd05   : > { %v6130_v51 = vpop.permute.xlu0 %6129 }
 0xd06   : > { %v6132_v53 = vunpack.i.h.bf16 %v6130_v51  ;;  %v6131_v4 = vunpack.i.l.bf16 %v6130_v51  ;;  %v6215_v51 = vld [vmem:[%s7068_s29 + $0x470] ss:$80 sps:$4 sm:$0xff]  }
 0xd07   : > { %2770 = vmatpush1.bf16.msra.mxu1 %v6215_v51  ;;  %v6283_v51 = vld [vmem:[%s7068_s29 + $0x174] ss:$80 sps:$4 sm:$0xff]  }
 0xd08   : > { %v2174_v56 = vsel %vm2172_vm10, %v2171_v55, %v6132_v53  ;;  %v2173_v57 = vsel %vm2172_vm10, %v2170_v54, %v6131_v4  ;;  %v6226_v53 = vld [vmem:[%s7068_s29 + $0x2c] ss:$80 sps:$4 sm:$0xff]   ;;  %2841 = vmatprep.subr.bf16.mxu1 %v6223_v52  ;;  %v6281_v52 = vld [vmem:[%s7068_s29 + $0x170] ss:$80 sps:$4 sm:$0xff]  }
 0xd09   : > { %v2175_v58 = vpack.c.bf16 %v2174_v56, %v2173_v57 }
 0xd0b   : > { %5998 = vmatmul.mubr.bf16.vlgmr.msra.gmra.mrb[12].mxu0 %v2175_v58 }
 0xd0c   : > { %2830 = vmatprep.mubr.bf16.mxu0 %v6796_v33  ;;  %2799 = vmatpush1.bf16.msra.mxu0 %v6176_v15  ;;  %v6229_v15 = vld [vmem:[%s7068_s29 + $0xc4] ss:$80 sps:$4 sm:$0xff]  }
 0xd0d   : > { %2800 = vmatprep.subr.bf16.mxu0 %v6184_v19  ;;  %v6230_v19 = vld [vmem:[%s7068_s29 + $0xc8] ss:$80 sps:$4 sm:$0xff]  }
 0xd10   : > { %2801 = vmatpush1.bf16.msra.mxu0 %v6182_v21  ;;  %v6238_v21 = vld [vmem:[%s7068_s29 + $0x16c] ss:$80 sps:$4 sm:$0xff]  }
 0xd11   : > { %2802 = vmatprep.subr.bf16.mxu0 %v6190_v14  ;;  %v6248_v14 = vld [vmem:[%s7068_s29 + $0x2a8] ss:$80 sps:$4 sm:$0xff]  }
 0xd14   : > { %2803 = vmatpush1.bf16.msra.mxu0 %v6188_v31  ;;  %v6256_v31 = vld [vmem:[%s7068_s29 + $0x34c] ss:$80 sps:$4 sm:$0xff]  }
 0xd15   : > { %2804 = vmatprep.subr.bf16.mxu0 %v6196_v35  ;;  %v6254_v35 = vld [vmem:[%s7068_s29 + $0x348] ss:$80 sps:$4 sm:$0xff]  }
 0xd18   : > { %2805 = vmatpush1.bf16.msra.mxu0 %v6194_v37  ;;  %v6262_v37 = vld [vmem:[%s7068_s29 + $0x3ec] ss:$80 sps:$4 sm:$0xff]  }
 0xd19   : > { %2806 = vmatprep.subr.bf16.mxu0 %v6202_v39  ;;  %v6260_v39 = vld [vmem:[%s7068_s29 + $0x3e8] ss:$80 sps:$4 sm:$0xff]  }
 0xd1c   : > { %2807 = vmatpush1.bf16.msra.mxu0 %v6200_v41  ;;  %v6268_v41 = vld [vmem:[%s7068_s29 + $0x48c] ss:$80 sps:$4 sm:$0xff]  }
 0xd1d   : > { %2808 = vmatprep.subr.bf16.mxu0 %v6208_v43  ;;  %v6266_v43 = vld [vmem:[%s7068_s29 + $0x488] ss:$80 sps:$4 sm:$0xff]  }
 0xd20   : > { %2809 = vmatpush1.bf16.msra.mxu0 %v6206_v6  ;;  %v6274_v6 = vld [vmem:[%s7068_s29 + $0x3c] ss:$80 sps:$4 sm:$0xff]  }
 0xd21   : > { %2810 = vmatprep.subr.bf16.mxu0 %v6214_v12  ;;  %v6272_v12 = vld [vmem:[%s7068_s29 + $0x38] ss:$80 sps:$4 sm:$0xff]  }
 0xd24   : > { %2811 = vmatpush1.bf16.msra.mxu0 %v6212_v46  ;;  %v6280_v46 = vld [vmem:[%s7068_s29 + $0xdc] ss:$80 sps:$4 sm:$0xff]  }
 0xd25   : > { %2812 = vmatprep.subr.bf16.mxu0 %v6220_v50  ;;  %v6278_v50 = vld [vmem:[%s7068_s29 + $0xd8] ss:$80 sps:$4 sm:$0xff]  }
 0xd28   : > { %2813 = vmatpush1.bf16.msra.mxu0 %v6218_v34  ;;  %v6286_v34 = vld [vmem:[%s7068_s29 + $0x17c] ss:$80 sps:$4 sm:$0xff]  }
 0xd29   : > { %2884 = vmatprep.subr.bf16.mxu0 %v6226_v53  ;;  %v6284_v53 = vld [vmem:[%s7068_s29 + $0x178] ss:$80 sps:$4 sm:$0xff]  }
 0xdde   : > { %v2280_v60 = vpop.f32.mrb[12].mxu0 }
 0xddf   : > { %v2281_v49 = vadd.f32 %v5341_v59, %v2280_v60  ;;  %v5999_v63 = vpop.f32.mrb[13].mxu0 }
 0xde0   : > { %v2283_v47 = vpop.f32.mrb[14].mxu0 }
 0xde1   : > { %v2284_v1 = vadd.f32 %v5341_v59, %v2283_v47  ;;  %v6000_v2 = vpop.f32.mrb[15].mxu0  ;;  %v2287_v5 = vadd.f32 %v6533_v3, %v2281_v49  ;;  %v5350_v49 = vld [vmem:[%s7076_s21 + $0x4] ss:$0 sm:$0xff] }
 0xde2   : > { %v5351_v2 = vld [vmem:[%s7076_s21 + $0x5] ss:$0 sm:$0xff] }
 0xde3   : > { %2289 = vadd.xlane.f32.xlu1 %v2287_v5  ;;  %v2288_v8 = vadd.f32 %v6534_v7, %v2284_v1 }
 0xde5   : > { %2291 = vadd.xlane.f32.xlu0 %v2288_v8 }
 0xe70   : > { %v2290_v22 = vpop.xlane.xlu1 %2289 }
 0xe71   : > { %v2294_v23 = vmul.f32 0.0078125, %v2290_v22  ;;  %v6233_v22 = vld [vmem:[%s7068_s29 + $0x160] ss:$80 sps:$4 sm:$0xff]  }
 0xe72   : > { %v2292_v17 = vpop.xlane.xlu0 %2291 }
 0xe73   : > { %v7335_v24 = vsub.f32 %v2287_v5, %v2294_v23  ;;  %v2295_v25 = vmul.f32 0.0078125, %v2292_v17  ;;  %v6236_v23 = vld [vmem:[%s7068_s29 + $0x168] ss:$80 sps:$4 sm:$0xff]   ;;  %v6241_v17 = vld [vmem:[%s7068_s29 + $0x204] ss:$80 sps:$4 sm:$0xff]  }
 0xe75   : > { %v7337_v26 = vsub.f32 %v2288_v8, %v2295_v25  ;;  %v2298_v27 = vmul.f32 %v7335_v24, %v7335_v24  ;;  %v6221_v8 = vld [vmem:[%s7068_s29 + $0x20] ss:$80 sps:$4 sm:$0xff]  }
 0xe76   : > { %v6239_v25 = vld [vmem:[%s7068_s29 + $0x200] ss:$80 sps:$4 sm:$0xff]  }
 0xe77   : > { %2300 = vadd.xlane.f32.xlu0 %v2298_v27  ;;  %v2299_v28 = vmul.f32 %v7337_v26, %v7337_v26  ;;  %v6247_v27 = vld [vmem:[%s7068_s29 + $0x2a4] ss:$80 sps:$4 sm:$0xff]  }
 0xe7b   : > { %2302 = vadd.xlane.f32.xlu0 %v2299_v28  ;;  %v6250_v28 = vld [vmem:[%s7068_s29 + $0x2ac] ss:$80 sps:$4 sm:$0xff]  }
 0xf04   : > { %v2301_v4 = vpop.xlane.xlu0 %2300 }
 0xf05   : > { %v2304_v54 = vmul.f32 0.0078125, %v2301_v4  ;;  %v6289_v4 = vld [vmem:[%s7068_s29 + $0x214] ss:$80 sps:$4 sm:$0xff]  }
 0xf07   : > { %v2306_v55 = vadd.f32 1e-05, %v2304_v54  ;;  %v6292_v54 = vld [vmem:[%s7068_s29 + $0x21c] ss:$80 sps:$4 sm:$0xff]  }
 0xf08   : > { %v2303_v56 = vpop.xlane.xlu0 %2302 }
 0xf09   : > { %6525 = vrsqrt.f32 %v2306_v55  ;;  %v2305_v57 = vmul.f32 0.0078125, %v2303_v56  ;;  %v6287_v55 = vld [vmem:[%s7068_s29 + $0x210] ss:$80 sps:$4 sm:$0xff]   ;;  %v6290_v56 = vld [vmem:[%s7068_s29 + $0x218] ss:$80 sps:$4 sm:$0xff]  }
 0xf0b   : > { %v2307_v58 = vadd.f32 1e-05, %v2305_v57  ;;  %v6295_v57 = vld [vmem:[%s7068_s29 + $0x2b4] ss:$80 sps:$4 sm:$0xff]  }
 0xf0d   : > { %6527 = vrsqrt.f32 %v2307_v58  ;;  %v6298_v58 = vld [vmem:[%s7068_s29 + $0x2bc] ss:$80 sps:$4 sm:$0xff]  }
 0xf13   : > { %v6526_v59 = vpop.eup %6525 }
 0xf14   : > { %v2310_v60 = vmul.f32 %v6526_v59, %v7335_v24  ;;  %v6244_v24 = vld [vmem:[%s7068_s29 + $0x20c] ss:$80 sps:$4 sm:$0xff]   ;;  %v6293_v59 = vld [vmem:[%s7068_s29 + $0x2b0] ss:$80 sps:$4 sm:$0xff]  }
 0xf16   : > { %v2318_v47 = vmul.f32 %v5350_v49, %v2310_v60  ;;  %v6296_v60 = vld [vmem:[%s7068_s29 + $0x2b8] ss:$80 sps:$4 sm:$0xff]  }
 0xf17   : > { %v6528_v63 = vpop.eup %6527 }
 0xf18   : > { %v2311_v1 = vmul.f32 %v6528_v63, %v7337_v26  ;;  %v7373_v5 = vadd.f32 %v5351_v2, %v2318_v47  ;;  %v6242_v26 = vld [vmem:[%s7068_s29 + $0x208] ss:$80 sps:$4 sm:$0xff]   ;;  %v6304_v63 = vld [vmem:[%s7068_s29 + $0x35c] ss:$80 sps:$4 sm:$0xff]   ;;  %v6299_v47 = vld [vmem:[%s7068_s29 + $0x350] ss:$80 sps:$4 sm:$0xff]  }
 0xf1a   : > { %v2319_v3 = vmul.f32 %v5350_v49, %v2311_v1  ;;  %v6301_v49 = vld [vmem:[%s7068_s29 + $0x354] ss:$80 sps:$4 sm:$0xff]   ;;  %v6302_v1 = vld [vmem:[%s7068_s29 + $0x358] ss:$80 sps:$4 sm:$0xff]  }
 0xf1c   : > { %v7375_v7 = vadd.f32 %v5351_v2, %v2319_v3  ;;  %v6307_v2 = vld [vmem:[%s7068_s29 + $0x3f4] ss:$80 sps:$4 sm:$0xff]   ;;  %v6310_v3 = vld [vmem:[%s7068_s29 + $0x3fc] ss:$80 sps:$4 sm:$0xff]  }
 0xf1e   : > { %v7381_v13 = vpack.c.bf16 %v7375_v7, %v7373_v5 }
 0xf20   : > { %2788 = vmatmul.mubr.bf16.vlgmr.msra.gmra.mrb[28].mxu1 %v7381_v13  ;;  %2831 = vmatmul.mubr.bf16.vlgmr.msra.gmra.mrb[16].mxu0 %v7381_v13 }
 0xf21   : > { %2842 = vmatpush1.bf16.msra.mxu1 %v6221_v8  ;;  %2885 = vmatpush1.bf16.msra.mxu0 %v6224_v11  ;;  %v6305_v8 = vld [vmem:[%s7068_s29 + $0x3f0] ss:$80 sps:$4 sm:$0xff]   ;;  %v6308_v11 = vld [vmem:[%s7068_s29 + $0x3f8] ss:$80 sps:$4 sm:$0xff]  }
 0xf22   : > { %2843 = vmatprep.subr.bf16.mxu1 %v6229_v15  ;;  %2886 = vmatprep.subr.bf16.mxu0 %v6232_v16  ;;  %v6313_v15 = vld [vmem:[%s7068_s29 + $0x494] ss:$80 sps:$4 sm:$0xff]   ;;  %v6316_v16 = vld [vmem:[%s7068_s29 + $0x49c] ss:$80 sps:$4 sm:$0xff]  }
 0xf23   : > { %2873 = vmatprep.mubr.bf16.mxu1 %v6796_v33  ;;  %2916 = vmatprep.mubr.bf16.mxu0 %v6796_v33 }
 0xf25   : > { %2844 = vmatpush1.bf16.msra.mxu1 %v6227_v18  ;;  %2887 = vmatpush1.bf16.msra.mxu0 %v6230_v19  ;;  %v6311_v18 = vld [vmem:[%s7068_s29 + $0x490] ss:$80 sps:$4 sm:$0xff]   ;;  %v6314_v19 = vld [vmem:[%s7068_s29 + $0x498] ss:$80 sps:$4 sm:$0xff]  }
 0xf26   : > { %2845 = vmatprep.subr.bf16.mxu1 %v6235_v20  ;;  %2888 = vmatprep.subr.bf16.mxu0 %v6238_v21  ;;  %v6319_v20 = vld [vmem:[%s7068_s29 + $0x44] ss:$80 sps:$4 sm:$0xff]   ;;  %v6322_v21 = vld [vmem:[%s7068_s29 + $0x4c] ss:$80 sps:$4 sm:$0xff]  }
 0xf29   : > { %2846 = vmatpush1.bf16.msra.mxu1 %v6233_v22  ;;  %2889 = vmatpush1.bf16.msra.mxu0 %v6236_v23  ;;  %v6317_v22 = vld [vmem:[%s7068_s29 + $0x40] ss:$80 sps:$4 sm:$0xff]   ;;  %v6320_v23 = vld [vmem:[%s7068_s29 + $0x48] ss:$80 sps:$4 sm:$0xff]  }
 0xf2a   : > { %2847 = vmatprep.subr.bf16.mxu1 %v6241_v17  ;;  %2890 = vmatprep.subr.bf16.mxu0 %v6244_v24  ;;  %v6325_v17 = vld [vmem:[%s7068_s29 + $0xe4] ss:$80 sps:$4 sm:$0xff]   ;;  %v6328_v24 = vld [vmem:[%s7068_s29 + $0xec] ss:$80 sps:$4 sm:$0xff]  }
 0xf2d   : > { %2848 = vmatpush1.bf16.msra.mxu1 %v6239_v25  ;;  %2891 = vmatpush1.bf16.msra.mxu0 %v6242_v26  ;;  %v6323_v25 = vld [vmem:[%s7068_s29 + $0xe0] ss:$80 sps:$4 sm:$0xff]   ;;  %v6326_v26 = vld [vmem:[%s7068_s29 + $0xe8] ss:$80 sps:$4 sm:$0xff]  }
 0xf2e   : > { %2849 = vmatprep.subr.bf16.mxu1 %v6247_v27  ;;  %2892 = vmatprep.subr.bf16.mxu0 %v6250_v28  ;;  %v6331_v27 = vld [vmem:[%s7068_s29 + $0x184] ss:$80 sps:$4 sm:$0xff]   ;;  %v6334_v28 = vld [vmem:[%s7068_s29 + $0x18c] ss:$80 sps:$4 sm:$0xff]  }
 0xf31   : > { %2850 = vmatpush1.bf16.msra.mxu1 %v6245_v29  ;;  %2893 = vmatpush1.bf16.msra.mxu0 %v6248_v14  ;;  %v6329_v29 = vld [vmem:[%s7068_s29 + $0x180] ss:$80 sps:$4 sm:$0xff]   ;;  %v6332_v14 = vld [vmem:[%s7068_s29 + $0x188] ss:$80 sps:$4 sm:$0xff]  }
 0xf32   : > { %2851 = vmatprep.subr.bf16.mxu1 %v6253_v30  ;;  %2894 = vmatprep.subr.bf16.mxu0 %v6256_v31  ;;  %v6337_v30 = vld [vmem:[%s7068_s29 + $0x224] ss:$80 sps:$4 sm:$0xff]   ;;  %v6340_v31 = vld [vmem:[%s7068_s29 + $0x22c] ss:$80 sps:$4 sm:$0xff]  }
 0xf35   : > { %2852 = vmatpush1.bf16.msra.mxu1 %v6251_v32  ;;  %2895 = vmatpush1.bf16.msra.mxu0 %v6254_v35  ;;  %v6335_v32 = vld [vmem:[%s7068_s29 + $0x220] ss:$80 sps:$4 sm:$0xff]   ;;  %v6338_v35 = vld [vmem:[%s7068_s29 + $0x228] ss:$80 sps:$4 sm:$0xff]  }
 0xf36   : > { %2853 = vmatprep.subr.bf16.mxu1 %v6259_v36  ;;  %2896 = vmatprep.subr.bf16.mxu0 %v6262_v37  ;;  %v6346_v36 = vld [vmem:[%s7068_s29 + $0x2cc] ss:$80 sps:$4 sm:$0xff]   ;;  %v6341_v37 = vld [vmem:[%s7068_s29 + $0x2c0] ss:$80 sps:$4 sm:$0xff]  }
 0xf39   : > { %2854 = vmatpush1.bf16.msra.mxu1 %v6257_v38  ;;  %2897 = vmatpush1.bf16.msra.mxu0 %v6260_v39  ;;  %v6344_v38 = vld [vmem:[%s7068_s29 + $0x2c8] ss:$80 sps:$4 sm:$0xff]   ;;  %v6349_v39 = vld [vmem:[%s7068_s29 + $0x364] ss:$80 sps:$4 sm:$0xff]  }
 0xf3a   : > { %2855 = vmatprep.subr.bf16.mxu1 %v6265_v40  ;;  %2898 = vmatprep.subr.bf16.mxu0 %v6268_v41  ;;  %v6352_v40 = vld [vmem:[%s7068_s29 + $0x36c] ss:$80 sps:$4 sm:$0xff]   ;;  %v6347_v41 = vld [vmem:[%s7068_s29 + $0x360] ss:$80 sps:$4 sm:$0xff]  }
 0xf3d   : > { %2856 = vmatpush1.bf16.msra.mxu1 %v6263_v42  ;;  %2899 = vmatpush1.bf16.msra.mxu0 %v6266_v43  ;;  %v6350_v42 = vld [vmem:[%s7068_s29 + $0x368] ss:$80 sps:$4 sm:$0xff]   ;;  %v6355_v43 = vld [vmem:[%s7068_s29 + $0x404] ss:$80 sps:$4 sm:$0xff]  }
 0xf3e   : > { %3505 = vmatprep.subr.bf16.mxu1 %v6271_v44  ;;  %3548 = vmatprep.subr.bf16.mxu0 %v6274_v6  ;;  %v6358_v44 = vld [vmem:[%s7068_s29 + $0x40c] ss:$80 sps:$4 sm:$0xff]   ;;  %v6353_v6 = vld [vmem:[%s7068_s29 + $0x400] ss:$80 sps:$4 sm:$0xff]  }
 0xf40   : > { %2874 = vmatmul.mubr.bf16.vlgmr.msra.gmra.mrb[32].mxu1 %v7381_v13  ;;  %2917 = vmatmul.mubr.bf16.vlgmr.msra.gmra.mrb[20].mxu0 %v7381_v13 }
 0xf41   : > { %3506 = vmatpush1.bf16.msra.mxu1 %v6269_v10  ;;  %3549 = vmatpush1.bf16.msra.mxu0 %v6272_v12  ;;  %v6356_v10 = vld [vmem:[%s7068_s29 + $0x408] ss:$80 sps:$4 sm:$0xff]   ;;  %v6361_v12 = vld [vmem:[%s7068_s29 + $0x4a4] ss:$80 sps:$4 sm:$0xff]  }
 0xf42   : > { %3507 = vmatprep.subr.bf16.mxu1 %v6277_v45  ;;  %3550 = vmatprep.subr.bf16.mxu0 %v6280_v46  ;;  %v6364_v45 = vld [vmem:[%s7068_s29 + $0x4ac] ss:$80 sps:$4 sm:$0xff]   ;;  %v6359_v46 = vld [vmem:[%s7068_s29 + $0x4a0] ss:$80 sps:$4 sm:$0xff]  }
 0xf43   : > { %3537 = vmatprep.mubr.bf16.mxu1 %v6796_v33  ;;  %3580 = vmatprep.mubr.bf16.mxu0 %v6796_v33 }
 0xf45   : > { %3508 = vmatpush1.bf16.msra.mxu1 %v6275_v48  ;;  %3551 = vmatpush1.bf16.msra.mxu0 %v6278_v50  ;;  %v6362_v48 = vld [vmem:[%s7068_s29 + $0x4a8] ss:$80 sps:$4 sm:$0xff]   ;;  %v6365_v50 = vld [vmem:[%s7074_s20 + $0x240] sm:$0xff]  }
 0xf46   : > { %3509 = vmatprep.subr.bf16.mxu1 %v6283_v51  ;;  %3552 = vmatprep.subr.bf16.mxu0 %v6286_v34  ;;  %v6366_v51 = vld [vmem:[%s7074_s20 + $0x2c0] sm:$0xff]  }
 0xf47   : > { %v6367_v34 = vld [vmem:[%s7074_s20 + $0x200] sm:$0xff]  }
 0xf49   : > { %3510 = vmatpush1.bf16.msra.mxu1 %v6281_v52  ;;  %3553 = vmatpush1.bf16.msra.mxu0 %v6284_v53  ;;  %v6368_v52 = vld [vmem:[%s7074_s20 + $0x280] sm:$0xff]   ;;  %v6369_v53 = vld [vmem:[%s7074_s20 + $0x248] sm:$0xff]  }
 0xf4a   : > { %3511 = vmatprep.subr.bf16.mxu1 %v6289_v4  ;;  %3554 = vmatprep.subr.bf16.mxu0 %v6292_v54  ;;  %v6370_v4 = vld [vmem:[%s7074_s20 + $0x2c8] sm:$0xff]  }
 0xf4b   : > { %v6371_v54 = vld [vmem:[%s7074_s20 + $0x208] sm:$0xff]  }
 0xf4d   : > { %3512 = vmatpush1.bf16.msra.mxu1 %v6287_v55  ;;  %3555 = vmatpush1.bf16.msra.mxu0 %v6290_v56  ;;  %v6372_v55 = vld [vmem:[%s7074_s20 + $0x288] sm:$0xff]   ;;  %v6374_v56 = vld [vmem:[%s7074_s20 + $0x2d0] sm:$0xff]  }
 0xf4e   : > { %3513 = vmatprep.subr.bf16.mxu1 %v6295_v57  ;;  %3556 = vmatprep.subr.bf16.mxu0 %v6298_v58  ;;  %v6375_v57 = vld [vmem:[%s7074_s20 + $0x210] sm:$0xff]  }
 0xf4f   : > { %v6376_v58 = vld [vmem:[%s7074_s20 + $0x290] sm:$0xff]  }
 0xf51   : > { %3514 = vmatpush1.bf16.msra.mxu1 %v6293_v59  ;;  %3557 = vmatpush1.bf16.msra.mxu0 %v6296_v60  ;;  %v6377_v59 = vld [vmem:[%s7074_s20 + $0x258] sm:$0xff]  }
 0xf52   : > { %3515 = vmatprep.subr.bf16.mxu1 %v6301_v49  ;;  %3558 = vmatprep.subr.bf16.mxu0 %v6304_v63  ;;  %v6378_v60 = vld [vmem:[%s7074_s20 + $0x2d8] sm:$0xff]  }
 0xf53   : > { %v6379_v49 = vld [vmem:[%s7074_s20 + $0x218] sm:$0xff]  }
 0xf54   : > { %v6380_v63 = vld [vmem:[%s7074_s20 + $0x298] sm:$0xff]  }
 0xf55   : > { %3516 = vmatpush1.bf16.msra.mxu1 %v6299_v47  ;;  %3559 = vmatpush1.bf16.msra.mxu0 %v6302_v1  ;;  %v6381_v47 = vld [vmem:[%s7074_s20 + $0x260] sm:$0xff]  }
 0xf56   : > { %3517 = vmatprep.subr.bf16.mxu1 %v6307_v2  ;;  %3560 = vmatprep.subr.bf16.mxu0 %v6310_v3  ;;  %v6382_v1 = vld [vmem:[%s7074_s20 + $0x2e0] sm:$0xff]  }
 0xf57   : > { %v6383_v2 = vld [vmem:[%s7074_s20 + $0x220] sm:$0xff]  }
 0xf58   : > { %v6384_v3 = vld [vmem:[%s7074_s20 + $0x2a0] sm:$0xff]  }
 0xf59   : > { %3518 = vmatpush1.bf16.msra.mxu1 %v6305_v8  ;;  %3561 = vmatpush1.bf16.msra.mxu0 %v6308_v11  ;;  %v6385_v8 = vld [vmem:[%s7074_s20 + $0x268] sm:$0xff]  }
 0xf5a   : > { %3519 = vmatprep.subr.bf16.mxu1 %v6313_v15  ;;  %3562 = vmatprep.subr.bf16.mxu0 %v6316_v16  ;;  %v6386_v11 = vld [vmem:[%s7074_s20 + $0x2e8] sm:$0xff]  }
 0xf5b   : > { %v6387_v15 = vld [vmem:[%s7074_s20 + $0x228] sm:$0xff]  }
 0xf5c   : > { %v6388_v16 = vld [vmem:[%s7074_s20 + $0x2a8] sm:$0xff]  }
 0xf5d   : > { %3520 = vmatpush1.bf16.msra.mxu1 %v6311_v18  ;;  %3563 = vmatpush1.bf16.msra.mxu0 %v6314_v19  ;;  %v6389_v18 = vld [vmem:[%s7074_s20 + $0x270] sm:$0xff]  }
 0xf5e   : > { %3591 = vmatprep.subr.bf16.mxu1 %v6319_v20  ;;  %3634 = vmatprep.subr.bf16.mxu0 %v6322_v21  ;;  %v6390_v19 = vld [vmem:[%s7074_s20 + $0x2f0] sm:$0xff]  }
 0xf5f   : > { %v6391_v20 = vld [vmem:[%s7074_s20 + $0x230] sm:$0xff]  }
 0xf60   : > { %3538 = vmatmul.mubr.bf16.vlgmr.msra.gmra.mrb[36].mxu1 %v7381_v13  ;;  %3581 = vmatmul.mubr.bf16.vlgmr.msra.gmra.mrb[24].mxu0 %v7381_v13  ;;  %v6392_v21 = vld [vmem:[%s7074_s20 + $0x2b0] sm:$0xff]  }
 0xf61   : > { %3592 = vmatpush1.bf16.msra.mxu1 %v6317_v22  ;;  %3635 = vmatpush1.bf16.msra.mxu0 %v6320_v23  ;;  %v6393_v22 = vld [vmem:[%s7074_s20 + $0x278] sm:$0xff]  }
 0xf62   : > { %3593 = vmatprep.subr.bf16.mxu1 %v6325_v17  ;;  %3636 = vmatprep.subr.bf16.mxu0 %v6328_v24  ;;  %v6394_v23 = vld [vmem:[%s7074_s20 + $0x2f8] sm:$0xff]  }
 0xf63   : > { %3623 = vmatprep.mubr.bf16.mxu1 %v6796_v33  ;;  %3666 = vmatprep.mubr.bf16.mxu0 %v6796_v33  ;;  %v6343_v33 = vld [vmem:[%s7068_s29 + $0x2c4] ss:$80 sps:$4 sm:$0xff]   ;;  %v6395_v17 = vld [vmem:[%s7074_s20 + $0x238] sm:$0xff]  }
 0xf64   : > { %v6396_v24 = vld [vmem:[%s7074_s20 + $0x2b8] sm:$0xff]  }
 0xf65   : > { %3594 = vmatpush1.bf16.msra.mxu1 %v6323_v25  ;;  %3637 = vmatpush1.bf16.msra.mxu0 %v6326_v26  ;;  %v6397_v25 = vld [vmem:[%s7074_s20 + $0x340] sm:$0xff]  }
 0xf66   : > { %3595 = vmatprep.subr.bf16.mxu1 %v6331_v27  ;;  %3638 = vmatprep.subr.bf16.mxu0 %v6334_v28  ;;  %v6398_v26 = vld [vmem:[%s7074_s20 + $0x3c0] sm:$0xff]   ;;  %v2409_v28 = vsub.s32 3, %v7135_v61 }
 0xf67   : > { %v2393_v27 = vld [vmem:[%s7076_s21 + $0x6] sm:$0xff] }
 0xf69   : > { %3596 = vmatpush1.bf16.msra.mxu1 %v6329_v29  ;;  %3639 = vmatpush1.bf16.msra.mxu0 %v6332_v14  ;;  %v2398_v29 = vrot.slane %v2393_v27, %v7138_v62  ;;  %v2406_v14 = vrot.slane %v2393_v27, %v7155_v9 }
 0xf6a   : > { %3597 = vmatprep.subr.bf16.mxu1 %v6337_v30  ;;  %3640 = vmatprep.subr.bf16.mxu0 %v6340_v31  ;;  %v2402_v30 = vrot.slane %v2393_v27, %v7142_v0  ;;  %v2410_v31 = vrot.slane %v2393_v27, %v2409_v28 }
 0xf6d   : > { %3598 = vmatpush1.bf16.msra.mxu1 %v6335_v32  ;;  %3641 = vmatpush1.bf16.msra.mxu0 %v6338_v35 }
 0xf6e   : > { %3599 = vmatprep.subr.bf16.mxu1 %v6343_v33  ;;  %3642 = vmatprep.subr.bf16.mxu0 %v6346_v36 }
 0xf71   : > { %3600 = vmatpush1.bf16.msra.mxu1 %v6341_v37  ;;  %3643 = vmatpush1.bf16.msra.mxu0 %v6344_v38 }
 0xf72   : > { %3601 = vmatprep.subr.bf16.mxu1 %v6349_v39  ;;  %3644 = vmatprep.subr.bf16.mxu0 %v6352_v40 }
 0xf75   : > { %3602 = vmatpush1.bf16.msra.mxu1 %v6347_v41  ;;  %3645 = vmatpush1.bf16.msra.mxu0 %v6350_v42 }
 0xf76   : > { %3603 = vmatprep.subr.bf16.mxu1 %v6355_v43  ;;  %3646 = vmatprep.subr.bf16.mxu0 %v6358_v44 }
 0xf79   : > { %3604 = vmatpush1.bf16.msra.mxu1 %v6353_v6  ;;  %3647 = vmatpush1.bf16.msra.mxu0 %v6356_v10 }
 0xf7a   : > { %3605 = vmatprep.subr.bf16.mxu1 %v6361_v12  ;;  %3648 = vmatprep.subr.bf16.mxu0 %v6364_v45 }
 0xf7d   : > { %3606 = vmatpush1.bf16.msra.mxu1 %v6359_v46  ;;  %3649 = vmatpush1.bf16.msra.mxu0 %v6362_v48 }
 0xf7e   : > { %5705 = vmatprep.subr.bf16.mxu1 %v6365_v50  ;;  %5727 = vmatprep.subr.bf16.mxu0 %v6366_v51 }
 0xf80   : > { %3624 = vmatmul.mubr.bf16.vlgmr.msra.gmra.mrb[40].mxu1 %v7381_v13  ;;  %3667 = vmatmul.mubr.bf16.vlgmr.msra.gmra.mrb[28].mxu0 %v7381_v13  ;;  %v6373_v13 = vld [vmem:[%s7074_s20 + $0x250] sm:$0xff]  }
 0xf81   : > { %5706 = vmatpush3.bf16.msra.mxu1 %v6367_v34  ;;  %5728 = vmatpush3.bf16.msra.mxu0 %v6368_v52 }
 0xf82   : > { %5707 = vmatprep.subr.bf16.mxu1 %v6369_v53  ;;  %5729 = vmatprep.subr.bf16.mxu0 %v6370_v4 }
 0xf85   : > { %5708 = vmatpush3.bf16.msra.mxu1 %v6371_v54  ;;  %5730 = vmatpush3.bf16.msra.mxu0 %v6372_v55 }
 0xf86   : > { %5709 = vmatprep.subr.bf16.mxu1 %v6373_v13  ;;  %5731 = vmatprep.subr.bf16.mxu0 %v6374_v56 }
 0xf89   : > { %5710 = vmatpush3.bf16.msra.mxu1 %v6375_v57  ;;  %5732 = vmatpush3.bf16.msra.mxu0 %v6376_v58  ;;  %v2413_v57 = vsub.s32 4, %v7135_v61  ;;  %v2421_v58 = vsub.s32 6, %v7135_v61 }
 0xf8a   : > { %5711 = vmatprep.subr.bf16.mxu1 %v6377_v59  ;;  %5733 = vmatprep.subr.bf16.mxu0 %v6378_v60  ;;  %v2417_v59 = vsub.s32 5, %v7135_v61  ;;  %v2425_v60 = vsub.s32 7, %v7135_v61 }
 0xf8d   : > { %5712 = vmatpush3.bf16.msra.mxu1 %v6379_v49  ;;  %5734 = vmatpush3.bf16.msra.mxu0 %v6380_v63  ;;  %v2414_v49 = vrot.slane %v2393_v27, %v2413_v57  ;;  %v2422_v63 = vrot.slane %v2393_v27, %v2421_v58 }
 0xf8e   : > { %5713 = vmatprep.subr.bf16.mxu1 %v6381_v47  ;;  %5735 = vmatprep.subr.bf16.mxu0 %v6382_v1  ;;  %v2418_v47 = vrot.slane %v2393_v27, %v2417_v59  ;;  %v2426_v1 = vrot.slane %v2393_v27, %v2425_v60 }
 0xf91   : > { %5714 = vmatpush3.bf16.msra.mxu1 %v6383_v2  ;;  %5736 = vmatpush3.bf16.msra.mxu0 %v6384_v3 }
 0xf92   : > { %5715 = vmatprep.subr.bf16.mxu1 %v6385_v8  ;;  %5737 = vmatprep.subr.bf16.mxu0 %v6386_v11 }
 0xf95   : > { %5716 = vmatpush3.bf16.msra.mxu1 %v6387_v15  ;;  %5738 = vmatpush3.bf16.msra.mxu0 %v6388_v16 }
 0xf96   : > { %5717 = vmatprep.subr.bf16.mxu1 %v6389_v18  ;;  %5739 = vmatprep.subr.bf16.mxu0 %v6390_v19 }
 0xf99   : > { %5718 = vmatpush3.bf16.msra.mxu1 %v6391_v20  ;;  %5740 = vmatpush3.bf16.msra.mxu0 %v6392_v21 }
 0xf9a   : > { %5719 = vmatprep.subr.bf16.mxu1 %v6393_v22  ;;  %5741 = vmatprep.subr.bf16.mxu0 %v6394_v23 }
 0xf9d   : > { %5720 = vmatpush3.bf16.msra.mxu1 %v6395_v17  ;;  %5742 = vmatpush3.bf16.msra.mxu0 %v6396_v24 }
 0xf9e   : > { %5749 = vmatprep.subr.bf16.mxu1 %v6397_v25  ;;  %5771 = vmatprep.subr.bf16.mxu0 %v6398_v26 }
 0xff3   : > { %v2789_v32 = vpop.f32.mrb[28].mxu1  ;;  %v2832_v35 = vpop.f32.mrb[16].mxu0 }
 0xff4   : > { %v2790_v33 = vadd.f32 %v2789_v32, %v2398_v29  ;;  %v2833_v36 = vadd.f32 %v2832_v35, %v2406_v14  ;;  %v2791_v37 = vpop.f32.mrb[29].mxu1  ;;  %v2834_v38 = vpop.f32.mrb[17].mxu0 }
 0xff5   : > { %v2792_v39 = vadd.f32 %v2791_v37, %v2402_v30  ;;  %v2835_v40 = vadd.f32 %v2834_v38, %v2410_v31  ;;  %v2793_v41 = vpop.f32.mrb[30].mxu1  ;;  %v2836_v42 = vpop.f32.mrb[18].mxu0 }
 0xff6   : > { %v2794_v43 = vadd.f32 %v2793_v41, %v2398_v29  ;;  %v2837_v44 = vadd.f32 %v2836_v42, %v2406_v14  ;;  %v2795_v6 = vpop.f32.mrb[31].mxu1  ;;  %v2838_v10 = vpop.f32.mrb[19].mxu0  ;;  %v2927_v46 = vmax.f32 %v2790_v33, 0.0  ;;  %v2929_v48 = vmax.f32 %v2833_v36, 0.0 }
 0xff7   : > { %v2796_v12 = vadd.f32 %v2795_v6, %v2402_v30  ;;  %v2839_v45 = vadd.f32 %v2838_v10, %v2410_v31  ;;  %v2928_v34 = vmax.f32 %v2792_v39, 0.0  ;;  %v2930_v52 = vmax.f32 %v2835_v40, 0.0  ;;  %v7559_v40 = vld [vmem:[%s7076_s21 + $0xe] sm:$0xff] }
 0xff8   : > { %v2935_v50 = vmax.f32 %v2794_v43, 0.0  ;;  %v2937_v51 = vmax.f32 %v2837_v44, 0.0  ;;  %v3148_v41 = vrot.slane %v7559_v40, %v7138_v62  ;;  %v3156_v42 = vrot.slane %v7559_v40, %v7155_v9 }
 0xff9   : > { %v2936_v53 = vmax.f32 %v2796_v12, 0.0  ;;  %v2938_v4 = vmax.f32 %v2839_v45, 0.0  ;;  %v3152_v43 = vrot.slane %v7559_v40, %v7142_v0  ;;  %v3160_v44 = vrot.slane %v7559_v40, %v2409_v28 }
 0xffa   : > { %v7530_v54 = vpack.c.bf16 %v2935_v50, %v2927_v46  ;;  %v7532_v55 = vpack.c.bf16 %v2937_v51, %v2929_v48 }
 0xffb   : > { %v7534_v13 = vpack.c.bf16 %v2936_v53, %v2928_v34  ;;  %v7536_v56 = vpack.c.bf16 %v2938_v4, %v2930_v52 }
0x1013   : > { %v2875_v2 = vpop.f32.mrb[32].mxu1  ;;  %v2918_v3 = vpop.f32.mrb[20].mxu0 }
0x1014   : > { %v2876_v8 = vadd.f32 %v2875_v2, %v2414_v49  ;;  %v2919_v11 = vadd.f32 %v2918_v3, %v2422_v63  ;;  %v2877_v15 = vpop.f32.mrb[33].mxu1  ;;  %v2920_v16 = vpop.f32.mrb[21].mxu0 }
0x1015   : > { %v2878_v18 = vadd.f32 %v2877_v15, %v2418_v47  ;;  %v2921_v19 = vadd.f32 %v2920_v16, %v2426_v1  ;;  %v2879_v20 = vpop.f32.mrb[34].mxu1  ;;  %v2922_v21 = vpop.f32.mrb[22].mxu0 }
0x1016   : > { %v2880_v22 = vadd.f32 %v2879_v20, %v2414_v49  ;;  %v2923_v23 = vadd.f32 %v2922_v21, %v2422_v63  ;;  %v2881_v17 = vpop.f32.mrb[35].mxu1  ;;  %v2924_v24 = vpop.f32.mrb[23].mxu0  ;;  %v2931_v29 = vmax.f32 %v2876_v8, 0.0  ;;  %v2933_v14 = vmax.f32 %v2919_v11, 0.0 }
0x1017   : > { %v2882_v25 = vadd.f32 %v2881_v17, %v2418_v47  ;;  %v2925_v26 = vadd.f32 %v2924_v24, %v2426_v1  ;;  %v2932_v31 = vmax.f32 %v2878_v18, 0.0  ;;  %v2934_v32 = vmax.f32 %v2921_v19, 0.0  ;;  %v6401_v17 = vld [vmem:[%s7074_s20 + $0x348] sm:$0xff]  }
0x1018   : > { %v2939_v27 = vmax.f32 %v2880_v22, 0.0  ;;  %v2941_v30 = vmax.f32 %v2923_v23, 0.0  ;;  %v6399_v22 = vld [vmem:[%s7074_s20 + $0x300] sm:$0xff]   ;;  %v6402_v24 = vld [vmem:[%s7074_s20 + $0x3c8] sm:$0xff]  }
0x1019   : > { %v2940_v35 = vmax.f32 %v2882_v25, 0.0  ;;  %v2942_v33 = vmax.f32 %v2925_v26, 0.0  ;;  %v6400_v23 = vld [vmem:[%s7074_s20 + $0x380] sm:$0xff]   ;;  %v6403_v25 = vld [vmem:[%s7074_s20 + $0x308] sm:$0xff]  }
0x101a   : > { %v7550_v36 = vpack.c.bf16 %v2939_v27, %v2931_v29  ;;  %v7552_v37 = vpack.c.bf16 %v2941_v30, %v2933_v14  ;;  %v6404_v26 = vld [vmem:[%s7074_s20 + $0x388] sm:$0xff]   ;;  %v6405_v29 = vld [vmem:[%s7074_s20 + $0x350] sm:$0xff]  }
0x101b   : > { %v7554_v38 = vpack.c.bf16 %v2940_v35, %v2932_v31  ;;  %v7556_v39 = vpack.c.bf16 %v2942_v33, %v2934_v32  ;;  %v6406_v14 = vld [vmem:[%s7074_s20 + $0x3d0] sm:$0xff]   ;;  %v6409_v31 = vld [vmem:[%s7074_s20 + $0x358] sm:$0xff]  }
0x101c   : > { %v6407_v27 = vld [vmem:[%s7074_s20 + $0x310] sm:$0xff]   ;;  %v6410_v32 = vld [vmem:[%s7074_s20 + $0x3d8] sm:$0xff]  }
0x101d   : > { %v6408_v30 = vld [vmem:[%s7074_s20 + $0x390] sm:$0xff]   ;;  %v6411_v35 = vld [vmem:[%s7074_s20 + $0x318] sm:$0xff]  }
0x101e   : > { %v6412_v33 = vld [vmem:[%s7074_s20 + $0x398] sm:$0xff]  }
0x1033   : > { %v3539_v6 = vpop.f32.mrb[36].mxu1  ;;  %v3582_v10 = vpop.f32.mrb[24].mxu0 }
0x1034   : > { %v3540_v12 = vadd.f32 %v3539_v6, %v3148_v41  ;;  %v3583_v45 = vadd.f32 %v3582_v10, %v3156_v42  ;;  %v3541_v46 = vpop.f32.mrb[37].mxu1  ;;  %v3584_v48 = vpop.f32.mrb[25].mxu0  ;;  %v6417_v6 = vld [vmem:[%s7074_s20 + $0x368] sm:$0xff]  }
0x1035   : > { %v3542_v50 = vadd.f32 %v3541_v46, %v3152_v43  ;;  %v3585_v51 = vadd.f32 %v3584_v48, %v3160_v44  ;;  %v3543_v34 = vpop.f32.mrb[38].mxu1  ;;  %v3586_v52 = vpop.f32.mrb[26].mxu0  ;;  %v6418_v10 = vld [vmem:[%s7074_s20 + $0x3e8] sm:$0xff]   ;;  %v3164_v46 = vrot.slane %v7559_v40, %v2413_v57  ;;  %v3172_v48 = vrot.slane %v7559_v40, %v2421_v58 }
0x1036   : > { %v3544_v53 = vadd.f32 %v3543_v34, %v3148_v41  ;;  %v3587_v4 = vadd.f32 %v3586_v52, %v3156_v42  ;;  %v3545_v9 = vpop.f32.mrb[39].mxu1  ;;  %v3588_v49 = vpop.f32.mrb[27].mxu0  ;;  %v3677_v28 = vmax.f32 %v3540_v12, 0.0  ;;  %v3679_v1 = vmax.f32 %v3583_v45, 0.0  ;;  %v6413_v41 = vld [vmem:[%s7074_s20 + $0x360] sm:$0xff]   ;;  %v6419_v12 = vld [vmem:[%s7074_s20 + $0x328] sm:$0xff]  }
0x1037   : > { %v3546_v63 = vadd.f32 %v3545_v9, %v3152_v43  ;;  %v3589_v47 = vadd.f32 %v3588_v49, %v3160_v44  ;;  %v3678_v8 = vmax.f32 %v3542_v50, 0.0  ;;  %v3680_v11 = vmax.f32 %v3585_v51, 0.0  ;;  %v6414_v42 = vld [vmem:[%s7074_s20 + $0x3e0] sm:$0xff]   ;;  %v6420_v45 = vld [vmem:[%s7074_s20 + $0x3a8] sm:$0xff]   ;;  %v6421_v50 = vld [vmem:[%s7074_s20 + $0x370] sm:$0xff]  }
0x1038   : > { %v3685_v2 = vmax.f32 %v3544_v53, 0.0  ;;  %v3687_v3 = vmax.f32 %v3587_v4, 0.0  ;;  %v6415_v43 = vld [vmem:[%s7074_s20 + $0x320] sm:$0xff]   ;;  %v6422_v51 = vld [vmem:[%s7074_s20 + $0x3f0] sm:$0xff]   ;;  %v3168_v34 = vrot.slane %v7559_v40, %v2417_v59  ;;  %v3176_v52 = vrot.slane %v7559_v40, %v2425_v60  ;;  %v6426_v59 = vld [vmem:[%s7074_s20 + $0x3f8] sm:$0xff]  }
0x1039   : > { %v3686_v15 = vmax.f32 %v3546_v63, 0.0  ;;  %v3688_v16 = vmax.f32 %v3589_v47, 0.0  ;;  %v6416_v44 = vld [vmem:[%s7074_s20 + $0x3a0] sm:$0xff]   ;;  %v6423_v4 = vld [vmem:[%s7074_s20 + $0x330] sm:$0xff]  }
0x103a   : > { %v3693_v18 = vpack.c.bf16 %v3685_v2, %v3677_v28  ;;  %v3695_v19 = vpack.c.bf16 %v3687_v3, %v3679_v1  ;;  %v6424_v9 = vld [vmem:[%s7074_s20 + $0x3b0] sm:$0xff]   ;;  %v6425_v28 = vld [vmem:[%s7074_s20 + $0x378] sm:$0xff]  }
0x103b   : > { %v3694_v20 = vpack.c.bf16 %v3686_v15, %v3678_v8  ;;  %v3696_v21 = vpack.c.bf16 %v3688_v16, %v3680_v11 }
0x103d   : > { %4245 = vmatprep.mubr.bf16.mxu1 %v3694_v20  ;;  %4286 = vmatprep.mubr.bf16.mxu0 %v3696_v21 }
0x103e   : > { %4246 = vmatmul.mubr.bf16.vlgmr.msra.gmra.mrb[44].mxu1 %v3693_v18  ;;  %4287 = vmatmul.mubr.bf16.vlgmr.msra.gmra.mrb[32].mxu0 %v3695_v19  ;;  %v6427_v18 = vld [vmem:[%s7074_s20 + $0x338] sm:$0xff]  }
0x103f   : > { %5750 = vmatpush3.bf16.msra.mxu1 %v6399_v22  ;;  %5772 = vmatpush3.bf16.msra.mxu0 %v6400_v23  ;;  %v6428_v19 = vld [vmem:[%s7074_s20 + $0x3b8] sm:$0xff]  }
0x1040   : > { %5751 = vmatprep.subr.bf16.mxu1 %v6401_v17  ;;  %5773 = vmatprep.subr.bf16.mxu0 %v6402_v24  ;;  %v6429_v17 = vld [vmem:[%s7074_s20 + $0x40] sm:$0xff]  }
0x1041   : > { %v6430_v24 = vld [vmem:[%s7074_s20 + $0xc0] sm:$0xff]  }
0x1043   : > { %5752 = vmatpush3.bf16.msra.mxu1 %v6403_v25  ;;  %5774 = vmatpush3.bf16.msra.mxu0 %v6404_v26 }
0x1044   : > { %5753 = vmatprep.subr.bf16.mxu1 %v6405_v29  ;;  %5775 = vmatprep.subr.bf16.mxu0 %v6406_v14 }
0x1047   : > { %5754 = vmatpush3.bf16.msra.mxu1 %v6407_v27  ;;  %5776 = vmatpush3.bf16.msra.mxu0 %v6408_v30 }
0x1048   : > { %5755 = vmatprep.subr.bf16.mxu1 %v6409_v31  ;;  %5777 = vmatprep.subr.bf16.mxu0 %v6410_v32 }
0x104b   : > { %5756 = vmatpush3.bf16.msra.mxu1 %v6411_v35  ;;  %5778 = vmatpush3.bf16.msra.mxu0 %v6412_v33  ;;  %v6431_v35 = vld [vmem:[%s7074_s20] sm:$0xff]  }
0x104c   : > { %5757 = vmatprep.subr.bf16.mxu1 %v6413_v41  ;;  %5779 = vmatprep.subr.bf16.mxu0 %v6414_v42  ;;  %v6432_v33 = vld [vmem:[%s7074_s20 + $0x80] sm:$0xff]   ;;  %v6433_v41 = vld [vmem:[%s7074_s20 + $0x48] sm:$0xff]  }
0x104d   : > { %v6434_v42 = vld [vmem:[%s7074_s20 + $0xc8] sm:$0xff]  }
0x104f   : > { %5758 = vmatpush3.bf16.msra.mxu1 %v6415_v43  ;;  %5780 = vmatpush3.bf16.msra.mxu0 %v6416_v44  ;;  %v6435_v43 = vld [vmem:[%s7074_s20 + $0x8] sm:$0xff]  }
0x1050   : > { %5759 = vmatprep.subr.bf16.mxu1 %v6417_v6  ;;  %5781 = vmatprep.subr.bf16.mxu0 %v6418_v10  ;;  %v6436_v44 = vld [vmem:[%s7074_s20 + $0x88] sm:$0xff]   ;;  %v6437_v6 = vld [vmem:[%s7074_s20 + $0x50] sm:$0xff]  }
0x1051   : > { %v6438_v10 = vld [vmem:[%s7074_s20 + $0xd0] sm:$0xff]  }
0x1053   : > { %5760 = vmatpush3.bf16.msra.mxu1 %v6419_v12  ;;  %5782 = vmatpush3.bf16.msra.mxu0 %v6420_v45  ;;  %v3625_v53 = vpop.f32.mrb[40].mxu1  ;;  %v3668_v57 = vpop.f32.mrb[28].mxu0  ;;  %v6439_v12 = vld [vmem:[%s7074_s20 + $0x10] sm:$0xff]  }
0x1054   : > { %v3626_v49 = vadd.f32 %v3625_v53, %v3164_v46  ;;  %v3669_v58 = vadd.f32 %v3668_v57, %v3172_v48  ;;  %v3627_v63 = vpop.f32.mrb[41].mxu1  ;;  %v3670_v47 = vpop.f32.mrb[29].mxu0  ;;  %5761 = vmatprep.subr.bf16.mxu1 %v6421_v50  ;;  %5783 = vmatprep.subr.bf16.mxu0 %v6422_v51  ;;  %v6440_v45 = vld [vmem:[%s7074_s20 + $0x90] sm:$0xff]   ;;  %v6445_v50 = vld [vmem:[%s7074_s20 + $0x60] sm:$0xff]   ;;  %v6449_v53 = vld [vmem:[%s7074_s20 + $0x68] sm:$0xff]  }
0x1055   : > { %v3628_v1 = vadd.f32 %v3627_v63, %v3168_v34  ;;  %v3671_v61 = vadd.f32 %v3670_v47, %v3176_v52  ;;  %v3629_v2 = vpop.f32.mrb[42].mxu1  ;;  %v3672_v60 = vpop.f32.mrb[30].mxu0  ;;  %v6446_v51 = vld [vmem:[%s7074_s20 + $0xe0] sm:$0xff]   ;;  %v6450_v57 = vld [vmem:[%s7074_s20 + $0xe8] sm:$0xff]   ;;  %v6455_v63 = vld [vmem:[%s7074_s20 + $0x30] sm:$0xff]  }
0x1056   : > { %v3630_v40 = vadd.f32 %v3629_v2, %v3164_v46  ;;  %v3673_v3 = vadd.f32 %v3672_v60, %v3172_v48  ;;  %v3631_v8 = vpop.f32.mrb[43].mxu1  ;;  %v3674_v11 = vpop.f32.mrb[31].mxu0  ;;  %v3681_v20 = vmax.f32 %v3626_v49, 0.0  ;;  %v3683_v21 = vmax.f32 %v3669_v58, 0.0  ;;  %v6441_v46 = vld [vmem:[%s7074_s20 + $0x58] sm:$0xff]   ;;  %v6453_v49 = vld [vmem:[%s7074_s20 + $0x70] sm:$0xff]  }
0x1057   : > { %v3632_v15 = vadd.f32 %v3631_v8, %v3168_v34  ;;  %v3675_v16 = vadd.f32 %v3674_v11, %v3176_v52  ;;  %5762 = vmatpush3.bf16.msra.mxu1 %v6423_v4  ;;  %5784 = vmatpush3.bf16.msra.mxu0 %v6424_v9  ;;  %v3682_v25 = vmax.f32 %v3628_v1, 0.0  ;;  %v3684_v26 = vmax.f32 %v3671_v61, 0.0  ;;  %v6444_v48 = vld [vmem:[%s7074_s20 + $0x98] sm:$0xff]   ;;  %v6447_v34 = vld [vmem:[%s7074_s20 + $0x20] sm:$0xff]   ;;  %v6451_v4 = vld [vmem:[%s7074_s20 + $0x28] sm:$0xff]  }
0x1058   : > { %v3689_v22 = vmax.f32 %v3630_v40, 0.0  ;;  %v3691_v23 = vmax.f32 %v3673_v3, 0.0  ;;  %5763 = vmatprep.subr.bf16.mxu1 %v6425_v28  ;;  %5785 = vmatprep.subr.bf16.mxu0 %v6426_v59  ;;  %v6448_v52 = vld [vmem:[%s7074_s20 + $0xa0] sm:$0xff]   ;;  %v6452_v9 = vld [vmem:[%s7074_s20 + $0xa8] sm:$0xff]   ;;  %v6454_v58 = vld [vmem:[%s7074_s20 + $0xf0] sm:$0xff]  }
0x1059   : > { %v3690_v29 = vmax.f32 %v3632_v15, 0.0  ;;  %v3692_v14 = vmax.f32 %v3675_v16, 0.0  ;;  %v6456_v47 = vld [vmem:[%s7074_s20 + $0xb0] sm:$0xff]   ;;  %v6457_v28 = vld [vmem:[%s7074_s20 + $0x78] sm:$0xff]   ;;  %v6461_v2 = vld [vmem:[%s7074_s20 + $0x140] sm:$0xff]  }
0x105a   : > { %v3697_v27 = vpack.c.bf16 %v3689_v22, %v3681_v20  ;;  %v3699_v30 = vpack.c.bf16 %v3691_v23, %v3683_v21  ;;  %v6458_v59 = vld [vmem:[%s7074_s20 + $0xf8] sm:$0xff]   ;;  %v6462_v60 = vld [vmem:[%s7074_s20 + $0x1c0] sm:$0xff]   ;;  %v6465_v8 = vld [vmem:[%s7074_s20 + $0x148] sm:$0xff]  }
0x105b   : > { %v3698_v31 = vpack.c.bf16 %v3690_v29, %v3682_v25  ;;  %v3700_v32 = vpack.c.bf16 %v3692_v14, %v3684_v26  ;;  %5764 = vmatpush3.bf16.msra.mxu1 %v6427_v18  ;;  %5786 = vmatpush3.bf16.msra.mxu0 %v6428_v19  ;;  %v6459_v1 = vld [vmem:[%s7074_s20 + $0x38] sm:$0xff]   ;;  %v6463_v40 = vld [vmem:[%s7074_s20 + $0x100] sm:$0xff]   ;;  %v6466_v11 = vld [vmem:[%s7074_s20 + $0x1c8] sm:$0xff]  }
0x105c   : > { %5793 = vmatprep.subr.bf16.mxu1 %v6429_v17  ;;  %5815 = vmatprep.subr.bf16.mxu0 %v6430_v24  ;;  %v6460_v61 = vld [vmem:[%s7074_s20 + $0xb8] sm:$0xff]   ;;  %v6464_v3 = vld [vmem:[%s7074_s20 + $0x180] sm:$0xff]   ;;  %v6467_v15 = vld [vmem:[%s7074_s20 + $0x108] sm:$0xff]  }
0x105d   : > { %4327 = vmatprep.mubr.bf16.mxu1 %v3698_v31  ;;  %4368 = vmatprep.mubr.bf16.mxu0 %v3700_v32  ;;  %v6468_v16 = vld [vmem:[%s7074_s20 + $0x188] sm:$0xff]   ;;  %v6469_v18 = vld [vmem:[%s7074_s20 + $0x150] sm:$0xff]   ;;  %v6473_v19 = vld [vmem:[%s7074_s20 + $0x158] sm:$0xff]  }
0x105e   : > { %4328 = vmatmul.mubr.bf16.vlgmr.msra.gmra.mrb[48].mxu1 %v3697_v27  ;;  %4369 = vmatmul.mubr.bf16.vlgmr.msra.gmra.mrb[36].mxu0 %v3699_v30  ;;  %v6474_v20 = vld [vmem:[%s7074_s20 + $0x1d8] sm:$0xff]   ;;  %v6477_v22 = vld [vmem:[%s7074_s20 + $0x160] sm:$0xff]   ;;  %v6481_v25 = vld [vmem:[%s7074_s20 + $0x168] sm:$0xff]  }
0x105f   : > { %5794 = vmatpush3.bf16.msra.mxu1 %v6431_v35  ;;  %5816 = vmatpush3.bf16.msra.mxu0 %v6432_v33  ;;  %v6476_v21 = vld [vmem:[%s7074_s20 + $0x198] sm:$0xff]   ;;  %v6478_v23 = vld [vmem:[%s7074_s20 + $0x1e0] sm:$0xff]   ;;  %v6482_v26 = vld [vmem:[%s7074_s20 + $0x1e8] sm:$0xff]  }
0x1060   : > { %4793 = vmatprep.mubr.bf16.mxu1 %v7534_v13  ;;  %4834 = vmatprep.mubr.bf16.mxu0 %v7536_v56  ;;  %v6442_v13 = vld [vmem:[%s7074_s20 + $0xd8] sm:$0xff]   ;;  %v6479_v17 = vld [vmem:[%s7074_s20 + $0x120] sm:$0xff]   ;;  %v6483_v29 = vld [vmem:[%s7074_s20 + $0x128] sm:$0xff]  }
0x1061   : > { %5795 = vmatprep.subr.bf16.mxu1 %v6433_v41  ;;  %5817 = vmatprep.subr.bf16.mxu0 %v6434_v42  ;;  %v6443_v56 = vld [vmem:[%s7074_s20 + $0x18] sm:$0xff]   ;;  %v6480_v24 = vld [vmem:[%s7074_s20 + $0x1a0] sm:$0xff]   ;;  %v6484_v14 = vld [vmem:[%s7074_s20 + $0x1a8] sm:$0xff]  }
0x1062   : > { %v6485_v27 = vld [vmem:[%s7074_s20 + $0x170] sm:$0xff]   ;;  %v6489_v35 = vld [vmem:[%s7074_s20 + $0x178] sm:$0xff]  }
0x1063   : > { %5796 = vmatpush3.bf16.msra.mxu1 %v6435_v43  ;;  %5818 = vmatpush3.bf16.msra.mxu0 %v6436_v44  ;;  %v6486_v30 = vld [vmem:[%s7074_s20 + $0x1f0] sm:$0xff]   ;;  %v6490_v33 = vld [vmem:[%s7074_s20 + $0x1f8] sm:$0xff]  }
0x1064   : > { %5797 = vmatprep.subr.bf16.mxu1 %v6437_v6  ;;  %5819 = vmatprep.subr.bf16.mxu0 %v6438_v10  ;;  %v6487_v31 = vld [vmem:[%s7074_s20 + $0x130] sm:$0xff]   ;;  %v6491_v41 = vld [vmem:[%s7074_s20 + $0x138] sm:$0xff]  }
0x1065   : > { %v6488_v32 = vld [vmem:[%s7074_s20 + $0x1b0] sm:$0xff]   ;;  %v6492_v42 = vld [vmem:[%s7074_s20 + $0x1b8] sm:$0xff]  }
0x1067   : > { %5798 = vmatpush3.bf16.msra.mxu1 %v6439_v12  ;;  %5820 = vmatpush3.bf16.msra.mxu0 %v6440_v45 }
0x1068   : > { %5799 = vmatprep.subr.bf16.mxu1 %v6441_v46  ;;  %5821 = vmatprep.subr.bf16.mxu0 %v6442_v13 }
0x106b   : > { %5800 = vmatpush3.bf16.msra.mxu1 %v6443_v56  ;;  %5822 = vmatpush3.bf16.msra.mxu0 %v6444_v48 }
0x106c   : > { %5801 = vmatprep.subr.bf16.mxu1 %v6445_v50  ;;  %5823 = vmatprep.subr.bf16.mxu0 %v6446_v51 }
0x106f   : > { %5802 = vmatpush3.bf16.msra.mxu1 %v6447_v34  ;;  %5824 = vmatpush3.bf16.msra.mxu0 %v6448_v52 }
0x1070   : > { %5803 = vmatprep.subr.bf16.mxu1 %v6449_v53  ;;  %5825 = vmatprep.subr.bf16.mxu0 %v6450_v57 }
0x1073   : > { %5804 = vmatpush3.bf16.msra.mxu1 %v6451_v4  ;;  %5826 = vmatpush3.bf16.msra.mxu0 %v6452_v9 }
0x1074   : > { %5805 = vmatprep.subr.bf16.mxu1 %v6453_v49  ;;  %5827 = vmatprep.subr.bf16.mxu0 %v6454_v58 }
0x1077   : > { %5806 = vmatpush3.bf16.msra.mxu1 %v6455_v63  ;;  %5828 = vmatpush3.bf16.msra.mxu0 %v6456_v47 }
0x1078   : > { %5807 = vmatprep.subr.bf16.mxu1 %v6457_v28  ;;  %5829 = vmatprep.subr.bf16.mxu0 %v6458_v59 }
0x107b   : > { %5808 = vmatpush3.bf16.msra.mxu1 %v6459_v1  ;;  %5830 = vmatpush3.bf16.msra.mxu0 %v6460_v61 }
0x107c   : > { %5837 = vmatprep.subr.bf16.mxu1 %v6461_v2  ;;  %5859 = vmatprep.subr.bf16.mxu0 %v6462_v60 }
0x107e   : > { %4794 = vmatmul.mubr.bf16.vlgmr.msra.gmra.mrb[52].mxu1 %v7530_v54  ;;  %4835 = vmatmul.mubr.bf16.vlgmr.msra.gmra.mrb[40].mxu0 %v7532_v55  ;;  %v6470_v54 = vld [vmem:[%s7074_s20 + $0x1d0] sm:$0xff]  }
0x107f   : > { %5838 = vmatpush3.bf16.msra.mxu1 %v6463_v40  ;;  %4875 = vmatprep.mubr.bf16.mxu1 %v7554_v38  ;;  %v6471_v55 = vld [vmem:[%s7074_s20 + $0x110] sm:$0xff]  }
0x1080   : > { %5860 = vmatpush3.bf16.msra.mxu0 %v6464_v3  ;;  %4916 = vmatprep.mubr.bf16.mxu0 %v7556_v39  ;;  %v6472_v38 = vld [vmem:[%s7074_s20 + $0x190] sm:$0xff]   ;;  %v6475_v39 = vld [vmem:[%s7074_s20 + $0x118] sm:$0xff]  }
0x1081   : > { %5839 = vmatprep.subr.bf16.mxu1 %v6465_v8  ;;  %5861 = vmatprep.subr.bf16.mxu0 %v6466_v11 }
0x1083   : > { %5840 = vmatpush3.bf16.msra.mxu1 %v6467_v15 }
0x1084   : > { %5862 = vmatpush3.bf16.msra.mxu0 %v6468_v16  ;;  %5841 = vmatprep.subr.bf16.mxu1 %v6469_v18 }
0x1085   : > { %5863 = vmatprep.subr.bf16.mxu0 %v6470_v54 }
0x1087   : > { %5842 = vmatpush3.bf16.msra.mxu1 %v6471_v55 }
0x1088   : > { %5864 = vmatpush3.bf16.msra.mxu0 %v6472_v38  ;;  %5843 = vmatprep.subr.bf16.mxu1 %v6473_v19 }
0x1089   : > { %5865 = vmatprep.subr.bf16.mxu0 %v6474_v20 }
0x108b   : > { %5844 = vmatpush3.bf16.msra.mxu1 %v6475_v39 }
0x108c   : > { %5866 = vmatpush3.bf16.msra.mxu0 %v6476_v21  ;;  %5845 = vmatprep.subr.bf16.mxu1 %v6477_v22 }
0x108d   : > { %5867 = vmatprep.subr.bf16.mxu0 %v6478_v23 }
0x108f   : > { %5846 = vmatpush3.bf16.msra.mxu1 %v6479_v17 }
0x1090   : > { %5868 = vmatpush3.bf16.msra.mxu0 %v6480_v24  ;;  %5847 = vmatprep.subr.bf16.mxu1 %v6481_v25 }
0x1091   : > { %5869 = vmatprep.subr.bf16.mxu0 %v6482_v26 }
0x1093   : > { %5848 = vmatpush3.bf16.msra.mxu1 %v6483_v29 }
0x1094   : > { %5870 = vmatpush3.bf16.msra.mxu0 %v6484_v14  ;;  %5849 = vmatprep.subr.bf16.mxu1 %v6485_v27 }
0x1095   : > { %5871 = vmatprep.subr.bf16.mxu0 %v6486_v30 }
0x1097   : > { %5850 = vmatpush3.bf16.msra.mxu1 %v6487_v31 }
0x1098   : > { %5872 = vmatpush3.bf16.msra.mxu0 %v6488_v32  ;;  %5851 = vmatprep.subr.bf16.mxu1 %v6489_v35 }
0x1099   : > { %5873 = vmatprep.subr.bf16.mxu0 %v6490_v33 }
0x109b   : > { %5852 = vmatpush3.bf16.msra.mxu1 %v6491_v41 }
0x109c   : > { %5874 = vmatpush3.bf16.msra.mxu0 %v6492_v42  ;;  %v5608_v42 = vld [vmem:[%s7076_s21 + $0x16] ss:$0 sm:$0xff] }
0x109e   : > { %4876 = vmatmul.mubr.bf16.vlgmr.msra.gmra.mrb[56].mxu1 %v7550_v36 }
0x109f   : > { %4917 = vmatmul.mubr.bf16.vlgmr.msra.gmra.mrb[44].mxu0 %v7552_v37 }
0x1111   : > { %v5721_v43 = vpop.f32.mrb[44].mxu1  ;;  %v5743_v44 = vpop.f32.mrb[32].mxu0 }
0x1112   : > { %v5722_v6 = vpop.f32.mrb[45].mxu1  ;;  %v5744_v10 = vpop.f32.mrb[33].mxu0 }
0x1113   : > { %v5723_v12 = vadd.f32 %v5722_v6, %v5721_v43  ;;  %v5745_v45 = vadd.f32 %v5744_v10, %v5743_v44  ;;  %v5724_v46 = vpop.f32.mrb[46].mxu1  ;;  %v5746_v13 = vpop.f32.mrb[34].mxu0 }
0x1114   : > { %v5725_v56 = vpop.f32.mrb[47].mxu1  ;;  %v5747_v48 = vpop.f32.mrb[35].mxu0 }
0x1115   : > { %v4289_v50 = vadd.f32 %v5745_v45, %v5723_v12  ;;  %v5726_v51 = vadd.f32 %v5725_v56, %v5724_v46  ;;  %v5748_v34 = vadd.f32 %v5747_v48, %v5746_v13 }
0x1117   : > { %v4292_v52 = vadd.f32 %v5748_v34, %v5726_v51 }
0x1131   : > { %v5765_v53 = vpop.f32.mrb[48].mxu1  ;;  %v5787_v57 = vpop.f32.mrb[36].mxu0 }
0x1132   : > { %v5766_v4 = vpop.f32.mrb[49].mxu1  ;;  %v5788_v36 = vpop.f32.mrb[37].mxu0 }
0x1133   : > { %v5767_v9 = vadd.f32 %v5766_v4, %v5765_v53  ;;  %v5789_v37 = vadd.f32 %v5788_v36, %v5787_v57  ;;  %v5768_v49 = vpop.f32.mrb[50].mxu1  ;;  %v5790_v58 = vpop.f32.mrb[38].mxu0 }
0x1134   : > { %v5769_v63 = vpop.f32.mrb[51].mxu1  ;;  %v5791_v47 = vpop.f32.mrb[39].mxu0 }
0x1135   : > { %v4330_v28 = vadd.f32 %v5767_v9, %v4289_v50  ;;  %v5770_v59 = vadd.f32 %v5769_v63, %v5768_v49  ;;  %v5792_v1 = vadd.f32 %v5791_v47, %v5790_v58  ;;  %v5609_v49 = vld [vmem:[%s7076_s21 + $0x17] ss:$0 sm:$0xff]  ;;  %v5610_v47 = vld [vmem:[%s7076_s21 + $0x18] ss:$0 sm:$0xff] }
0x1137   : > { %v4371_v61 = vadd.f32 %v5789_v37, %v4330_v28  ;;  %v4333_v2 = vadd.f32 %v5770_v59, %v4292_v52 }
0x1139   : > { %v4374_v60 = vadd.f32 %v5792_v1, %v4333_v2 }
0x1151   : > { %v5809_v40 = vpop.f32.mrb[52].mxu1  ;;  %v5831_v3 = vpop.f32.mrb[40].mxu0 }
0x1152   : > { %v5810_v8 = vpop.f32.mrb[53].mxu1  ;;  %v5832_v11 = vpop.f32.mrb[41].mxu0 }
0x1153   : > { %v5811_v15 = vadd.f32 %v5810_v8, %v5809_v40  ;;  %v5833_v16 = vadd.f32 %v5832_v11, %v5831_v3  ;;  %v5812_v18 = vpop.f32.mrb[54].mxu1  ;;  %v5834_v54 = vpop.f32.mrb[42].mxu0  ;;  %v6537_v40 = vld [vmem:[#allocation11] ss:$8 sps:$4 sm:$0xff] (!%p5611_p2)   ;;  %v6802_v3 = vmov (!%p5611_p2), 0  }
0x1154   : > { %v5813_v55 = vpop.f32.mrb[55].mxu1  ;;  %v5835_v38 = vpop.f32.mrb[43].mxu0  ;;  %5120 = vmatprep.mubr.bf16.mxu0 (!%p5611_p2), %v6802_v3  ;;  %v6538_v8 = vld [vmem:[#allocation11 + $0x14] ss:$8 sps:$4 sm:$0xff] (!%p5611_p2)   ;;  %v6540_v11 = vld [vmem:[#allocation11 + $0x10] ss:$8 sps:$4 sm:$0xff] (!%p5611_p2)  }
0x1155   : > { %v4796_v19 = vadd.f32 %v5811_v15, %v4371_v61  ;;  %v5814_v20 = vadd.f32 %v5813_v55, %v5812_v18  ;;  %v5836_v39 = vadd.f32 %v5835_v38, %v5834_v54  ;;  %v6541_v15 = vld [vmem:[#allocation11 + $0x24] ss:$8 sps:$4 sm:$0xff] (!%p5611_p2)   ;;  %v6544_v18 = vld [vmem:[#allocation11 + $0x34] ss:$8 sps:$4 sm:$0xff] (!%p5611_p2)   ;;  %v6546_v54 = vld [vmem:[#allocation11 + $0x30] ss:$8 sps:$4 sm:$0xff] (!%p5611_p2)  }
0x1156   : > { %v6547_v55 = vld [vmem:[#allocation11 + $0x44] ss:$8 sps:$4 sm:$0xff] (!%p5611_p2)   ;;  %v6549_v38 = vld [vmem:[#allocation11 + $0x40] ss:$8 sps:$4 sm:$0xff] (!%p5611_p2)  }
0x1157   : > { %v4837_v21 = vadd.f32 %v5833_v16, %v4796_v19  ;;  %v4799_v22 = vadd.f32 %v5814_v20, %v4374_v60  ;;  %v6535_v60 = vld [vmem:[#allocation11 + $0x4] ss:$8 sps:$4 sm:$0xff] (!%p5611_p2)   ;;  %v6543_v16 = vld [vmem:[#allocation11 + $0x20] ss:$8 sps:$4 sm:$0xff] (!%p5611_p2)   ;;  %v6550_v19 = vld [vmem:[#allocation11 + $0x54] ss:$8 sps:$4 sm:$0xff] (!%p5611_p2)  }
0x1158   : > { %5088 = vmatprep.subr.bf16.mxu0 (!%p5611_p2), %v6535_v60  ;;  %v6552_v20 = vld [vmem:[#allocation11 + $0x50] ss:$8 sps:$4 sm:$0xff] (!%p5611_p2)  }
0x1159   : > { %v4840_v23 = vadd.f32 %v5836_v39, %v4799_v22  ;;  %5089 = vmatpush1.bf16.msra.mxu0 (!%p5611_p2), %v6537_v40  ;;  %v6553_v39 = vld [vmem:[#allocation11 + $0x64] ss:$8 sps:$4 sm:$0xff] (!%p5611_p2)   ;;  %v6556_v22 = vld [vmem:[#allocation11 + $0x74] ss:$8 sps:$4 sm:$0xff] (!%p5611_p2)  }
0x115a   : > { %5090 = vmatprep.subr.bf16.mxu0 (!%p5611_p2), %v6538_v8 }
0x115d   : > { %5091 = vmatpush1.bf16.msra.mxu0 (!%p5611_p2), %v6540_v11 }
0x115e   : > { %5092 = vmatprep.subr.bf16.mxu0 (!%p5611_p2), %v6541_v15 }
0x1161   : > { %5093 = vmatpush1.bf16.msra.mxu0 (!%p5611_p2), %v6543_v16 }
0x1162   : > { %5094 = vmatprep.subr.bf16.mxu0 (!%p5611_p2), %v6544_v18 }
0x1165   : > { %5095 = vmatpush1.bf16.msra.mxu0 (!%p5611_p2), %v6546_v54 }
0x1166   : > { %5096 = vmatprep.subr.bf16.mxu0 (!%p5611_p2), %v6547_v55 }
0x1169   : > { %5097 = vmatpush1.bf16.msra.mxu0 (!%p5611_p2), %v6549_v38 }
0x116a   : > { %5098 = vmatprep.subr.bf16.mxu0 (!%p5611_p2), %v6550_v19 }
0x116d   : > { %5099 = vmatpush1.bf16.msra.mxu0 (!%p5611_p2), %v6552_v20 }
0x116e   : > { %5100 = vmatprep.subr.bf16.mxu0 (!%p5611_p2), %v6553_v39 }
0x1171   : > { %v5853_v17 = vpop.f32.mrb[56].mxu1 }
0x1172   : > { %v5875_v24 = vpop.f32.mrb[44].mxu0  ;;  %v5854_v25 = vpop.f32.mrb[57].mxu1 }
0x1173   : > { %v5855_v26 = vadd.f32 %v5854_v25, %v5853_v17  ;;  %v5876_v29 = vpop.f32.mrb[45].mxu0  ;;  %v5856_v14 = vpop.f32.mrb[58].mxu1 }
0x1174   : > { %v5877_v27 = vadd.f32 %v5876_v29, %v5875_v24  ;;  %v5878_v30 = vpop.f32.mrb[46].mxu0  ;;  %v5857_v31 = vpop.f32.mrb[59].mxu1  ;;  %v4979_v24 = vld [vmem:[%s7076_s21 + $0x19] sm:$0x3] (!%p5611_p2) }
0x1175   : > { %v4878_v32 = vadd.f32 %v5855_v26, %v4837_v21  ;;  %v5858_v35 = vadd.f32 %v5857_v31, %v5856_v14  ;;  %v5879_v33 = vpop.f32.mrb[47].mxu0  ;;  %v6555_v21 = vld [vmem:[#allocation11 + $0x60] ss:$8 sps:$4 sm:$0xff] (!%p5611_p2)   ;;  %v5001_v25 = vrot.slane (!%p5611_p2), %v4979_v24, %v7138_v62  ;;  %v5005_v26 = vrot.slane (!%p5611_p2), %v4979_v24, %v7142_v0 }
0x1176   : > { %v5880_v41 = vadd.f32 %v5879_v33, %v5878_v30  ;;  %5101 = vmatpush1.bf16.msra.mxu0 (!%p5611_p2), %v6555_v21 }
0x1177   : > { %v4919_v43 = vadd.f32 %v5877_v27, %v4878_v32  ;;  %v4881_v44 = vadd.f32 %v5858_v35, %v4840_v23  ;;  %v6558_v23 = vld [vmem:[#allocation11 + $0x70] ss:$8 sps:$4 sm:$0xff] (!%p5611_p2)   ;;  %5102 = vmatprep.subr.bf16.mxu0 (!%p5611_p2), %v6556_v22 }
0x1179   : > { %v4922_v6 = vadd.f32 %v5880_v41, %v4881_v44  ;;  %v4931_v10 = vadd.f32 %v5608_v42, %v4919_v43 }
0x117a   : > { %5103 = vmatpush1.bf16.msra.mxu0 (!%p5611_p2), %v6558_v23 }
0x117b   : > { %v4933_v12 = vadd.f32 %v4931_v10, %v7373_v5  ;;  %v4932_v45 = vadd.f32 %v5608_v42, %v4922_v6 }
0x117d   : > { %4935 = vadd.xlane.f32.xlu1 %v4933_v12  ;;  %v4934_v46 = vadd.f32 %v4932_v45, %v7375_v7 }
0x117f   : > { %4937 = vadd.xlane.f32.xlu0 %v4934_v46 }
0x120a   : > { %v4936_v13 = vpop.xlane.xlu1 %4935 }
0x120b   : > { %v4939_v56 = vmul.f32 0.0078125, %v4936_v13 }
0x120c   : > { %v4938_v48 = vpop.xlane.xlu0 %4937 }
0x120d   : > { %v4941_v50 = vsub.f32 %v4933_v12, %v4939_v56  ;;  %v4940_v51 = vmul.f32 0.0078125, %v4938_v48 }
0x120f   : > { %v4942_v34 = vsub.f32 %v4934_v46, %v4940_v51  ;;  %v4943_v52 = vmul.f32 %v4941_v50, %v4941_v50 }
0x1211   : > { %4945 = vadd.xlane.f32.xlu1 %v4943_v52  ;;  %v4944_v53 = vmul.f32 %v4942_v34, %v4942_v34 }
0x1213   : > { %4947 = vadd.xlane.f32.xlu0 %v4944_v53 }
0x129e   : > { %v4946_v57 = vpop.xlane.xlu1 %4945 }
0x129f   : > { %v4949_v4 = vmul.f32 0.0078125, %v4946_v57 }
0x12a0   : > { %v4948_v5 = vpop.xlane.xlu0 %4947 }
0x12a1   : > { %v4951_v36 = vadd.f32 1e-05, %v4949_v4  ;;  %v4950_v9 = vmul.f32 0.0078125, %v4948_v5 }
0x12a3   : > { %6529 = vrsqrt.f32 %v4951_v36  ;;  %v4952_v7 = vadd.f32 1e-05, %v4950_v9 }
0x12a5   : > { %6531 = vrsqrt.f32 %v4952_v7 }
0x12ad   : > { %v6530_v37 = vpop.eup %6529 }
0x12ae   : > { %v4955_v58 = vmul.f32 %v6530_v37, %v4941_v50 }
0x12af   : > { %v6532_v63 = vpop.eup %6531 }
0x12b0   : > { %v4963_v28 = vmul.f32 %v5609_v49, %v4955_v58  ;;  %v4956_v59 = vmul.f32 %v6532_v63, %v4942_v34  ;;  %4978 = sbr.rel (%p5611_p2) target bundleno = 5010 (0x1392), region = 72 }
0x12b2   : > { %v4971_v1 = vadd.f32 %v5610_v47, %v4963_v28  ;;  %v4964_v61 = vmul.f32 %v5609_v49, %v4956_v59 }
0x12b4   : > { %4973 = vst [vmem:[#allocation2] sm:$0xff] %v4971_v1  ;;  %v4972_v2 = vadd.f32 %v5610_v47, %v4964_v61 }
0x12b6   : > { %4974 = vst [vmem:[#allocation2 + $0x8] sm:$0xff] %v4972_v2  ;;  %v4980_v17 = vpack.c.bf16 (!%p5611_p2), %v4972_v2, %v4971_v1 }
0x12b8   : > { %5121 = vmatmul.mubr.bf16.vlgmr.msra.gmra.mrb[0].mxu0 %v4980_v17 }
0x138b   : > { %v5122_v29 = vpop.f32.mrb[0].mxu0 }
0x138c   : > { %v5123_v14 = vadd.f32 %v5122_v29, %v5001_v25  ;;  %v5124_v27 = vpop.f32.mrb[1].mxu0 }
0x138d   : > { %v5125_v30 = vadd.f32 %v5124_v27, %v5005_v26  ;;  %v5126_v31 = vpop.f32.mrb[2].mxu0 }
0x138e   : > { %5131 = vst [vmem:[#allocation12] sm:$0xff] %v5123_v14  ;;  %v5127_v32 = vadd.f32 %v5126_v31, %v5001_v25  ;;  %v5128_v35 = vpop.f32.mrb[3].mxu0 }
0x138f   : > { %5132 = vst [vmem:[#allocation12 + $0x8] sm:$0xff] %v5125_v30  ;;  %v5129_v33 = vadd.f32 %v5128_v35, %v5005_v26 }
0x1390   : > { %5133 = vst [vmem:[#allocation12 + $0x10] sm:$0xff] %v5127_v32 }
0x1391   : > { %5134 = vst [vmem:[#allocation12 + $0x18] sm:$0xff] %v5129_v33 }
0x1392 PF: > { %p6047_p12 = scmp.eq.s32.totalorder %s6860_s25, 1  ;;  %s6803_s17 = smov [#allocation12]  }
0x1393   : > { %s5141_s24 = sshll.u32 %s6803_s17, 4  ;;  %s5142_s24 = int_to_ptr.vmem [resolvable:$true] %s5141_s24 }
0x1394   : > { %s6705_s19 = scalar_lea.vmem %s5142_s24, 512  ;;  %p6712_p0 = scmp.lt.s32.totalorder %s5142_s24, %s5142_s24 }
0x1395   : > { %p6706_p1 = scmp.ne.s32.totalorder %s5142_s24, %s6705_s19  ;;  %p6713_p4 = scmp.lt.s32.totalorder %s6705_s19, %s6705_s19 }
0x1397   : > { %p6707_p7 = pnand %p6706_p1, %p6047_p12  ;;  %p6714_p9 = por %p6713_p4, %p6712_p0 }
0x1399   : > { %p6708_p11 = pneg %p6707_p7 }
0x139b   : > { %p6715_p8 = pnand %p6714_p9, %p6708_p11 }
0x139d   : > { %6718 = shalt.err (!%p6715_p8)
}
0x139e   : > { %s6719_s28 = scalar_lea.hbm %s7735_s6, 512 }
0x139f   : > { %p6720_p5 = scmp.ne.s32.totalorder %s7735_s6, %s6719_s28  ;;  %p6725_p3 = scmp.lt.u32.totalorder %s6719_s28, %s7735_s6 }
0x13a1   : > { %p6721_p6 = pnand %p6720_p5, %p6047_p12 }
0x13a3   : > { %p6722_p13 = pneg %p6721_p6 }
0x13a5   : > { %p6727_p10 = pnand %p6725_p3, %p6722_p13 }
0x13a7   : > { %6730 = shalt.err (!%p6727_p10)
}
0x13a8   : > { %s6804_s8 = smov 256   ;;  %s6805_s16 = smov 16  }
0x13a9   : > { %6022 = dma.vmem_to_hbm [thread:$0]  (%p6047_p12), %s5142_s24, 512, %s7735_s6, [#allocation5], %s6804_s8, %s6804_s8, %s6805_s16  }
0x13aa   : > { %6764 = dma.done.wait (%p6047_p12), [#allocation5], 512  }
0x13ab   : > { %6766 = vsyncadd (%p6047_p12), [#allocation5], 4294966784 }
0x13ac PF: > { %s7774_s10 = sld [smem:[#allocation18_spill]]  ;;  %p21_p2 = scmp.ge.s32.totalorder %s6863_s26, 4  }
0x13ad   : > { %s7775_s21 = smov %s6773_s22  ;;  %s7776_s22 = smov %s6777_s23 }
0x13ae   : > { %s7778_s24 = smov %s6863_s26  ;;  %23 = sbr.rel (!%p21_p2) target bundleno = 10 (0xa), region = 122 }
0x13b2   : > { %s7777_s23 = smov %s7774_s10 }
0x13b5   :  { %5157 = vsyncpa [#allocation4], 1 }
0x13b6   :  { %5159 = vsyncpa [#allocation4 + $0x1], 1 }
0x13b7   :  { %5160 = vsyncpa [#allocation7], 1 }
0x13b8   :  { %5162 = vsyncpa [#allocation7 + $0x1], 1 }
0x13b9   :  { %5163 = vsyncpa [#allocation10], 1 }
0x13ba   :  { %5165 = vsyncpa [#allocation10 + $0x1], 1 }
0x13bb   :  { %5166 = vsyncpa [#allocation5], 1 }
0x13bc   :  { %5168 = vsyncpa [#allocation5 + $0x1], 1 }

</bundles_post_ra>
